<compile_context>
chip_gen: v5e
topology: v5e:2x2
jax: 0.10.0
libtpu: 0.0.40
codegen_flags: <defaults>
</compile_context>

<pallas_src>
import math

import jax
import jax.numpy as jnp
from jax.experimental import pallas as pl
from jax.experimental.pallas import tpu as pltpu

# ----------------------------- synthetic config -----------------------------
VOCAB = 64
HIDDEN = 32
N_HEADS = 4
HEAD_DIM = HIDDEN // N_HEADS
FFN = 4 * HIDDEN
N_LAYERS = 2
MAX_POS = 64
NUM_LABELS = 3
LN_EPS = 1e-5
PAD_IDX = 1  # RoBERTa / CamemBERT padding_idx convention


# ------------------------------ kernel helpers -------------------------------
def _layernorm(x, g, b, eps=LN_EPS):
    mu = jnp.mean(x, axis=-1, keepdims=True)
    var = jnp.mean((x - mu) ** 2, axis=-1, keepdims=True)
    return (x - mu) * jax.lax.rsqrt(var + eps) * g + b


def _full_block(shape):
    nd = len(shape)
    return pl.BlockSpec(shape, lambda *_: (0,) * nd)


# ------------------------------ fused forward kernel --------------------------
def fused_forward_kernel(
    x2_ref, mask_ref, onehot_ref,
    emb_g_ref, emb_b_ref,
    wq_ref, bq_ref, wk_ref, bk_ref, wv_ref, bv_ref, wo_ref, bo_ref,
    ln1g_ref, ln1b_ref,
    w1_ref, b1_ref, w2_ref, b2_ref,
    ln2g_ref, ln2b_ref,
    clsw_ref, clsb_ref,
    logits_ref, loss_ref,
):
    B, S = mask_ref.shape
    BS, H = x2_ref.shape
    scale = 1.0 / math.sqrt(HEAD_DIM)

    # ---- embedding LayerNorm on the flattened (B*S, H) slab ----
    x = _layernorm(x2_ref[...].astype(jnp.float32), emb_g_ref[...], emb_b_ref[...])

    # ---- additive attention bias built in-kernel from the padding mask ----
    bias = ((1.0 - mask_ref[...]) * -1e9)[:, None, :]            # (B, 1, S)

    # ---- encoder layers (statically unrolled; weights stacked on axis 0) ----
    for l in range(N_LAYERS):
        xb = x.astype(jnp.bfloat16)
        q = jnp.dot(xb, wq_ref[l], preferred_element_type=jnp.float32) + bq_ref[l]
        k = jnp.dot(xb, wk_ref[l], preferred_element_type=jnp.float32) + bk_ref[l]
        v = jnp.dot(xb, wv_ref[l], preferred_element_type=jnp.float32) + bv_ref[l]

        q3 = q.astype(jnp.bfloat16).reshape(B, S, H)
        k3 = k.astype(jnp.bfloat16).reshape(B, S, H)
        v3 = v.astype(jnp.bfloat16).reshape(B, S, H)

        # Multi-head attention: batched (over B) einsums per head.
        head_outs = []
        for h in range(N_HEADS):
            lo = h * HEAD_DIM
            hi = lo + HEAD_DIM
            qh, kh, vh = q3[:, :, lo:hi], k3[:, :, lo:hi], v3[:, :, lo:hi]
            s = jnp.einsum("bqd,bkd->bqk", qh, kh,
                           preferred_element_type=jnp.float32) * scale + bias
            s = s - jnp.max(s, axis=-1, keepdims=True)
            p = jnp.exp(s)
            p = p * pl.reciprocal(jnp.sum(p, axis=-1, keepdims=True), approx=True)
            head_outs.append(
                jnp.einsum("bqk,bkd->bqd", p.astype(jnp.bfloat16), vh,
                           preferred_element_type=jnp.float32))
        ctx = jnp.concatenate(head_outs, axis=-1).reshape(BS, H)

        attn = jnp.dot(ctx.astype(jnp.bfloat16), wo_ref[l],
                       preferred_element_type=jnp.float32) + bo_ref[l]
        h1 = _layernorm(x + attn, ln1g_ref[l], ln1b_ref[l])

        f = jnp.dot(h1.astype(jnp.bfloat16), w1_ref[l],
                    preferred_element_type=jnp.float32) + b1_ref[l]
        # TODO(synk): HF "gelu" is erf-based; tanh approximation kept (Mosaic-safe).
        f = jax.nn.gelu(f, approximate=True)
        f = jnp.dot(f.astype(jnp.bfloat16), w2_ref[l],
                    preferred_element_type=jnp.float32) + b2_ref[l]
        x = _layernorm(h1 + f, ln2g_ref[l], ln2b_ref[l])

    # ---- classifier head on the CLS (<s>) token; dropout = identity (eval) ----
    cls = x.reshape(B, S, H)[:, 0, :]                            # (B, H)
    logits = jnp.dot(cls.astype(jnp.bfloat16), clsw_ref[...],
                     preferred_element_type=jnp.float32) + clsb_ref[...]
    logits_ref[...] = logits.astype(logits_ref.dtype)

    # ---- cross entropy (mean over batch) against one-hot labels ----
    z = logits - jnp.max(logits, axis=-1, keepdims=True)
    logp = z - jnp.log(jnp.sum(jnp.exp(z), axis=-1, keepdims=True))
    nll = -jnp.sum(onehot_ref[...] * logp, axis=-1, keepdims=True)   # (B, 1)
    loss_ref[...] = jnp.sum(nll, axis=0, keepdims=True) / nll.shape[0]


def fused_forward(emb2, mask_f, onehot, p, B, S):
    inputs = (
        emb2, mask_f, onehot,
        p["emb_ln_g"], p["emb_ln_b"],
        p["wq"], p["bq"], p["wk"], p["bk"], p["wv"], p["bv"], p["wo"], p["bo"],
        p["ln1_g"], p["ln1_b"],
        p["w1"], p["b1"], p["w2"], p["b2"],
        p["ln2_g"], p["ln2_b"],
        p["cls_w"], p["cls_b"],
    )
    in_specs = [_full_block(a.shape) for a in inputs]
    out_specs = (_full_block((B, NUM_LABELS)), _full_block((1, 1)))
    return pl.pallas_call(
        fused_forward_kernel,
        grid=(1,),
        in_specs=in_specs,
        out_specs=out_specs,
        out_shape=(
            jax.ShapeDtypeStruct((B, NUM_LABELS), jnp.float32),
            jax.ShapeDtypeStruct((1, 1), jnp.float32),
        ),
        compiler_params=pltpu.CompilerParams(dimension_semantics=("arbitrary",)),
    )(*inputs)


# ------------------------------- parameter init -------------------------------
def init_params(key):
    keys = list(jax.random.split(key, 12))
    ki = iter(keys)

    def normal(shape, dtype=jnp.float32):
        return (jax.random.normal(next(ki), shape, jnp.float32) * 0.02).astype(dtype)

    bf16 = jnp.bfloat16
    params = {
        "word_emb": normal((VOCAB, HIDDEN)),
        "pos_emb": normal((MAX_POS, HIDDEN)),
        "type_emb": normal((1, HIDDEN)),
        "emb_ln_g": jnp.ones((1, HIDDEN), jnp.float32),
        "emb_ln_b": jnp.zeros((1, HIDDEN), jnp.float32),
        # encoder weights stacked on a leading N_LAYERS axis; matmul weights bf16
        "wq": normal((N_LAYERS, HIDDEN, HIDDEN), bf16),
        "bq": jnp.zeros((N_LAYERS, 1, HIDDEN), jnp.float32),
        "wk": normal((N_LAYERS, HIDDEN, HIDDEN), bf16),
        "bk": jnp.zeros((N_LAYERS, 1, HIDDEN), jnp.float32),
        "wv": normal((N_LAYERS, HIDDEN, HIDDEN), bf16),
        "bv": jnp.zeros((N_LAYERS, 1, HIDDEN), jnp.float32),
        "wo": normal((N_LAYERS, HIDDEN, HIDDEN), bf16),
        "bo": jnp.zeros((N_LAYERS, 1, HIDDEN), jnp.float32),
        "ln1_g": jnp.ones((N_LAYERS, 1, HIDDEN), jnp.float32),
        "ln1_b": jnp.zeros((N_LAYERS, 1, HIDDEN), jnp.float32),
        "w1": normal((N_LAYERS, HIDDEN, FFN), bf16),
        "b1": jnp.zeros((N_LAYERS, 1, FFN), jnp.float32),
        "w2": normal((N_LAYERS, FFN, HIDDEN), bf16),
        "b2": jnp.zeros((N_LAYERS, 1, HIDDEN), jnp.float32),
        "ln2_g": jnp.ones((N_LAYERS, 1, HIDDEN), jnp.float32),
        "ln2_b": jnp.zeros((N_LAYERS, 1, HIDDEN), jnp.float32),
        "cls_w": normal((HIDDEN, NUM_LABELS), bf16),
        "cls_b": jnp.zeros((1, NUM_LABELS), jnp.float32),
    }
    return params


# ------------------------------ full forward pass ------------------------------
def camembert_for_sequence_classification(params, input_ids, attention_mask, labels=None):
    B, S = input_ids.shape
    mask_f = attention_mask.astype(jnp.float32)

    # Embeddings (gather glue in plain JAX; RoBERTa-style position ids, clamped).
    pad_mask = (input_ids != PAD_IDX).astype(jnp.int32)
    position_ids = jnp.cumsum(pad_mask, axis=1) * pad_mask + PAD_IDX
    position_ids = jnp.minimum(position_ids, MAX_POS - 1)
    emb = (params["word_emb"][input_ids]
           + params["pos_emb"][position_ids]
           + params["type_emb"][0])
    emb2 = emb.reshape(B * S, HIDDEN).astype(jnp.float32)

    if labels is not None:
        onehot = jax.nn.one_hot(labels, NUM_LABELS, dtype=jnp.float32)
    else:
        onehot = jnp.zeros((B, NUM_LABELS), jnp.float32)

    logits, loss2d = fused_forward(emb2, mask_f, onehot, params, B, S)
    loss = loss2d[0, 0] if labels is not None else None
    return logits, loss


# ------------------------------------ main -------------------------------------
if __name__ == "__main__":
    key = jax.random.PRNGKey(0)
    k_param, k_ids = jax.random.split(key)

    B, S = 2, 8
    params = init_params(k_param)

    input_ids = jax.random.randint(k_ids, (B, S), 2, VOCAB, dtype=jnp.int32)
    input_ids = input_ids.at[:, 0].set(0)              # <s> / CLS token
    input_ids = input_ids.at[1, 6:].set(PAD_IDX)       # pad tail of 2nd sequence
    attention_mask = (input_ids != PAD_IDX).astype(jnp.int32)
    labels = jnp.array([0, 2], dtype=jnp.int32)

    logits, loss = camembert_for_sequence_classification(
        params, input_ids, attention_mask, labels)
    jax.block_until_ready((logits, loss))

    assert logits.shape == (B, NUM_LABELS)
    assert loss.shape == ()
    assert bool(jnp.all(jnp.isfinite(logits))) and bool(jnp.isfinite(loss))
    print("KERNEL_OK")
</pallas_src>

<mosaic_0001>
module attributes {stable_mosaic.version = 11 : i64} {
  func.func @fused_forward_kernel(%arg0: i32, %arg1: memref<16x32xf32, #tpu.memory_space<vmem>>, %arg2: memref<2x8xf32, #tpu.memory_space<vmem>>, %arg3: memref<2x3xf32, #tpu.memory_space<vmem>>, %arg4: memref<1x32xf32, #tpu.memory_space<vmem>>, %arg5: memref<1x32xf32, #tpu.memory_space<vmem>>, %arg6: memref<2x32x32xbf16, #tpu.memory_space<vmem>>, %arg7: memref<2x1x32xf32, #tpu.memory_space<vmem>>, %arg8: memref<2x32x32xbf16, #tpu.memory_space<vmem>>, %arg9: memref<2x1x32xf32, #tpu.memory_space<vmem>>, %arg10: memref<2x32x32xbf16, #tpu.memory_space<vmem>>, %arg11: memref<2x1x32xf32, #tpu.memory_space<vmem>>, %arg12: memref<2x32x32xbf16, #tpu.memory_space<vmem>>, %arg13: memref<2x1x32xf32, #tpu.memory_space<vmem>>, %arg14: memref<2x1x32xf32, #tpu.memory_space<vmem>>, %arg15: memref<2x1x32xf32, #tpu.memory_space<vmem>>, %arg16: memref<2x32x128xbf16, #tpu.memory_space<vmem>>, %arg17: memref<2x1x128xf32, #tpu.memory_space<vmem>>, %arg18: memref<2x128x32xbf16, #tpu.memory_space<vmem>>, %arg19: memref<2x1x32xf32, #tpu.memory_space<vmem>>, %arg20: memref<2x1x32xf32, #tpu.memory_space<vmem>>, %arg21: memref<2x1x32xf32, #tpu.memory_space<vmem>>, %arg22: memref<32x3xbf16, #tpu.memory_space<vmem>>, %arg23: memref<1x3xf32, #tpu.memory_space<vmem>>, %arg24: memref<2x3xf32, #tpu.memory_space<vmem>>, %arg25: memref<1x1xf32, #tpu.memory_space<vmem>>) attributes {dimension_semantics = [#tpu.dimension_semantics<arbitrary>], iteration_bounds = array<i64: 1>, scalar_prefetch = 0 : i64, scratch_operands = 0 : i64, tpu.core_type = #tpu.core_type<tc>, window_params = [{pipeline_mode = #tpu.pipeline_mode<synchronous>, transform_indices = @transform_0, window_bounds = array<i64: 16, 32>}, {pipeline_mode = #tpu.pipeline_mode<synchronous>, transform_indices = @transform_1, window_bounds = array<i64: 2, 8>}, {pipeline_mode = #tpu.pipeline_mode<synchronous>, transform_indices = @transform_2, window_bounds = array<i64: 2, 3>}, {pipeline_mode = #tpu.pipeline_mode<synchronous>, transform_indices = @transform_3, window_bounds = array<i64: 1, 32>}, {pipeline_mode = #tpu.pipeline_mode<synchronous>, transform_indices = @transform_4, window_bounds = array<i64: 1, 32>}, {pipeline_mode = #tpu.pipeline_mode<synchronous>, transform_indices = @transform_5, window_bounds = array<i64: 2, 32, 32>}, {pipeline_mode = #tpu.pipeline_mode<synchronous>, transform_indices = @transform_6, window_bounds = array<i64: 2, 1, 32>}, {pipeline_mode = #tpu.pipeline_mode<synchronous>, transform_indices = @transform_7, window_bounds = array<i64: 2, 32, 32>}, {pipeline_mode = #tpu.pipeline_mode<synchronous>, transform_indices = @transform_8, window_bounds = array<i64: 2, 1, 32>}, {pipeline_mode = #tpu.pipeline_mode<synchronous>, transform_indices = @transform_9, window_bounds = array<i64: 2, 32, 32>}, {pipeline_mode = #tpu.pipeline_mode<synchronous>, transform_indices = @transform_10, window_bounds = array<i64: 2, 1, 32>}, {pipeline_mode = #tpu.pipeline_mode<synchronous>, transform_indices = @transform_11, window_bounds = array<i64: 2, 32, 32>}, {pipeline_mode = #tpu.pipeline_mode<synchronous>, transform_indices = @transform_12, window_bounds = array<i64: 2, 1, 32>}, {pipeline_mode = #tpu.pipeline_mode<synchronous>, transform_indices = @transform_13, window_bounds = array<i64: 2, 1, 32>}, {pipeline_mode = #tpu.pipeline_mode<synchronous>, transform_indices = @transform_14, window_bounds = array<i64: 2, 1, 32>}, {pipeline_mode = #tpu.pipeline_mode<synchronous>, transform_indices = @transform_15, window_bounds = array<i64: 2, 32, 128>}, {pipeline_mode = #tpu.pipeline_mode<synchronous>, transform_indices = @transform_16, window_bounds = array<i64: 2, 1, 128>}, {pipeline_mode = #tpu.pipeline_mode<synchronous>, transform_indices = @transform_17, window_bounds = array<i64: 2, 128, 32>}, {pipeline_mode = #tpu.pipeline_mode<synchronous>, transform_indices = @transform_18, window_bounds = array<i64: 2, 1, 32>}, {pipeline_mode = #tpu.pipeline_mode<synchronous>, transform_indices = @transform_19, window_bounds = array<i64: 2, 1, 32>}, {pipeline_mode = #tpu.pipeline_mode<synchronous>, transform_indices = @transform_20, window_bounds = array<i64: 2, 1, 32>}, {pipeline_mode = #tpu.pipeline_mode<synchronous>, transform_indices = @transform_21, window_bounds = array<i64: 32, 3>}, {pipeline_mode = #tpu.pipeline_mode<synchronous>, transform_indices = @transform_22, window_bounds = array<i64: 1, 3>}, {pipeline_mode = #tpu.pipeline_mode<synchronous>, transform_indices = @transform_23, window_bounds = array<i64: 2, 3>}, {pipeline_mode = #tpu.pipeline_mode<synchronous>, transform_indices = @transform_24, window_bounds = array<i64: 1, 1>}]} {
    %c0 = arith.constant 0 : index
    %c0_0 = arith.constant 0 : index
    %0 = vector.load %arg1[%c0, %c0_0] : memref<16x32xf32, #tpu.memory_space<vmem>>, vector<16x32xf32>
    %c0_1 = arith.constant 0 : index
    %c0_2 = arith.constant 0 : index
    %1 = vector.load %arg4[%c0_1, %c0_2] : memref<1x32xf32, #tpu.memory_space<vmem>>, vector<1x32xf32>
    %c0_3 = arith.constant 0 : index
    %c0_4 = arith.constant 0 : index
    %2 = vector.load %arg5[%c0_3, %c0_4] : memref<1x32xf32, #tpu.memory_space<vmem>>, vector<1x32xf32>
    %cst = arith.constant dense<0.000000e+00> : vector<16xf32>
    %3 = vector.multi_reduction <add>, %0, %cst [1] : vector<16x32xf32> to vector<16xf32>
    %4 = vector.shape_cast %3 : vector<16xf32> to vector<16x1xf32>
    %cst_5 = arith.constant 3.200000e+01 : f32
    %5 = vector.broadcast %cst_5 : f32 to vector<16x1xf32>
    %6 = arith.divf %4, %5 : vector<16x1xf32>
    %7 = vector.broadcast %6 : vector<16x1xf32> to vector<16x32xf32>
    %8 = arith.subf %0, %7 : vector<16x32xf32>
    %9 = arith.mulf %8, %8 : vector<16x32xf32>
    %cst_6 = arith.constant dense<0.000000e+00> : vector<16xf32>
    %10 = vector.multi_reduction <add>, %9, %cst_6 [1] : vector<16x32xf32> to vector<16xf32>
    %11 = vector.shape_cast %10 : vector<16xf32> to vector<16x1xf32>
    %cst_7 = arith.constant 3.200000e+01 : f32
    %12 = vector.broadcast %cst_7 : f32 to vector<16x1xf32>
    %13 = arith.divf %11, %12 : vector<16x1xf32>
    %14 = vector.broadcast %6 : vector<16x1xf32> to vector<16x32xf32>
    %15 = arith.subf %0, %14 : vector<16x32xf32>
    %cst_8 = arith.constant 9.99999974E-6 : f32
    %16 = vector.broadcast %cst_8 : f32 to vector<16x1xf32>
    %17 = arith.addf %13, %16 : vector<16x1xf32>
    %18 = math.rsqrt %17 : vector<16x1xf32>
    %19 = vector.broadcast %18 : vector<16x1xf32> to vector<16x32xf32>
    %20 = arith.mulf %15, %19 : vector<16x32xf32>
    %21 = vector.broadcast %1 : vector<1x32xf32> to vector<16x32xf32>
    %22 = arith.mulf %20, %21 : vector<16x32xf32>
    %23 = vector.broadcast %2 : vector<1x32xf32> to vector<16x32xf32>
    %24 = arith.addf %22, %23 : vector<16x32xf32>
    %c0_9 = arith.constant 0 : index
    %c0_10 = arith.constant 0 : index
    %25 = vector.load %arg2[%c0_9, %c0_10] : memref<2x8xf32, #tpu.memory_space<vmem>>, vector<2x8xf32>
    %cst_11 = arith.constant 1.000000e+00 : f32
    %26 = vector.broadcast %cst_11 : f32 to vector<2x8xf32>
    %27 = arith.subf %26, %25 : vector<2x8xf32>
    %cst_12 = arith.constant -1.000000e+09 : f32
    %28 = vector.broadcast %cst_12 : f32 to vector<2x8xf32>
    %29 = arith.mulf %27, %28 : vector<2x8xf32>
    %30 = vector.shape_cast %29 : vector<2x8xf32> to vector<2x1x8xf32>
    %31 = arith.truncf %24 : vector<16x32xf32> to vector<16x32xbf16>
    %c0_13 = arith.constant 0 : index
    %c0_14 = arith.constant 0 : index
    %c0_15 = arith.constant 0 : index
    %32 = vector.load %arg6[%c0_13, %c0_14, %c0_15] : memref<2x32x32xbf16, #tpu.memory_space<vmem>>, vector<1x32x32xbf16>
    %33 = vector.shape_cast %32 : vector<1x32x32xbf16> to vector<32x32xbf16>
    %cst_16 = arith.constant dense<0.000000e+00> : vector<16x32xf32>
    %34 = tpu.matmul %31, %33, %cst_16 {dimension_numbers = #tpu.dot_dimension_numbers<[1], [0], [0], [1], [0, 0, 1, 1], [], []>} : vector<16x32xbf16>, vector<32x32xbf16>, vector<16x32xf32> -> vector<16x32xf32>
    %c0_17 = arith.constant 0 : index
    %c0_18 = arith.constant 0 : index
    %c0_19 = arith.constant 0 : index
    %35 = vector.load %arg7[%c0_17, %c0_18, %c0_19] : memref<2x1x32xf32, #tpu.memory_space<vmem>>, vector<1x1x32xf32>
    %36 = vector.shape_cast %35 : vector<1x1x32xf32> to vector<1x32xf32>
    %37 = vector.broadcast %36 : vector<1x32xf32> to vector<16x32xf32>
    %38 = arith.addf %34, %37 : vector<16x32xf32>
    %c0_20 = arith.constant 0 : index
    %c0_21 = arith.constant 0 : index
    %c0_22 = arith.constant 0 : index
    %39 = vector.load %arg8[%c0_20, %c0_21, %c0_22] : memref<2x32x32xbf16, #tpu.memory_space<vmem>>, vector<1x32x32xbf16>
    %40 = vector.shape_cast %39 : vector<1x32x32xbf16> to vector<32x32xbf16>
    %cst_23 = arith.constant dense<0.000000e+00> : vector<16x32xf32>
    %41 = tpu.matmul %31, %40, %cst_23 {dimension_numbers = #tpu.dot_dimension_numbers<[1], [0], [0], [1], [0, 0, 1, 1], [], []>} : vector<16x32xbf16>, vector<32x32xbf16>, vector<16x32xf32> -> vector<16x32xf32>
    %c0_24 = arith.constant 0 : index
    %c0_25 = arith.constant 0 : index
    %c0_26 = arith.constant 0 : index
    %42 = vector.load %arg9[%c0_24, %c0_25, %c0_26] : memref<2x1x32xf32, #tpu.memory_space<vmem>>, vector<1x1x32xf32>
    %43 = vector.shape_cast %42 : vector<1x1x32xf32> to vector<1x32xf32>
    %44 = vector.broadcast %43 : vector<1x32xf32> to vector<16x32xf32>
    %45 = arith.addf %41, %44 : vector<16x32xf32>
    %c0_27 = arith.constant 0 : index
    %c0_28 = arith.constant 0 : index
    %c0_29 = arith.constant 0 : index
    %46 = vector.load %arg10[%c0_27, %c0_28, %c0_29] : memref<2x32x32xbf16, #tpu.memory_space<vmem>>, vector<1x32x32xbf16>
    %47 = vector.shape_cast %46 : vector<1x32x32xbf16> to vector<32x32xbf16>
    %cst_30 = arith.constant dense<0.000000e+00> : vector<16x32xf32>
    %48 = tpu.matmul %31, %47, %cst_30 {dimension_numbers = #tpu.dot_dimension_numbers<[1], [0], [0], [1], [0, 0, 1, 1], [], []>} : vector<16x32xbf16>, vector<32x32xbf16>, vector<16x32xf32> -> vector<16x32xf32>
    %c0_31 = arith.constant 0 : index
    %c0_32 = arith.constant 0 : index
    %c0_33 = arith.constant 0 : index
    %49 = vector.load %arg11[%c0_31, %c0_32, %c0_33] : memref<2x1x32xf32, #tpu.memory_space<vmem>>, vector<1x1x32xf32>
    %50 = vector.shape_cast %49 : vector<1x1x32xf32> to vector<1x32xf32>
    %51 = vector.broadcast %50 : vector<1x32xf32> to vector<16x32xf32>
    %52 = arith.addf %48, %51 : vector<16x32xf32>
    %53 = arith.truncf %38 : vector<16x32xf32> to vector<16x32xbf16>
    %54 = vector.shape_cast %53 : vector<16x32xbf16> to vector<2x8x32xbf16>
    %55 = arith.truncf %45 : vector<16x32xf32> to vector<16x32xbf16>
    %56 = vector.shape_cast %55 : vector<16x32xbf16> to vector<2x8x32xbf16>
    %57 = arith.truncf %52 : vector<16x32xf32> to vector<16x32xbf16>
    %58 = vector.shape_cast %57 : vector<16x32xbf16> to vector<2x8x32xbf16>
    %59 = vector.extract_strided_slice %54 {offsets = [0, 0, 0], sizes = [2, 8, 8], strides = [1, 1, 1]} : vector<2x8x32xbf16> to vector<2x8x8xbf16>
    %60 = vector.extract_strided_slice %56 {offsets = [0, 0, 0], sizes = [2, 8, 8], strides = [1, 1, 1]} : vector<2x8x32xbf16> to vector<2x8x8xbf16>
    %61 = vector.extract_strided_slice %58 {offsets = [0, 0, 0], sizes = [2, 8, 8], strides = [1, 1, 1]} : vector<2x8x32xbf16> to vector<2x8x8xbf16>
    "tpu.trace_start"() <{level = 10 : i32, message = "bqd,bkd->bqk"}> : () -> ()
    %cst_34 = arith.constant dense<0.000000e+00> : vector<2x8x8xf32>
    %62 = tpu.matmul %59, %60, %cst_34 {dimension_numbers = #tpu.dot_dimension_numbers<[2], [2], [1], [1], [0, 0, 0, 1, 1, 1], [0], [0]>} : vector<2x8x8xbf16>, vector<2x8x8xbf16>, vector<2x8x8xf32> -> vector<2x8x8xf32>
    "tpu.trace_stop"() : () -> ()
    %cst_35 = arith.constant 0.353553385 : f32
    %63 = vector.broadcast %cst_35 : f32 to vector<2x8x8xf32>
    %64 = arith.mulf %62, %63 : vector<2x8x8xf32>
    %65 = vector.broadcast %30 : vector<2x1x8xf32> to vector<2x8x8xf32>
    %66 = arith.addf %64, %65 : vector<2x8x8xf32>
    %cst_36 = arith.constant dense<0xFF800000> : vector<2x8xf32>
    %67 = vector.multi_reduction <maximumf>, %66, %cst_36 [2] : vector<2x8x8xf32> to vector<2x8xf32>
    %68 = vector.shape_cast %67 : vector<2x8xf32> to vector<2x8x1xf32>
    %69 = vector.broadcast %68 : vector<2x8x1xf32> to vector<2x8x8xf32>
    %70 = arith.subf %66, %69 : vector<2x8x8xf32>
    %71 = math.exp %70 : vector<2x8x8xf32>
    %cst_37 = arith.constant dense<0.000000e+00> : vector<2x8xf32>
    %72 = vector.multi_reduction <add>, %71, %cst_37 [2] : vector<2x8x8xf32> to vector<2x8xf32>
    %73 = vector.shape_cast %72 : vector<2x8xf32> to vector<2x8x1xf32>
    %74 = tpu.reciprocal %73 {approx = true} : vector<2x8x1xf32> -> vector<2x8x1xf32>
    %75 = vector.broadcast %74 : vector<2x8x1xf32> to vector<2x8x8xf32>
    %76 = arith.mulf %71, %75 : vector<2x8x8xf32>
    %77 = arith.truncf %76 : vector<2x8x8xf32> to vector<2x8x8xbf16>
    "tpu.trace_start"() <{level = 10 : i32, message = "bqk,bkd->bqd"}> : () -> ()
    %cst_38 = arith.constant dense<0.000000e+00> : vector<2x8x8xf32>
    %78 = tpu.matmul %77, %61, %cst_38 {dimension_numbers = #tpu.dot_dimension_numbers<[2], [1], [1], [2], [0, 0, 0, 1, 1, 2], [0], [0]>} : vector<2x8x8xbf16>, vector<2x8x8xbf16>, vector<2x8x8xf32> -> vector<2x8x8xf32>
    "tpu.trace_stop"() : () -> ()
    %79 = vector.extract_strided_slice %54 {offsets = [0, 0, 8], sizes = [2, 8, 8], strides = [1, 1, 1]} : vector<2x8x32xbf16> to vector<2x8x8xbf16>
    %80 = vector.extract_strided_slice %56 {offsets = [0, 0, 8], sizes = [2, 8, 8], strides = [1, 1, 1]} : vector<2x8x32xbf16> to vector<2x8x8xbf16>
    %81 = vector.extract_strided_slice %58 {offsets = [0, 0, 8], sizes = [2, 8, 8], strides = [1, 1, 1]} : vector<2x8x32xbf16> to vector<2x8x8xbf16>
    "tpu.trace_start"() <{level = 10 : i32, message = "bqd,bkd->bqk"}> : () -> ()
    %cst_39 = arith.constant dense<0.000000e+00> : vector<2x8x8xf32>
    %82 = tpu.matmul %79, %80, %cst_39 {dimension_numbers = #tpu.dot_dimension_numbers<[2], [2], [1], [1], [0, 0, 0, 1, 1, 1], [0], [0]>} : vector<2x8x8xbf16>, vector<2x8x8xbf16>, vector<2x8x8xf32> -> vector<2x8x8xf32>
    "tpu.trace_stop"() : () -> ()
    %cst_40 = arith.constant 0.353553385 : f32
    %83 = vector.broadcast %cst_40 : f32 to vector<2x8x8xf32>
    %84 = arith.mulf %82, %83 : vector<2x8x8xf32>
    %85 = vector.broadcast %30 : vector<2x1x8xf32> to vector<2x8x8xf32>
    %86 = arith.addf %84, %85 : vector<2x8x8xf32>
    %cst_41 = arith.constant dense<0xFF800000> : vector<2x8xf32>
    %87 = vector.multi_reduction <maximumf>, %86, %cst_41 [2] : vector<2x8x8xf32> to vector<2x8xf32>
    %88 = vector.shape_cast %87 : vector<2x8xf32> to vector<2x8x1xf32>
    %89 = vector.broadcast %88 : vector<2x8x1xf32> to vector<2x8x8xf32>
    %90 = arith.subf %86, %89 : vector<2x8x8xf32>
    %91 = math.exp %90 : vector<2x8x8xf32>
    %cst_42 = arith.constant dense<0.000000e+00> : vector<2x8xf32>
    %92 = vector.multi_reduction <add>, %91, %cst_42 [2] : vector<2x8x8xf32> to vector<2x8xf32>
    %93 = vector.shape_cast %92 : vector<2x8xf32> to vector<2x8x1xf32>
    %94 = tpu.reciprocal %93 {approx = true} : vector<2x8x1xf32> -> vector<2x8x1xf32>
    %95 = vector.broadcast %94 : vector<2x8x1xf32> to vector<2x8x8xf32>
    %96 = arith.mulf %91, %95 : vector<2x8x8xf32>
    %97 = arith.truncf %96 : vector<2x8x8xf32> to vector<2x8x8xbf16>
    "tpu.trace_start"() <{level = 10 : i32, message = "bqk,bkd->bqd"}> : () -> ()
    %cst_43 = arith.constant dense<0.000000e+00> : vector<2x8x8xf32>
    %98 = tpu.matmul %97, %81, %cst_43 {dimension_numbers = #tpu.dot_dimension_numbers<[2], [1], [1], [2], [0, 0, 0, 1, 1, 2], [0], [0]>} : vector<2x8x8xbf16>, vector<2x8x8xbf16>, vector<2x8x8xf32> -> vector<2x8x8xf32>
    "tpu.trace_stop"() : () -> ()
    %99 = vector.extract_strided_slice %54 {offsets = [0, 0, 16], sizes = [2, 8, 8], strides = [1, 1, 1]} : vector<2x8x32xbf16> to vector<2x8x8xbf16>
    %100 = vector.extract_strided_slice %56 {offsets = [0, 0, 16], sizes = [2, 8, 8], strides = [1, 1, 1]} : vector<2x8x32xbf16> to vector<2x8x8xbf16>
    %101 = vector.extract_strided_slice %58 {offsets = [0, 0, 16], sizes = [2, 8, 8], strides = [1, 1, 1]} : vector<2x8x32xbf16> to vector<2x8x8xbf16>
    "tpu.trace_start"() <{level = 10 : i32, message = "bqd,bkd->bqk"}> : () -> ()
    %cst_44 = arith.constant dense<0.000000e+00> : vector<2x8x8xf32>
    %102 = tpu.matmul %99, %100, %cst_44 {dimension_numbers = #tpu.dot_dimension_numbers<[2], [2], [1], [1], [0, 0, 0, 1, 1, 1], [0], [0]>} : vector<2x8x8xbf16>, vector<2x8x8xbf16>, vector<2x8x8xf32> -> vector<2x8x8xf32>
    "tpu.trace_stop"() : () -> ()
    %cst_45 = arith.constant 0.353553385 : f32
    %103 = vector.broadcast %cst_45 : f32 to vector<2x8x8xf32>
    %104 = arith.mulf %102, %103 : vector<2x8x8xf32>
    %105 = vector.broadcast %30 : vector<2x1x8xf32> to vector<2x8x8xf32>
    %106 = arith.addf %104, %105 : vector<2x8x8xf32>
    %cst_46 = arith.constant dense<0xFF800000> : vector<2x8xf32>
    %107 = vector.multi_reduction <maximumf>, %106, %cst_46 [2] : vector<2x8x8xf32> to vector<2x8xf32>
    %108 = vector.shape_cast %107 : vector<2x8xf32> to vector<2x8x1xf32>
    %109 = vector.broadcast %108 : vector<2x8x1xf32> to vector<2x8x8xf32>
    %110 = arith.subf %106, %109 : vector<2x8x8xf32>
    %111 = math.exp %110 : vector<2x8x8xf32>
    %cst_47 = arith.constant dense<0.000000e+00> : vector<2x8xf32>
    %112 = vector.multi_reduction <add>, %111, %cst_47 [2] : vector<2x8x8xf32> to vector<2x8xf32>
    %113 = vector.shape_cast %112 : vector<2x8xf32> to vector<2x8x1xf32>
    %114 = tpu.reciprocal %113 {approx = true} : vector<2x8x1xf32> -> vector<2x8x1xf32>
    %115 = vector.broadcast %114 : vector<2x8x1xf32> to vector<2x8x8xf32>
    %116 = arith.mulf %111, %115 : vector<2x8x8xf32>
    %117 = arith.truncf %116 : vector<2x8x8xf32> to vector<2x8x8xbf16>
    "tpu.trace_start"() <{level = 10 : i32, message = "bqk,bkd->bqd"}> : () -> ()
    %cst_48 = arith.constant dense<0.000000e+00> : vector<2x8x8xf32>
    %118 = tpu.matmul %117, %101, %cst_48 {dimension_numbers = #tpu.dot_dimension_numbers<[2], [1], [1], [2], [0, 0, 0, 1, 1, 2], [0], [0]>} : vector<2x8x8xbf16>, vector<2x8x8xbf16>, vector<2x8x8xf32> -> vector<2x8x8xf32>
    "tpu.trace_stop"() : () -> ()
    %119 = vector.extract_strided_slice %54 {offsets = [0, 0, 24], sizes = [2, 8, 8], strides = [1, 1, 1]} : vector<2x8x32xbf16> to vector<2x8x8xbf16>
    %120 = vector.extract_strided_slice %56 {offsets = [0, 0, 24], sizes = [2, 8, 8], strides = [1, 1, 1]} : vector<2x8x32xbf16> to vector<2x8x8xbf16>
    %121 = vector.extract_strided_slice %58 {offsets = [0, 0, 24], sizes = [2, 8, 8], strides = [1, 1, 1]} : vector<2x8x32xbf16> to vector<2x8x8xbf16>
    "tpu.trace_start"() <{level = 10 : i32, message = "bqd,bkd->bqk"}> : () -> ()
    %cst_49 = arith.constant dense<0.000000e+00> : vector<2x8x8xf32>
    %122 = tpu.matmul %119, %120, %cst_49 {dimension_numbers = #tpu.dot_dimension_numbers<[2], [2], [1], [1], [0, 0, 0, 1, 1, 1], [0], [0]>} : vector<2x8x8xbf16>, vector<2x8x8xbf16>, vector<2x8x8xf32> -> vector<2x8x8xf32>
    "tpu.trace_stop"() : () -> ()
    %cst_50 = arith.constant 0.353553385 : f32
    %123 = vector.broadcast %cst_50 : f32 to vector<2x8x8xf32>
    %124 = arith.mulf %122, %123 : vector<2x8x8xf32>
    %125 = vector.broadcast %30 : vector<2x1x8xf32> to vector<2x8x8xf32>
    %126 = arith.addf %124, %125 : vector<2x8x8xf32>
    %cst_51 = arith.constant dense<0xFF800000> : vector<2x8xf32>
    %127 = vector.multi_reduction <maximumf>, %126, %cst_51 [2] : vector<2x8x8xf32> to vector<2x8xf32>
    %128 = vector.shape_cast %127 : vector<2x8xf32> to vector<2x8x1xf32>
    %129 = vector.broadcast %128 : vector<2x8x1xf32> to vector<2x8x8xf32>
    %130 = arith.subf %126, %129 : vector<2x8x8xf32>
    %131 = math.exp %130 : vector<2x8x8xf32>
    %cst_52 = arith.constant dense<0.000000e+00> : vector<2x8xf32>
    %132 = vector.multi_reduction <add>, %131, %cst_52 [2] : vector<2x8x8xf32> to vector<2x8xf32>
    %133 = vector.shape_cast %132 : vector<2x8xf32> to vector<2x8x1xf32>
    %134 = tpu.reciprocal %133 {approx = true} : vector<2x8x1xf32> -> vector<2x8x1xf32>
    %135 = vector.broadcast %134 : vector<2x8x1xf32> to vector<2x8x8xf32>
    %136 = arith.mulf %131, %135 : vector<2x8x8xf32>
    %137 = arith.truncf %136 : vector<2x8x8xf32> to vector<2x8x8xbf16>
    "tpu.trace_start"() <{level = 10 : i32, message = "bqk,bkd->bqd"}> : () -> ()
    %cst_53 = arith.constant dense<0.000000e+00> : vector<2x8x8xf32>
    %138 = tpu.matmul %137, %121, %cst_53 {dimension_numbers = #tpu.dot_dimension_numbers<[2], [1], [1], [2], [0, 0, 0, 1, 1, 2], [0], [0]>} : vector<2x8x8xbf16>, vector<2x8x8xbf16>, vector<2x8x8xf32> -> vector<2x8x8xf32>
    "tpu.trace_stop"() : () -> ()
    %139 = tpu.concatenate %78, %98, %118, %138 in 2 : vector<2x8x8xf32>, vector<2x8x8xf32>, vector<2x8x8xf32>, vector<2x8x8xf32> -> vector<2x8x32xf32>
    %140 = vector.shape_cast %139 : vector<2x8x32xf32> to vector<16x32xf32>
    %141 = arith.truncf %140 : vector<16x32xf32> to vector<16x32xbf16>
    %c0_54 = arith.constant 0 : index
    %c0_55 = arith.constant 0 : index
    %c0_56 = arith.constant 0 : index
    %142 = vector.load %arg12[%c0_54, %c0_55, %c0_56] : memref<2x32x32xbf16, #tpu.memory_space<vmem>>, vector<1x32x32xbf16>
    %143 = vector.shape_cast %142 : vector<1x32x32xbf16> to vector<32x32xbf16>
    %cst_57 = arith.constant dense<0.000000e+00> : vector<16x32xf32>
    %144 = tpu.matmul %141, %143, %cst_57 {dimension_numbers = #tpu.dot_dimension_numbers<[1], [0], [0], [1], [0, 0, 1, 1], [], []>} : vector<16x32xbf16>, vector<32x32xbf16>, vector<16x32xf32> -> vector<16x32xf32>
    %c0_58 = arith.constant 0 : index
    %c0_59 = arith.constant 0 : index
    %c0_60 = arith.constant 0 : index
    %145 = vector.load %arg13[%c0_58, %c0_59, %c0_60] : memref<2x1x32xf32, #tpu.memory_space<vmem>>, vector<1x1x32xf32>
    %146 = vector.shape_cast %145 : vector<1x1x32xf32> to vector<1x32xf32>
    %147 = vector.broadcast %146 : vector<1x32xf32> to vector<16x32xf32>
    %148 = arith.addf %144, %147 : vector<16x32xf32>
    %149 = arith.addf %24, %148 : vector<16x32xf32>
    %c0_61 = arith.constant 0 : index
    %c0_62 = arith.constant 0 : index
    %c0_63 = arith.constant 0 : index
    %150 = vector.load %arg14[%c0_61, %c0_62, %c0_63] : memref<2x1x32xf32, #tpu.memory_space<vmem>>, vector<1x1x32xf32>
    %151 = vector.shape_cast %150 : vector<1x1x32xf32> to vector<1x32xf32>
    %c0_64 = arith.constant 0 : index
    %c0_65 = arith.constant 0 : index
    %c0_66 = arith.constant 0 : index
    %152 = vector.load %arg15[%c0_64, %c0_65, %c0_66] : memref<2x1x32xf32, #tpu.memory_space<vmem>>, vector<1x1x32xf32>
    %153 = vector.shape_cast %152 : vector<1x1x32xf32> to vector<1x32xf32>
    %cst_67 = arith.constant dense<0.000000e+00> : vector<16xf32>
    %154 = vector.multi_reduction <add>, %149, %cst_67 [1] : vector<16x32xf32> to vector<16xf32>
    %155 = vector.shape_cast %154 : vector<16xf32> to vector<16x1xf32>
    %cst_68 = arith.constant 3.200000e+01 : f32
    %156 = vector.broadcast %cst_68 : f32 to vector<16x1xf32>
    %157 = arith.divf %155, %156 : vector<16x1xf32>
    %158 = vector.broadcast %157 : vector<16x1xf32> to vector<16x32xf32>
    %159 = arith.subf %149, %158 : vector<16x32xf32>
    %160 = arith.mulf %159, %159 : vector<16x32xf32>
    %cst_69 = arith.constant dense<0.000000e+00> : vector<16xf32>
    %161 = vector.multi_reduction <add>, %160, %cst_69 [1] : vector<16x32xf32> to vector<16xf32>
    %162 = vector.shape_cast %161 : vector<16xf32> to vector<16x1xf32>
    %cst_70 = arith.constant 3.200000e+01 : f32
    %163 = vector.broadcast %cst_70 : f32 to vector<16x1xf32>
    %164 = arith.divf %162, %163 : vector<16x1xf32>
    %165 = vector.broadcast %157 : vector<16x1xf32> to vector<16x32xf32>
    %166 = arith.subf %149, %165 : vector<16x32xf32>
    %cst_71 = arith.constant 9.99999974E-6 : f32
    %167 = vector.broadcast %cst_71 : f32 to vector<16x1xf32>
    %168 = arith.addf %164, %167 : vector<16x1xf32>
    %169 = math.rsqrt %168 : vector<16x1xf32>
    %170 = vector.broadcast %169 : vector<16x1xf32> to vector<16x32xf32>
    %171 = arith.mulf %166, %170 : vector<16x32xf32>
    %172 = vector.broadcast %151 : vector<1x32xf32> to vector<16x32xf32>
    %173 = arith.mulf %171, %172 : vector<16x32xf32>
    %174 = vector.broadcast %153 : vector<1x32xf32> to vector<16x32xf32>
    %175 = arith.addf %173, %174 : vector<16x32xf32>
    %176 = arith.truncf %175 : vector<16x32xf32> to vector<16x32xbf16>
    %c0_72 = arith.constant 0 : index
    %c0_73 = arith.constant 0 : index
    %c0_74 = arith.constant 0 : index
    %177 = vector.load %arg16[%c0_72, %c0_73, %c0_74] : memref<2x32x128xbf16, #tpu.memory_space<vmem>>, vector<1x32x128xbf16>
    %178 = vector.shape_cast %177 : vector<1x32x128xbf16> to vector<32x128xbf16>
    %cst_75 = arith.constant dense<0.000000e+00> : vector<16x128xf32>
    %179 = tpu.matmul %176, %178, %cst_75 {dimension_numbers = #tpu.dot_dimension_numbers<[1], [0], [0], [1], [0, 0, 1, 1], [], []>} : vector<16x32xbf16>, vector<32x128xbf16>, vector<16x128xf32> -> vector<16x128xf32>
    %c0_76 = arith.constant 0 : index
    %c0_77 = arith.constant 0 : index
    %c0_78 = arith.constant 0 : index
    %180 = vector.load %arg17[%c0_76, %c0_77, %c0_78] : memref<2x1x128xf32, #tpu.memory_space<vmem>>, vector<1x1x128xf32>
    %181 = vector.shape_cast %180 : vector<1x1x128xf32> to vector<1x128xf32>
    %182 = vector.broadcast %181 : vector<1x128xf32> to vector<16x128xf32>
    %183 = arith.addf %179, %182 : vector<16x128xf32>
    %184 = arith.mulf %183, %183 : vector<16x128xf32>
    %185 = arith.mulf %183, %184 : vector<16x128xf32>
    %cst_79 = arith.constant 4.471500e-02 : f32
    %186 = vector.broadcast %cst_79 : f32 to vector<16x128xf32>
    %187 = arith.mulf %186, %185 : vector<16x128xf32>
    %188 = arith.addf %183, %187 : vector<16x128xf32>
    %cst_80 = arith.constant 0.797884583 : f32
    %189 = vector.broadcast %cst_80 : f32 to vector<16x128xf32>
    %190 = arith.mulf %189, %188 : vector<16x128xf32>
    %191 = math.tanh %190 : vector<16x128xf32>
    %cst_81 = arith.constant 1.000000e+00 : f32
    %192 = vector.broadcast %cst_81 : f32 to vector<16x128xf32>
    %193 = arith.addf %192, %191 : vector<16x128xf32>
    %cst_82 = arith.constant 5.000000e-01 : f32
    %194 = vector.broadcast %cst_82 : f32 to vector<16x128xf32>
    %195 = arith.mulf %194, %193 : vector<16x128xf32>
    %196 = arith.mulf %183, %195 : vector<16x128xf32>
    %197 = arith.truncf %196 : vector<16x128xf32> to vector<16x128xbf16>
    %c0_83 = arith.constant 0 : index
    %c0_84 = arith.constant 0 : index
    %c0_85 = arith.constant 0 : index
    %198 = vector.load %arg18[%c0_83, %c0_84, %c0_85] : memref<2x128x32xbf16, #tpu.memory_space<vmem>>, vector<1x128x32xbf16>
    %199 = vector.shape_cast %198 : vector<1x128x32xbf16> to vector<128x32xbf16>
    %cst_86 = arith.constant dense<0.000000e+00> : vector<16x32xf32>
    %200 = tpu.matmul %197, %199, %cst_86 {dimension_numbers = #tpu.dot_dimension_numbers<[1], [0], [0], [1], [0, 0, 1, 1], [], []>} : vector<16x128xbf16>, vector<128x32xbf16>, vector<16x32xf32> -> vector<16x32xf32>
    %c0_87 = arith.constant 0 : index
    %c0_88 = arith.constant 0 : index
    %c0_89 = arith.constant 0 : index
    %201 = vector.load %arg19[%c0_87, %c0_88, %c0_89] : memref<2x1x32xf32, #tpu.memory_space<vmem>>, vector<1x1x32xf32>
    %202 = vector.shape_cast %201 : vector<1x1x32xf32> to vector<1x32xf32>
    %203 = vector.broadcast %202 : vector<1x32xf32> to vector<16x32xf32>
    %204 = arith.addf %200, %203 : vector<16x32xf32>
    %205 = arith.addf %175, %204 : vector<16x32xf32>
    %c0_90 = arith.constant 0 : index
    %c0_91 = arith.constant 0 : index
    %c0_92 = arith.constant 0 : index
    %206 = vector.load %arg20[%c0_90, %c0_91, %c0_92] : memref<2x1x32xf32, #tpu.memory_space<vmem>>, vector<1x1x32xf32>
    %207 = vector.shape_cast %206 : vector<1x1x32xf32> to vector<1x32xf32>
    %c0_93 = arith.constant 0 : index
    %c0_94 = arith.constant 0 : index
    %c0_95 = arith.constant 0 : index
    %208 = vector.load %arg21[%c0_93, %c0_94, %c0_95] : memref<2x1x32xf32, #tpu.memory_space<vmem>>, vector<1x1x32xf32>
    %209 = vector.shape_cast %208 : vector<1x1x32xf32> to vector<1x32xf32>
    %cst_96 = arith.constant dense<0.000000e+00> : vector<16xf32>
    %210 = vector.multi_reduction <add>, %205, %cst_96 [1] : vector<16x32xf32> to vector<16xf32>
    %211 = vector.shape_cast %210 : vector<16xf32> to vector<16x1xf32>
    %cst_97 = arith.constant 3.200000e+01 : f32
    %212 = vector.broadcast %cst_97 : f32 to vector<16x1xf32>
    %213 = arith.divf %211, %212 : vector<16x1xf32>
    %214 = vector.broadcast %213 : vector<16x1xf32> to vector<16x32xf32>
    %215 = arith.subf %205, %214 : vector<16x32xf32>
    %216 = arith.mulf %215, %215 : vector<16x32xf32>
    %cst_98 = arith.constant dense<0.000000e+00> : vector<16xf32>
    %217 = vector.multi_reduction <add>, %216, %cst_98 [1] : vector<16x32xf32> to vector<16xf32>
    %218 = vector.shape_cast %217 : vector<16xf32> to vector<16x1xf32>
    %cst_99 = arith.constant 3.200000e+01 : f32
    %219 = vector.broadcast %cst_99 : f32 to vector<16x1xf32>
    %220 = arith.divf %218, %219 : vector<16x1xf32>
    %221 = vector.broadcast %213 : vector<16x1xf32> to vector<16x32xf32>
    %222 = arith.subf %205, %221 : vector<16x32xf32>
    %cst_100 = arith.constant 9.99999974E-6 : f32
    %223 = vector.broadcast %cst_100 : f32 to vector<16x1xf32>
    %224 = arith.addf %220, %223 : vector<16x1xf32>
    %225 = math.rsqrt %224 : vector<16x1xf32>
    %226 = vector.broadcast %225 : vector<16x1xf32> to vector<16x32xf32>
    %227 = arith.mulf %222, %226 : vector<16x32xf32>
    %228 = vector.broadcast %207 : vector<1x32xf32> to vector<16x32xf32>
    %229 = arith.mulf %227, %228 : vector<16x32xf32>
    %230 = vector.broadcast %209 : vector<1x32xf32> to vector<16x32xf32>
    %231 = arith.addf %229, %230 : vector<16x32xf32>
    %232 = arith.truncf %231 : vector<16x32xf32> to vector<16x32xbf16>
    %c1 = arith.constant 1 : index
    %c0_101 = arith.constant 0 : index
    %c0_102 = arith.constant 0 : index
    %233 = vector.load %arg6[%c1, %c0_101, %c0_102] : memref<2x32x32xbf16, #tpu.memory_space<vmem>>, vector<1x32x32xbf16>
    %234 = vector.shape_cast %233 : vector<1x32x32xbf16> to vector<32x32xbf16>
    %cst_103 = arith.constant dense<0.000000e+00> : vector<16x32xf32>
    %235 = tpu.matmul %232, %234, %cst_103 {dimension_numbers = #tpu.dot_dimension_numbers<[1], [0], [0], [1], [0, 0, 1, 1], [], []>} : vector<16x32xbf16>, vector<32x32xbf16>, vector<16x32xf32> -> vector<16x32xf32>
    %c1_104 = arith.constant 1 : index
    %c0_105 = arith.constant 0 : index
    %c0_106 = arith.constant 0 : index
    %236 = vector.load %arg7[%c1_104, %c0_105, %c0_106] : memref<2x1x32xf32, #tpu.memory_space<vmem>>, vector<1x1x32xf32>
    %237 = vector.shape_cast %236 : vector<1x1x32xf32> to vector<1x32xf32>
    %238 = vector.broadcast %237 : vector<1x32xf32> to vector<16x32xf32>
    %239 = arith.addf %235, %238 : vector<16x32xf32>
    %c1_107 = arith.constant 1 : index
    %c0_108 = arith.constant 0 : index
    %c0_109 = arith.constant 0 : index
    %240 = vector.load %arg8[%c1_107, %c0_108, %c0_109] : memref<2x32x32xbf16, #tpu.memory_space<vmem>>, vector<1x32x32xbf16>
    %241 = vector.shape_cast %240 : vector<1x32x32xbf16> to vector<32x32xbf16>
    %cst_110 = arith.constant dense<0.000000e+00> : vector<16x32xf32>
    %242 = tpu.matmul %232, %241, %cst_110 {dimension_numbers = #tpu.dot_dimension_numbers<[1], [0], [0], [1], [0, 0, 1, 1], [], []>} : vector<16x32xbf16>, vector<32x32xbf16>, vector<16x32xf32> -> vector<16x32xf32>
    %c1_111 = arith.constant 1 : index
    %c0_112 = arith.constant 0 : index
    %c0_113 = arith.constant 0 : index
    %243 = vector.load %arg9[%c1_111, %c0_112, %c0_113] : memref<2x1x32xf32, #tpu.memory_space<vmem>>, vector<1x1x32xf32>
    %244 = vector.shape_cast %243 : vector<1x1x32xf32> to vector<1x32xf32>
    %245 = vector.broadcast %244 : vector<1x32xf32> to vector<16x32xf32>
    %246 = arith.addf %242, %245 : vector<16x32xf32>
    %c1_114 = arith.constant 1 : index
    %c0_115 = arith.constant 0 : index
    %c0_116 = arith.constant 0 : index
    %247 = vector.load %arg10[%c1_114, %c0_115, %c0_116] : memref<2x32x32xbf16, #tpu.memory_space<vmem>>, vector<1x32x32xbf16>
    %248 = vector.shape_cast %247 : vector<1x32x32xbf16> to vector<32x32xbf16>
    %cst_117 = arith.constant dense<0.000000e+00> : vector<16x32xf32>
    %249 = tpu.matmul %232, %248, %cst_117 {dimension_numbers = #tpu.dot_dimension_numbers<[1], [0], [0], [1], [0, 0, 1, 1], [], []>} : vector<16x32xbf16>, vector<32x32xbf16>, vector<16x32xf32> -> vector<16x32xf32>
    %c1_118 = arith.constant 1 : index
    %c0_119 = arith.constant 0 : index
    %c0_120 = arith.constant 0 : index
    %250 = vector.load %arg11[%c1_118, %c0_119, %c0_120] : memref<2x1x32xf32, #tpu.memory_space<vmem>>, vector<1x1x32xf32>
    %251 = vector.shape_cast %250 : vector<1x1x32xf32> to vector<1x32xf32>
    %252 = vector.broadcast %251 : vector<1x32xf32> to vector<16x32xf32>
    %253 = arith.addf %249, %252 : vector<16x32xf32>
    %254 = arith.truncf %239 : vector<16x32xf32> to vector<16x32xbf16>
    %255 = vector.shape_cast %254 : vector<16x32xbf16> to vector<2x8x32xbf16>
    %256 = arith.truncf %246 : vector<16x32xf32> to vector<16x32xbf16>
    %257 = vector.shape_cast %256 : vector<16x32xbf16> to vector<2x8x32xbf16>
    %258 = arith.truncf %253 : vector<16x32xf32> to vector<16x32xbf16>
    %259 = vector.shape_cast %258 : vector<16x32xbf16> to vector<2x8x32xbf16>
    %260 = vector.extract_strided_slice %255 {offsets = [0, 0, 0], sizes = [2, 8, 8], strides = [1, 1, 1]} : vector<2x8x32xbf16> to vector<2x8x8xbf16>
    %261 = vector.extract_strided_slice %257 {offsets = [0, 0, 0], sizes = [2, 8, 8], strides = [1, 1, 1]} : vector<2x8x32xbf16> to vector<2x8x8xbf16>
    %262 = vector.extract_strided_slice %259 {offsets = [0, 0, 0], sizes = [2, 8, 8], strides = [1, 1, 1]} : vector<2x8x32xbf16> to vector<2x8x8xbf16>
    "tpu.trace_start"() <{level = 10 : i32, message = "bqd,bkd->bqk"}> : () -> ()
    %cst_121 = arith.constant dense<0.000000e+00> : vector<2x8x8xf32>
    %263 = tpu.matmul %260, %261, %cst_121 {dimension_numbers = #tpu.dot_dimension_numbers<[2], [2], [1], [1], [0, 0, 0, 1, 1, 1], [0], [0]>} : vector<2x8x8xbf16>, vector<2x8x8xbf16>, vector<2x8x8xf32> -> vector<2x8x8xf32>
    "tpu.trace_stop"() : () -> ()
    %cst_122 = arith.constant 0.353553385 : f32
    %264 = vector.broadcast %cst_122 : f32 to vector<2x8x8xf32>
    %265 = arith.mulf %263, %264 : vector<2x8x8xf32>
    %266 = vector.broadcast %30 : vector<2x1x8xf32> to vector<2x8x8xf32>
    %267 = arith.addf %265, %266 : vector<2x8x8xf32>
    %cst_123 = arith.constant dense<0xFF800000> : vector<2x8xf32>
    %268 = vector.multi_reduction <maximumf>, %267, %cst_123 [2] : vector<2x8x8xf32> to vector<2x8xf32>
    %269 = vector.shape_cast %268 : vector<2x8xf32> to vector<2x8x1xf32>
    %270 = vector.broadcast %269 : vector<2x8x1xf32> to vector<2x8x8xf32>
    %271 = arith.subf %267, %270 : vector<2x8x8xf32>
    %272 = math.exp %271 : vector<2x8x8xf32>
    %cst_124 = arith.constant dense<0.000000e+00> : vector<2x8xf32>
    %273 = vector.multi_reduction <add>, %272, %cst_124 [2] : vector<2x8x8xf32> to vector<2x8xf32>
    %274 = vector.shape_cast %273 : vector<2x8xf32> to vector<2x8x1xf32>
    %275 = tpu.reciprocal %274 {approx = true} : vector<2x8x1xf32> -> vector<2x8x1xf32>
    %276 = vector.broadcast %275 : vector<2x8x1xf32> to vector<2x8x8xf32>
    %277 = arith.mulf %272, %276 : vector<2x8x8xf32>
    %278 = arith.truncf %277 : vector<2x8x8xf32> to vector<2x8x8xbf16>
    "tpu.trace_start"() <{level = 10 : i32, message = "bqk,bkd->bqd"}> : () -> ()
    %cst_125 = arith.constant dense<0.000000e+00> : vector<2x8x8xf32>
    %279 = tpu.matmul %278, %262, %cst_125 {dimension_numbers = #tpu.dot_dimension_numbers<[2], [1], [1], [2], [0, 0, 0, 1, 1, 2], [0], [0]>} : vector<2x8x8xbf16>, vector<2x8x8xbf16>, vector<2x8x8xf32> -> vector<2x8x8xf32>
    "tpu.trace_stop"() : () -> ()
    %280 = vector.extract_strided_slice %255 {offsets = [0, 0, 8], sizes = [2, 8, 8], strides = [1, 1, 1]} : vector<2x8x32xbf16> to vector<2x8x8xbf16>
    %281 = vector.extract_strided_slice %257 {offsets = [0, 0, 8], sizes = [2, 8, 8], strides = [1, 1, 1]} : vector<2x8x32xbf16> to vector<2x8x8xbf16>
    %282 = vector.extract_strided_slice %259 {offsets = [0, 0, 8], sizes = [2, 8, 8], strides = [1, 1, 1]} : vector<2x8x32xbf16> to vector<2x8x8xbf16>
    "tpu.trace_start"() <{level = 10 : i32, message = "bqd,bkd->bqk"}> : () -> ()
    %cst_126 = arith.constant dense<0.000000e+00> : vector<2x8x8xf32>
    %283 = tpu.matmul %280, %281, %cst_126 {dimension_numbers = #tpu.dot_dimension_numbers<[2], [2], [1], [1], [0, 0, 0, 1, 1, 1], [0], [0]>} : vector<2x8x8xbf16>, vector<2x8x8xbf16>, vector<2x8x8xf32> -> vector<2x8x8xf32>
    "tpu.trace_stop"() : () -> ()
    %cst_127 = arith.constant 0.353553385 : f32
    %284 = vector.broadcast %cst_127 : f32 to vector<2x8x8xf32>
    %285 = arith.mulf %283, %284 : vector<2x8x8xf32>
    %286 = vector.broadcast %30 : vector<2x1x8xf32> to vector<2x8x8xf32>
    %287 = arith.addf %285, %286 : vector<2x8x8xf32>
    %cst_128 = arith.constant dense<0xFF800000> : vector<2x8xf32>
    %288 = vector.multi_reduction <maximumf>, %287, %cst_128 [2] : vector<2x8x8xf32> to vector<2x8xf32>
    %289 = vector.shape_cast %288 : vector<2x8xf32> to vector<2x8x1xf32>
    %290 = vector.broadcast %289 : vector<2x8x1xf32> to vector<2x8x8xf32>
    %291 = arith.subf %287, %290 : vector<2x8x8xf32>
    %292 = math.exp %291 : vector<2x8x8xf32>
    %cst_129 = arith.constant dense<0.000000e+00> : vector<2x8xf32>
    %293 = vector.multi_reduction <add>, %292, %cst_129 [2] : vector<2x8x8xf32> to vector<2x8xf32>
    %294 = vector.shape_cast %293 : vector<2x8xf32> to vector<2x8x1xf32>
    %295 = tpu.reciprocal %294 {approx = true} : vector<2x8x1xf32> -> vector<2x8x1xf32>
    %296 = vector.broadcast %295 : vector<2x8x1xf32> to vector<2x8x8xf32>
    %297 = arith.mulf %292, %296 : vector<2x8x8xf32>
    %298 = arith.truncf %297 : vector<2x8x8xf32> to vector<2x8x8xbf16>
    "tpu.trace_start"() <{level = 10 : i32, message = "bqk,bkd->bqd"}> : () -> ()
    %cst_130 = arith.constant dense<0.000000e+00> : vector<2x8x8xf32>
    %299 = tpu.matmul %298, %282, %cst_130 {dimension_numbers = #tpu.dot_dimension_numbers<[2], [1], [1], [2], [0, 0, 0, 1, 1, 2], [0], [0]>} : vector<2x8x8xbf16>, vector<2x8x8xbf16>, vector<2x8x8xf32> -> vector<2x8x8xf32>
    "tpu.trace_stop"() : () -> ()
    %300 = vector.extract_strided_slice %255 {offsets = [0, 0, 16], sizes = [2, 8, 8], strides = [1, 1, 1]} : vector<2x8x32xbf16> to vector<2x8x8xbf16>
    %301 = vector.extract_strided_slice %257 {offsets = [0, 0, 16], sizes = [2, 8, 8], strides = [1, 1, 1]} : vector<2x8x32xbf16> to vector<2x8x8xbf16>
    %302 = vector.extract_strided_slice %259 {offsets = [0, 0, 16], sizes = [2, 8, 8], strides = [1, 1, 1]} : vector<2x8x32xbf16> to vector<2x8x8xbf16>
    "tpu.trace_start"() <{level = 10 : i32, message = "bqd,bkd->bqk"}> : () -> ()
    %cst_131 = arith.constant dense<0.000000e+00> : vector<2x8x8xf32>
    %303 = tpu.matmul %300, %301, %cst_131 {dimension_numbers = #tpu.dot_dimension_numbers<[2], [2], [1], [1], [0, 0, 0, 1, 1, 1], [0], [0]>} : vector<2x8x8xbf16>, vector<2x8x8xbf16>, vector<2x8x8xf32> -> vector<2x8x8xf32>
    "tpu.trace_stop"() : () -> ()
    %cst_132 = arith.constant 0.353553385 : f32
    %304 = vector.broadcast %cst_132 : f32 to vector<2x8x8xf32>
    %305 = arith.mulf %303, %304 : vector<2x8x8xf32>
    %306 = vector.broadcast %30 : vector<2x1x8xf32> to vector<2x8x8xf32>
    %307 = arith.addf %305, %306 : vector<2x8x8xf32>
    %cst_133 = arith.constant dense<0xFF800000> : vector<2x8xf32>
    %308 = vector.multi_reduction <maximumf>, %307, %cst_133 [2] : vector<2x8x8xf32> to vector<2x8xf32>
    %309 = vector.shape_cast %308 : vector<2x8xf32> to vector<2x8x1xf32>
    %310 = vector.broadcast %309 : vector<2x8x1xf32> to vector<2x8x8xf32>
    %311 = arith.subf %307, %310 : vector<2x8x8xf32>
    %312 = math.exp %311 : vector<2x8x8xf32>
    %cst_134 = arith.constant dense<0.000000e+00> : vector<2x8xf32>
    %313 = vector.multi_reduction <add>, %312, %cst_134 [2] : vector<2x8x8xf32> to vector<2x8xf32>
    %314 = vector.shape_cast %313 : vector<2x8xf32> to vector<2x8x1xf32>
    %315 = tpu.reciprocal %314 {approx = true} : vector<2x8x1xf32> -> vector<2x8x1xf32>
    %316 = vector.broadcast %315 : vector<2x8x1xf32> to vector<2x8x8xf32>
    %317 = arith.mulf %312, %316 : vector<2x8x8xf32>
    %318 = arith.truncf %317 : vector<2x8x8xf32> to vector<2x8x8xbf16>
    "tpu.trace_start"() <{level = 10 : i32, message = "bqk,bkd->bqd"}> : () -> ()
    %cst_135 = arith.constant dense<0.000000e+00> : vector<2x8x8xf32>
    %319 = tpu.matmul %318, %302, %cst_135 {dimension_numbers = #tpu.dot_dimension_numbers<[2], [1], [1], [2], [0, 0, 0, 1, 1, 2], [0], [0]>} : vector<2x8x8xbf16>, vector<2x8x8xbf16>, vector<2x8x8xf32> -> vector<2x8x8xf32>
    "tpu.trace_stop"() : () -> ()
    %320 = vector.extract_strided_slice %255 {offsets = [0, 0, 24], sizes = [2, 8, 8], strides = [1, 1, 1]} : vector<2x8x32xbf16> to vector<2x8x8xbf16>
    %321 = vector.extract_strided_slice %257 {offsets = [0, 0, 24], sizes = [2, 8, 8], strides = [1, 1, 1]} : vector<2x8x32xbf16> to vector<2x8x8xbf16>
    %322 = vector.extract_strided_slice %259 {offsets = [0, 0, 24], sizes = [2, 8, 8], strides = [1, 1, 1]} : vector<2x8x32xbf16> to vector<2x8x8xbf16>
    "tpu.trace_start"() <{level = 10 : i32, message = "bqd,bkd->bqk"}> : () -> ()
    %cst_136 = arith.constant dense<0.000000e+00> : vector<2x8x8xf32>
    %323 = tpu.matmul %320, %321, %cst_136 {dimension_numbers = #tpu.dot_dimension_numbers<[2], [2], [1], [1], [0, 0, 0, 1, 1, 1], [0], [0]>} : vector<2x8x8xbf16>, vector<2x8x8xbf16>, vector<2x8x8xf32> -> vector<2x8x8xf32>
    "tpu.trace_stop"() : () -> ()
    %cst_137 = arith.constant 0.353553385 : f32
    %324 = vector.broadcast %cst_137 : f32 to vector<2x8x8xf32>
    %325 = arith.mulf %323, %324 : vector<2x8x8xf32>
    %326 = vector.broadcast %30 : vector<2x1x8xf32> to vector<2x8x8xf32>
    %327 = arith.addf %325, %326 : vector<2x8x8xf32>
    %cst_138 = arith.constant dense<0xFF800000> : vector<2x8xf32>
    %328 = vector.multi_reduction <maximumf>, %327, %cst_138 [2] : vector<2x8x8xf32> to vector<2x8xf32>
    %329 = vector.shape_cast %328 : vector<2x8xf32> to vector<2x8x1xf32>
    %330 = vector.broadcast %329 : vector<2x8x1xf32> to vector<2x8x8xf32>
    %331 = arith.subf %327, %330 : vector<2x8x8xf32>
    %332 = math.exp %331 : vector<2x8x8xf32>
    %cst_139 = arith.constant dense<0.000000e+00> : vector<2x8xf32>
    %333 = vector.multi_reduction <add>, %332, %cst_139 [2] : vector<2x8x8xf32> to vector<2x8xf32>
    %334 = vector.shape_cast %333 : vector<2x8xf32> to vector<2x8x1xf32>
    %335 = tpu.reciprocal %334 {approx = true} : vector<2x8x1xf32> -> vector<2x8x1xf32>
    %336 = vector.broadcast %335 : vector<2x8x1xf32> to vector<2x8x8xf32>
    %337 = arith.mulf %332, %336 : vector<2x8x8xf32>
    %338 = arith.truncf %337 : vector<2x8x8xf32> to vector<2x8x8xbf16>
    "tpu.trace_start"() <{level = 10 : i32, message = "bqk,bkd->bqd"}> : () -> ()
    %cst_140 = arith.constant dense<0.000000e+00> : vector<2x8x8xf32>
    %339 = tpu.matmul %338, %322, %cst_140 {dimension_numbers = #tpu.dot_dimension_numbers<[2], [1], [1], [2], [0, 0, 0, 1, 1, 2], [0], [0]>} : vector<2x8x8xbf16>, vector<2x8x8xbf16>, vector<2x8x8xf32> -> vector<2x8x8xf32>
    "tpu.trace_stop"() : () -> ()
    %340 = tpu.concatenate %279, %299, %319, %339 in 2 : vector<2x8x8xf32>, vector<2x8x8xf32>, vector<2x8x8xf32>, vector<2x8x8xf32> -> vector<2x8x32xf32>
    %341 = vector.shape_cast %340 : vector<2x8x32xf32> to vector<16x32xf32>
    %342 = arith.truncf %341 : vector<16x32xf32> to vector<16x32xbf16>
    %c1_141 = arith.constant 1 : index
    %c0_142 = arith.constant 0 : index
    %c0_143 = arith.constant 0 : index
    %343 = vector.load %arg12[%c1_141, %c0_142, %c0_143] : memref<2x32x32xbf16, #tpu.memory_space<vmem>>, vector<1x32x32xbf16>
    %344 = vector.shape_cast %343 : vector<1x32x32xbf16> to vector<32x32xbf16>
    %cst_144 = arith.constant dense<0.000000e+00> : vector<16x32xf32>
    %345 = tpu.matmul %342, %344, %cst_144 {dimension_numbers = #tpu.dot_dimension_numbers<[1], [0], [0], [1], [0, 0, 1, 1], [], []>} : vector<16x32xbf16>, vector<32x32xbf16>, vector<16x32xf32> -> vector<16x32xf32>
    %c1_145 = arith.constant 1 : index
    %c0_146 = arith.constant 0 : index
    %c0_147 = arith.constant 0 : index
    %346 = vector.load %arg13[%c1_145, %c0_146, %c0_147] : memref<2x1x32xf32, #tpu.memory_space<vmem>>, vector<1x1x32xf32>
    %347 = vector.shape_cast %346 : vector<1x1x32xf32> to vector<1x32xf32>
    %348 = vector.broadcast %347 : vector<1x32xf32> to vector<16x32xf32>
    %349 = arith.addf %345, %348 : vector<16x32xf32>
    %350 = arith.addf %231, %349 : vector<16x32xf32>
    %c1_148 = arith.constant 1 : index
    %c0_149 = arith.constant 0 : index
    %c0_150 = arith.constant 0 : index
    %351 = vector.load %arg14[%c1_148, %c0_149, %c0_150] : memref<2x1x32xf32, #tpu.memory_space<vmem>>, vector<1x1x32xf32>
    %352 = vector.shape_cast %351 : vector<1x1x32xf32> to vector<1x32xf32>
    %c1_151 = arith.constant 1 : index
    %c0_152 = arith.constant 0 : index
    %c0_153 = arith.constant 0 : index
    %353 = vector.load %arg15[%c1_151, %c0_152, %c0_153] : memref<2x1x32xf32, #tpu.memory_space<vmem>>, vector<1x1x32xf32>
    %354 = vector.shape_cast %353 : vector<1x1x32xf32> to vector<1x32xf32>
    %cst_154 = arith.constant dense<0.000000e+00> : vector<16xf32>
    %355 = vector.multi_reduction <add>, %350, %cst_154 [1] : vector<16x32xf32> to vector<16xf32>
    %356 = vector.shape_cast %355 : vector<16xf32> to vector<16x1xf32>
    %cst_155 = arith.constant 3.200000e+01 : f32
    %357 = vector.broadcast %cst_155 : f32 to vector<16x1xf32>
    %358 = arith.divf %356, %357 : vector<16x1xf32>
    %359 = vector.broadcast %358 : vector<16x1xf32> to vector<16x32xf32>
    %360 = arith.subf %350, %359 : vector<16x32xf32>
    %361 = arith.mulf %360, %360 : vector<16x32xf32>
    %cst_156 = arith.constant dense<0.000000e+00> : vector<16xf32>
    %362 = vector.multi_reduction <add>, %361, %cst_156 [1] : vector<16x32xf32> to vector<16xf32>
    %363 = vector.shape_cast %362 : vector<16xf32> to vector<16x1xf32>
    %cst_157 = arith.constant 3.200000e+01 : f32
    %364 = vector.broadcast %cst_157 : f32 to vector<16x1xf32>
    %365 = arith.divf %363, %364 : vector<16x1xf32>
    %366 = vector.broadcast %358 : vector<16x1xf32> to vector<16x32xf32>
    %367 = arith.subf %350, %366 : vector<16x32xf32>
    %cst_158 = arith.constant 9.99999974E-6 : f32
    %368 = vector.broadcast %cst_158 : f32 to vector<16x1xf32>
    %369 = arith.addf %365, %368 : vector<16x1xf32>
    %370 = math.rsqrt %369 : vector<16x1xf32>
    %371 = vector.broadcast %370 : vector<16x1xf32> to vector<16x32xf32>
    %372 = arith.mulf %367, %371 : vector<16x32xf32>
    %373 = vector.broadcast %352 : vector<1x32xf32> to vector<16x32xf32>
    %374 = arith.mulf %372, %373 : vector<16x32xf32>
    %375 = vector.broadcast %354 : vector<1x32xf32> to vector<16x32xf32>
    %376 = arith.addf %374, %375 : vector<16x32xf32>
    %377 = arith.truncf %376 : vector<16x32xf32> to vector<16x32xbf16>
    %c1_159 = arith.constant 1 : index
    %c0_160 = arith.constant 0 : index
    %c0_161 = arith.constant 0 : index
    %378 = vector.load %arg16[%c1_159, %c0_160, %c0_161] : memref<2x32x128xbf16, #tpu.memory_space<vmem>>, vector<1x32x128xbf16>
    %379 = vector.shape_cast %378 : vector<1x32x128xbf16> to vector<32x128xbf16>
    %cst_162 = arith.constant dense<0.000000e+00> : vector<16x128xf32>
    %380 = tpu.matmul %377, %379, %cst_162 {dimension_numbers = #tpu.dot_dimension_numbers<[1], [0], [0], [1], [0, 0, 1, 1], [], []>} : vector<16x32xbf16>, vector<32x128xbf16>, vector<16x128xf32> -> vector<16x128xf32>
    %c1_163 = arith.constant 1 : index
    %c0_164 = arith.constant 0 : index
    %c0_165 = arith.constant 0 : index
    %381 = vector.load %arg17[%c1_163, %c0_164, %c0_165] : memref<2x1x128xf32, #tpu.memory_space<vmem>>, vector<1x1x128xf32>
    %382 = vector.shape_cast %381 : vector<1x1x128xf32> to vector<1x128xf32>
    %383 = vector.broadcast %382 : vector<1x128xf32> to vector<16x128xf32>
    %384 = arith.addf %380, %383 : vector<16x128xf32>
    %385 = arith.mulf %384, %384 : vector<16x128xf32>
    %386 = arith.mulf %384, %385 : vector<16x128xf32>
    %cst_166 = arith.constant 4.471500e-02 : f32
    %387 = vector.broadcast %cst_166 : f32 to vector<16x128xf32>
    %388 = arith.mulf %387, %386 : vector<16x128xf32>
    %389 = arith.addf %384, %388 : vector<16x128xf32>
    %cst_167 = arith.constant 0.797884583 : f32
    %390 = vector.broadcast %cst_167 : f32 to vector<16x128xf32>
    %391 = arith.mulf %390, %389 : vector<16x128xf32>
    %392 = math.tanh %391 : vector<16x128xf32>
    %cst_168 = arith.constant 1.000000e+00 : f32
    %393 = vector.broadcast %cst_168 : f32 to vector<16x128xf32>
    %394 = arith.addf %393, %392 : vector<16x128xf32>
    %cst_169 = arith.constant 5.000000e-01 : f32
    %395 = vector.broadcast %cst_169 : f32 to vector<16x128xf32>
    %396 = arith.mulf %395, %394 : vector<16x128xf32>
    %397 = arith.mulf %384, %396 : vector<16x128xf32>
    %398 = arith.truncf %397 : vector<16x128xf32> to vector<16x128xbf16>
    %c1_170 = arith.constant 1 : index
    %c0_171 = arith.constant 0 : index
    %c0_172 = arith.constant 0 : index
    %399 = vector.load %arg18[%c1_170, %c0_171, %c0_172] : memref<2x128x32xbf16, #tpu.memory_space<vmem>>, vector<1x128x32xbf16>
    %400 = vector.shape_cast %399 : vector<1x128x32xbf16> to vector<128x32xbf16>
    %cst_173 = arith.constant dense<0.000000e+00> : vector<16x32xf32>
    %401 = tpu.matmul %398, %400, %cst_173 {dimension_numbers = #tpu.dot_dimension_numbers<[1], [0], [0], [1], [0, 0, 1, 1], [], []>} : vector<16x128xbf16>, vector<128x32xbf16>, vector<16x32xf32> -> vector<16x32xf32>
    %c1_174 = arith.constant 1 : index
    %c0_175 = arith.constant 0 : index
    %c0_176 = arith.constant 0 : index
    %402 = vector.load %arg19[%c1_174, %c0_175, %c0_176] : memref<2x1x32xf32, #tpu.memory_space<vmem>>, vector<1x1x32xf32>
    %403 = vector.shape_cast %402 : vector<1x1x32xf32> to vector<1x32xf32>
    %404 = vector.broadcast %403 : vector<1x32xf32> to vector<16x32xf32>
    %405 = arith.addf %401, %404 : vector<16x32xf32>
    %406 = arith.addf %376, %405 : vector<16x32xf32>
    %c1_177 = arith.constant 1 : index
    %c0_178 = arith.constant 0 : index
    %c0_179 = arith.constant 0 : index
    %407 = vector.load %arg20[%c1_177, %c0_178, %c0_179] : memref<2x1x32xf32, #tpu.memory_space<vmem>>, vector<1x1x32xf32>
    %408 = vector.shape_cast %407 : vector<1x1x32xf32> to vector<1x32xf32>
    %c1_180 = arith.constant 1 : index
    %c0_181 = arith.constant 0 : index
    %c0_182 = arith.constant 0 : index
    %409 = vector.load %arg21[%c1_180, %c0_181, %c0_182] : memref<2x1x32xf32, #tpu.memory_space<vmem>>, vector<1x1x32xf32>
    %410 = vector.shape_cast %409 : vector<1x1x32xf32> to vector<1x32xf32>
    %cst_183 = arith.constant dense<0.000000e+00> : vector<16xf32>
    %411 = vector.multi_reduction <add>, %406, %cst_183 [1] : vector<16x32xf32> to vector<16xf32>
    %412 = vector.shape_cast %411 : vector<16xf32> to vector<16x1xf32>
    %cst_184 = arith.constant 3.200000e+01 : f32
    %413 = vector.broadcast %cst_184 : f32 to vector<16x1xf32>
    %414 = arith.divf %412, %413 : vector<16x1xf32>
    %415 = vector.broadcast %414 : vector<16x1xf32> to vector<16x32xf32>
    %416 = arith.subf %406, %415 : vector<16x32xf32>
    %417 = arith.mulf %416, %416 : vector<16x32xf32>
    %cst_185 = arith.constant dense<0.000000e+00> : vector<16xf32>
    %418 = vector.multi_reduction <add>, %417, %cst_185 [1] : vector<16x32xf32> to vector<16xf32>
    %419 = vector.shape_cast %418 : vector<16xf32> to vector<16x1xf32>
    %cst_186 = arith.constant 3.200000e+01 : f32
    %420 = vector.broadcast %cst_186 : f32 to vector<16x1xf32>
    %421 = arith.divf %419, %420 : vector<16x1xf32>
    %422 = vector.broadcast %414 : vector<16x1xf32> to vector<16x32xf32>
    %423 = arith.subf %406, %422 : vector<16x32xf32>
    %cst_187 = arith.constant 9.99999974E-6 : f32
    %424 = vector.broadcast %cst_187 : f32 to vector<16x1xf32>
    %425 = arith.addf %421, %424 : vector<16x1xf32>
    %426 = math.rsqrt %425 : vector<16x1xf32>
    %427 = vector.broadcast %426 : vector<16x1xf32> to vector<16x32xf32>
    %428 = arith.mulf %423, %427 : vector<16x32xf32>
    %429 = vector.broadcast %408 : vector<1x32xf32> to vector<16x32xf32>
    %430 = arith.mulf %428, %429 : vector<16x32xf32>
    %431 = vector.broadcast %410 : vector<1x32xf32> to vector<16x32xf32>
    %432 = arith.addf %430, %431 : vector<16x32xf32>
    %433 = vector.shape_cast %432 : vector<16x32xf32> to vector<2x8x32xf32>
    %434 = vector.extract_strided_slice %433 {offsets = [0, 0, 0], sizes = [2, 1, 32], strides = [1, 1, 1]} : vector<2x8x32xf32> to vector<2x1x32xf32>
    %435 = vector.shape_cast %434 : vector<2x1x32xf32> to vector<2x32xf32>
    %436 = arith.truncf %435 : vector<2x32xf32> to vector<2x32xbf16>
    %c0_188 = arith.constant 0 : index
    %c0_189 = arith.constant 0 : index
    %437 = vector.load %arg22[%c0_188, %c0_189] : memref<32x3xbf16, #tpu.memory_space<vmem>>, vector<32x3xbf16>
    %cst_190 = arith.constant dense<0.000000e+00> : vector<2x3xf32>
    %438 = tpu.matmul %436, %437, %cst_190 {dimension_numbers = #tpu.dot_dimension_numbers<[1], [0], [0], [1], [0, 0, 1, 1], [], []>} : vector<2x32xbf16>, vector<32x3xbf16>, vector<2x3xf32> -> vector<2x3xf32>
    %c0_191 = arith.constant 0 : index
    %c0_192 = arith.constant 0 : index
    %439 = vector.load %arg23[%c0_191, %c0_192] : memref<1x3xf32, #tpu.memory_space<vmem>>, vector<1x3xf32>
    %440 = vector.broadcast %439 : vector<1x3xf32> to vector<2x3xf32>
    %441 = arith.addf %438, %440 : vector<2x3xf32>
    %c0_193 = arith.constant 0 : index
    %c0_194 = arith.constant 0 : index
    %442 = vector.load %arg24[%c0_193, %c0_194] : memref<2x3xf32, #tpu.memory_space<vmem>>, vector<2x3xf32>
    tpu.vector_store %arg24[%c0_193, %c0_194], %441 {strides = array<i32>} : memref<2x3xf32, #tpu.memory_space<vmem>>, vector<2x3xf32>,
    %cst_195 = arith.constant dense<0xFF800000> : vector<2xf32>
    %443 = vector.multi_reduction <maximumf>, %441, %cst_195 [1] : vector<2x3xf32> to vector<2xf32>
    %444 = vector.shape_cast %443 : vector<2xf32> to vector<2x1xf32>
    %445 = vector.broadcast %444 : vector<2x1xf32> to vector<2x3xf32>
    %446 = arith.subf %441, %445 : vector<2x3xf32>
    %447 = math.exp %446 : vector<2x3xf32>
    %cst_196 = arith.constant dense<0.000000e+00> : vector<2xf32>
    %448 = vector.multi_reduction <add>, %447, %cst_196 [1] : vector<2x3xf32> to vector<2xf32>
    %449 = vector.shape_cast %448 : vector<2xf32> to vector<2x1xf32>
    %450 = math.log %449 : vector<2x1xf32>
    %451 = vector.broadcast %450 : vector<2x1xf32> to vector<2x3xf32>
    %452 = arith.subf %446, %451 : vector<2x3xf32>
    %c0_197 = arith.constant 0 : index
    %c0_198 = arith.constant 0 : index
    %453 = vector.load %arg3[%c0_197, %c0_198] : memref<2x3xf32, #tpu.memory_space<vmem>>, vector<2x3xf32>
    %454 = arith.mulf %453, %452 : vector<2x3xf32>
    %cst_199 = arith.constant dense<0.000000e+00> : vector<2xf32>
    %455 = vector.multi_reduction <add>, %454, %cst_199 [1] : vector<2x3xf32> to vector<2xf32>
    %456 = vector.shape_cast %455 : vector<2xf32> to vector<2x1xf32>
    %cst_200 = arith.constant 0.000000e+00 : f32
    %457 = vector.broadcast %cst_200 : f32 to vector<2x1xf32>
    %458 = arith.subf %457, %456 : vector<2x1xf32>
    %cst_201 = arith.constant dense<0.000000e+00> : vector<1xf32>
    %459 = vector.multi_reduction <add>, %458, %cst_201 [0] : vector<2x1xf32> to vector<1xf32>
    %460 = vector.shape_cast %459 : vector<1xf32> to vector<1x1xf32>
    %cst_202 = arith.constant 2.000000e+00 : f32
    %461 = vector.broadcast %cst_202 : f32 to vector<1x1xf32>
    %462 = arith.divf %460, %461 : vector<1x1xf32>
    %c0_203 = arith.constant 0 : index
    %c0_204 = arith.constant 0 : index
    %463 = vector.load %arg25[%c0_203, %c0_204] : memref<1x1xf32, #tpu.memory_space<vmem>>, vector<1x1xf32>
    tpu.vector_store %arg25[%c0_203, %c0_204], %462 {strides = array<i32>} : memref<1x1xf32, #tpu.memory_space<vmem>>, vector<1x1xf32>,
    return
  }
  func.func @transform_0(%arg0: i32) -> (i32, i32) {
    %c0_i32 = arith.constant 0 : i32
    %c0_i32_0 = arith.constant 0 : i32
    %c0_i32_1 = arith.constant 0 : i32
    return %c0_i32, %c0_i32_0 : i32, i32
  }
  func.func @transform_1(%arg0: i32) -> (i32, i32) {
    %c0_i32 = arith.constant 0 : i32
    %c0_i32_0 = arith.constant 0 : i32
    %c0_i32_1 = arith.constant 0 : i32
    return %c0_i32, %c0_i32_0 : i32, i32
  }
  func.func @transform_2(%arg0: i32) -> (i32, i32) {
    %c0_i32 = arith.constant 0 : i32
    %c0_i32_0 = arith.constant 0 : i32
    %c0_i32_1 = arith.constant 0 : i32
    return %c0_i32, %c0_i32_0 : i32, i32
  }
  func.func @transform_3(%arg0: i32) -> (i32, i32) {
    %c0_i32 = arith.constant 0 : i32
    %c0_i32_0 = arith.constant 0 : i32
    %c0_i32_1 = arith.constant 0 : i32
    return %c0_i32, %c0_i32_0 : i32, i32
  }
  func.func @transform_4(%arg0: i32) -> (i32, i32) {
    %c0_i32 = arith.constant 0 : i32
    %c0_i32_0 = arith.constant 0 : i32
    %c0_i32_1 = arith.constant 0 : i32
    return %c0_i32, %c0_i32_0 : i32, i32
  }
  func.func @transform_5(%arg0: i32) -> (i32, i32, i32) {
    %c0_i32 = arith.constant 0 : i32
    %c0_i32_0 = arith.constant 0 : i32
    %c0_i32_1 = arith.constant 0 : i32
    %c0_i32_2 = arith.constant 0 : i32
    return %c0_i32, %c0_i32_0, %c0_i32_1 : i32, i32, i32
  }
  func.func @transform_6(%arg0: i32) -> (i32, i32, i32) {
    %c0_i32 = arith.constant 0 : i32
    %c0_i32_0 = arith.constant 0 : i32
    %c0_i32_1 = arith.constant 0 : i32
    %c0_i32_2 = arith.constant 0 : i32
    return %c0_i32, %c0_i32_0, %c0_i32_1 : i32, i32, i32
  }
  func.func @transform_7(%arg0: i32) -> (i32, i32, i32) {
    %c0_i32 = arith.constant 0 : i32
    %c0_i32_0 = arith.constant 0 : i32
    %c0_i32_1 = arith.constant 0 : i32
    %c0_i32_2 = arith.constant 0 : i32
    return %c0_i32, %c0_i32_0, %c0_i32_1 : i32, i32, i32
  }
  func.func @transform_8(%arg0: i32) -> (i32, i32, i32) {
    %c0_i32 = arith.constant 0 : i32
    %c0_i32_0 = arith.constant 0 : i32
    %c0_i32_1 = arith.constant 0 : i32
    %c0_i32_2 = arith.constant 0 : i32
    return %c0_i32, %c0_i32_0, %c0_i32_1 : i32, i32, i32
  }
  func.func @transform_9(%arg0: i32) -> (i32, i32, i32) {
    %c0_i32 = arith.constant 0 : i32
    %c0_i32_0 = arith.constant 0 : i32
    %c0_i32_1 = arith.constant 0 : i32
    %c0_i32_2 = arith.constant 0 : i32
    return %c0_i32, %c0_i32_0, %c0_i32_1 : i32, i32, i32
  }
  func.func @transform_10(%arg0: i32) -> (i32, i32, i32) {
    %c0_i32 = arith.constant 0 : i32
    %c0_i32_0 = arith.constant 0 : i32
    %c0_i32_1 = arith.constant 0 : i32
    %c0_i32_2 = arith.constant 0 : i32
    return %c0_i32, %c0_i32_0, %c0_i32_1 : i32, i32, i32
  }
  func.func @transform_11(%arg0: i32) -> (i32, i32, i32) {
    %c0_i32 = arith.constant 0 : i32
    %c0_i32_0 = arith.constant 0 : i32
    %c0_i32_1 = arith.constant 0 : i32
    %c0_i32_2 = arith.constant 0 : i32
    return %c0_i32, %c0_i32_0, %c0_i32_1 : i32, i32, i32
  }
  func.func @transform_12(%arg0: i32) -> (i32, i32, i32) {
    %c0_i32 = arith.constant 0 : i32
    %c0_i32_0 = arith.constant 0 : i32
    %c0_i32_1 = arith.constant 0 : i32
    %c0_i32_2 = arith.constant 0 : i32
    return %c0_i32, %c0_i32_0, %c0_i32_1 : i32, i32, i32
  }
  func.func @transform_13(%arg0: i32) -> (i32, i32, i32) {
    %c0_i32 = arith.constant 0 : i32
    %c0_i32_0 = arith.constant 0 : i32
    %c0_i32_1 = arith.constant 0 : i32
    %c0_i32_2 = arith.constant 0 : i32
    return %c0_i32, %c0_i32_0, %c0_i32_1 : i32, i32, i32
  }
  func.func @transform_14(%arg0: i32) -> (i32, i32, i32) {
    %c0_i32 = arith.constant 0 : i32
    %c0_i32_0 = arith.constant 0 : i32
    %c0_i32_1 = arith.constant 0 : i32
    %c0_i32_2 = arith.constant 0 : i32
    return %c0_i32, %c0_i32_0, %c0_i32_1 : i32, i32, i32
  }
  func.func @transform_15(%arg0: i32) -> (i32, i32, i32) {
    %c0_i32 = arith.constant 0 : i32
    %c0_i32_0 = arith.constant 0 : i32
    %c0_i32_1 = arith.constant 0 : i32
    %c0_i32_2 = arith.constant 0 : i32
    return %c0_i32, %c0_i32_0, %c0_i32_1 : i32, i32, i32
  }
  func.func @transform_16(%arg0: i32) -> (i32, i32, i32) {
    %c0_i32 = arith.constant 0 : i32
    %c0_i32_0 = arith.constant 0 : i32
    %c0_i32_1 = arith.constant 0 : i32
    %c0_i32_2 = arith.constant 0 : i32
    return %c0_i32, %c0_i32_0, %c0_i32_1 : i32, i32, i32
  }
  func.func @transform_17(%arg0: i32) -> (i32, i32, i32) {
    %c0_i32 = arith.constant 0 : i32
    %c0_i32_0 = arith.constant 0 : i32
    %c0_i32_1 = arith.constant 0 : i32
    %c0_i32_2 = arith.constant 0 : i32
    return %c0_i32, %c0_i32_0, %c0_i32_1 : i32, i32, i32
  }
  func.func @transform_18(%arg0: i32) -> (i32, i32, i32) {
    %c0_i32 = arith.constant 0 : i32
    %c0_i32_0 = arith.constant 0 : i32
    %c0_i32_1 = arith.constant 0 : i32
    %c0_i32_2 = arith.constant 0 : i32
    return %c0_i32, %c0_i32_0, %c0_i32_1 : i32, i32, i32
  }
  func.func @transform_19(%arg0: i32) -> (i32, i32, i32) {
    %c0_i32 = arith.constant 0 : i32
    %c0_i32_0 = arith.constant 0 : i32
    %c0_i32_1 = arith.constant 0 : i32
    %c0_i32_2 = arith.constant 0 : i32
    return %c0_i32, %c0_i32_0, %c0_i32_1 : i32, i32, i32
  }
  func.func @transform_20(%arg0: i32) -> (i32, i32, i32) {
    %c0_i32 = arith.constant 0 : i32
    %c0_i32_0 = arith.constant 0 : i32
    %c0_i32_1 = arith.constant 0 : i32
    %c0_i32_2 = arith.constant 0 : i32
    return %c0_i32, %c0_i32_0, %c0_i32_1 : i32, i32, i32
  }
  func.func @transform_21(%arg0: i32) -> (i32, i32) {
    %c0_i32 = arith.constant 0 : i32
    %c0_i32_0 = arith.constant 0 : i32
    %c0_i32_1 = arith.constant 0 : i32
    return %c0_i32, %c0_i32_0 : i32, i32
  }
  func.func @transform_22(%arg0: i32) -> (i32, i32) {
    %c0_i32 = arith.constant 0 : i32
    %c0_i32_0 = arith.constant 0 : i32
    %c0_i32_1 = arith.constant 0 : i32
    return %c0_i32, %c0_i32_0 : i32, i32
  }
  func.func @transform_23(%arg0: i32) -> (i32, i32) {
    %c0_i32 = arith.constant 0 : i32
    %c0_i32_0 = arith.constant 0 : i32
    %c0_i32_1 = arith.constant 0 : i32
    return %c0_i32, %c0_i32_0 : i32, i32
  }
  func.func @transform_24(%arg0: i32) -> (i32, i32) {
    %c0_i32 = arith.constant 0 : i32
    %c0_i32_0 = arith.constant 0 : i32
    %c0_i32_1 = arith.constant 0 : i32
    return %c0_i32, %c0_i32_0 : i32, i32
  }
}

</mosaic_0001>

<bundles_post_ra>
// kernel: tpu_custom_call.1
= control target key start
LH: loop header
LB: loop body
LE: loop exit
PB: predicated region body
PF: predicated region fallthrough
CT: control target
= control target key end

     0   :  { %s3806_s0 = inlined_call_operand.hbm [shape: f32[16,32], index: 0, kind: input, shape index: {}]   ;;  %s3807_s1 = inlined_call_operand.hbm [shape: f32[2,8], index: 1, kind: input, shape index: {}]   ;;  %s3808_s2 = inlined_call_operand.hbm [shape: f32[2,3], index: 2, kind: input, shape index: {}]   ;;  %s3809_s3 = inlined_call_operand.vmem [shape: f32[1,32], index: 3, kind: input, shape index: {}]   ;;  %s3810_s4 = inlined_call_operand.hbm [shape: f32[1,32], index: 4, kind: input, shape index: {}]   ;;  %s3811_s5 = inlined_call_operand.vmem [shape: bf16[2,32,32], index: 5, kind: input, shape index: {}]   ;;  %s3812_s6 = inlined_call_operand.hbm [shape: f32[2,1,32], index: 6, kind: input, shape index: {}]   ;;  %s3813_s7 = inlined_call_operand.vmem [shape: bf16[2,32,32], index: 7, kind: input, shape index: {}]   ;;  %s3814_s8 = inlined_call_operand.hbm [shape: f32[2,1,32], index: 8, kind: input, shape index: {}]   ;;  %s3815_s9 = inlined_call_operand.vmem [shape: bf16[2,32,32], index: 9, kind: input, shape index: {}]   ;;  %s3816_s10 = inlined_call_operand.hbm [shape: f32[2,1,32], index: 10, kind: input, shape index: {}]   ;;  %s3817_s11 = inlined_call_operand.vmem [shape: bf16[2,32,32], index: 11, kind: input, shape index: {}]   ;;  %s3818_s12 = inlined_call_operand.hbm [shape: f32[2,1,32], index: 12, kind: input, shape index: {}]   ;;  %s3819_s13 = inlined_call_operand.hbm [shape: f32[2,1,32], index: 13, kind: input, shape index: {}]   ;;  %s3820_s14 = inlined_call_operand.hbm [shape: f32[2,1,32], index: 14, kind: input, shape index: {}]   ;;  %s3821_s15 = inlined_call_operand.vmem [shape: bf16[2,32,128], index: 15, kind: input, shape index: {}]   ;;  %s3822_s16 = inlined_call_operand.hbm [shape: f32[2,1,128], index: 16, kind: input, shape index: {}]   ;;  %s3823_s17 = inlined_call_operand.vmem [shape: bf16[2,128,32], index: 17, kind: input, shape index: {}]   ;;  %s3824_s18 = inlined_call_operand.hbm [shape: f32[2,1,32], index: 18, kind: input, shape index: {}]   ;;  %s3825_s19 = inlined_call_operand.hbm [shape: f32[2,1,32], index: 19, kind: input, shape index: {}]   ;;  %s3826_s20 = inlined_call_operand.hbm [shape: f32[2,1,32], index: 20, kind: input, shape index: {}]   ;;  %s3827_s21 = inlined_call_operand.vmem [shape: bf16[32,3], index: 21, kind: input, shape index: {}]   ;;  %s3828_s22 = inlined_call_operand.vmem [shape: f32[1,3], index: 22, kind: input, shape index: {}]   ;;  %s3829_s23 = inlined_call_operand.hbm [shape: f32[2,3], index: 23, kind: output, shape index: {0}]   ;;  %s3830_s24 = inlined_call_operand.hbm [shape: f32[1,1], index: 24, kind: output, shape index: {1}]  }
   0x1   :  { %3833 = sst [smem:[#allocation38_spill]] %s3806_s0 }
   0x2   :  { %3834 = sst [smem:[#allocation39_spill]] %s3807_s1 }
   0x3   :  { %3835 = sst [smem:[#allocation40_spill]] %s3808_s2 }
   0x4   :  { %3836 = sst [smem:[#allocation41_spill]] %s3809_s3 }
   0x5   :  { %3837 = sst [smem:[#allocation42_spill]] %s3810_s4 }
   0x6   :  { %3838 = sst [smem:[#allocation43_spill]] %s3811_s5 }
   0x7   :  { %3839 = sst [smem:[#allocation44_spill]] %s3812_s6 }
   0x8   :  { %3840 = sst [smem:[#allocation45_spill]] %s3813_s7 }
   0x9   :  { %3841 = sst [smem:[#allocation46_spill]] %s3814_s8 }
   0xa   :  { %3842 = sst [smem:[#allocation47_spill]] %s3829_s23 }
   0xb   :  { %3843 = sst [smem:[#allocation48_spill]] %s3830_s24 }
   0xc   :  { %30 = vsyncpa [#allocation3], 0 }
   0xd   :  { %31 = vsyncpa [#allocation6], 0 }
   0xe   :  { %32 = vsyncpa [#allocation9], 0 }
   0xf   :  { %33 = vsyncpa [#allocation12], 0 }
  0x10   :  { %34 = vsyncpa [#allocation15], 0 }
  0x11   :  { %35 = vsyncpa [#allocation18], 0 }
  0x12   :  { %36 = vsyncpa [#allocation21], 0 }
  0x13   :  { %37 = vsyncpa [#allocation24], 0 }
  0x14   :  { %38 = vsyncpa [#allocation4], 0  ;;  %s3844_s27 = sld [smem:[#allocation39_spill]] }
  0x1a   :  { %s58_s28 = sshll.u32 %s3844_s27, 4  ;;  %s59_s28 = int_to_ptr.hbm [resolvable:$true] %s58_s28 }
  0x1b   :  { %39 = vsyncpa [#allocation27], 0  ;;  %s3172_s6 = smov [#allocation5]   ;;  %s3845_s7 = sld [smem:[#allocation42_spill]] }
  0x1c   :  { %s60_s2 = sshll.u32 %s3172_s6, 4  ;;  %s3173_s3 = smov [#allocation8]   ;;  %s61_s2 = int_to_ptr.vmem [resolvable:$true] %s60_s2 }
  0x1d   :  { %63 = dma.hbm_to_vmem [thread:$0]  %s59_s28, 32, %s61_s2, [#allocation6]  }
  0x1e   :  { %s84_s25 = sshll.u32 %s3173_s3, 4  ;;  %s3846_s1 = sld [smem:[#allocation46_spill]]  ;;  %s85_s25 = int_to_ptr.vmem [resolvable:$true] %s84_s25 }
  0x1f   :  { %s3174_s26 = smov [#allocation11]   ;;  %s139_s23 = sshll.u32 %s3818_s12, 4  ;;  %s140_s23 = int_to_ptr.hbm [resolvable:$true] %s139_s23 }
  0x20   :  { %s111_s27 = sshll.u32 %s3174_s26, 4  ;;  %s3175_s29 = smov 16   ;;  %s112_s27 = int_to_ptr.vmem [resolvable:$true] %s111_s27 }
  0x21   :  { %s82_s30 = sshll.u32 %s3845_s7, 4  ;;  %s3176_s0 = smov 1   ;;  %s83_s30 = int_to_ptr.hbm [resolvable:$true] %s82_s30 }
  0x22   :  { %87 = dma.hbm_to_vmem [thread:$0]  %s83_s30, 16, %s85_s25, [#allocation9]  }
  0x23   :  { %s3177_s28 = smov [#allocation14]   ;;  %s165_s3 = sshll.u32 %s3820_s14, 4  ;;  %s166_s3 = int_to_ptr.hbm [resolvable:$true] %s165_s3 }
  0x24   :  { %s109_s5 = sshll.u32 %s3846_s1, 4  ;;  %s141_s2 = sshll.u32 %s3177_s28, 4  ;;  %s110_s5 = int_to_ptr.hbm [resolvable:$true] %s109_s5  ;;  %s142_s2 = int_to_ptr.vmem [resolvable:$true] %s141_s2 }
  0x25   :  { %117 = dma.hbm_to_vmem [thread:$0]  %s110_s5, 32, %s112_s27, [#allocation12], %s3175_s29, %s3175_s29, %s3176_s0  }
  0x26   :  { %147 = dma.hbm_to_vmem [thread:$0]  %s140_s23, 32, %s142_s2, [#allocation15], %s3175_s29, %s3175_s29, %s3176_s0  }
  0x27   :  { %s195_s25 = sshll.u32 %s3824_s18, 4  ;;  %s3178_s8 = smov [#allocation17]   ;;  %s196_s25 = int_to_ptr.hbm [resolvable:$true] %s195_s25 }
  0x28   :  { %s167_s4 = sshll.u32 %s3178_s8, 4  ;;  %s3179_s1 = smov [#allocation20]   ;;  %s168_s4 = int_to_ptr.vmem [resolvable:$true] %s167_s4 }
  0x29   :  { %173 = dma.hbm_to_vmem [thread:$0]  %s166_s3, 32, %s168_s4, [#allocation18], %s3175_s29, %s3175_s29, %s3176_s0  }
  0x2a   :  { %s197_s14 = sshll.u32 %s3179_s1, 4  ;;  %s3847_s27 = sld [smem:[#allocation38_spill]]  ;;  %s198_s14 = int_to_ptr.vmem [resolvable:$true] %s197_s14 }
  0x2b   :  { %203 = dma.hbm_to_vmem [thread:$0]  %s196_s25, 32, %s198_s14, [#allocation21], %s3175_s29, %s3175_s29, %s3176_s0  }
  0x2c   :  { %s3180_s18 = smov [#allocation2]   ;;  %s3848_s7 = sld [smem:[#allocation40_spill]] }
  0x2d   :  { %s46_s23 = sshll.u32 %s3180_s18, 4  ;;  %s3181_s3 = smov 128   ;;  %s47_s23 = int_to_ptr.vmem [resolvable:$true] %s46_s23 }
  0x2e   :  { %s3182_s12 = smov 8   ;;  %s3183_s24 = smov [#allocation7]  }
  0x2f   :  { %s71_s8 = sshll.u32 %s3183_s24, 4  ;;  %s3849_s5 = sld [smem:[#allocation44_spill]]  ;;  %s72_s8 = int_to_ptr.vmem [resolvable:$true] %s71_s8 }
  0x30   :  { %s44_s6 = sshll.u32 %s3847_s27, 4  ;;  %s124_s27 = sshll.u32 %s3816_s10, 4  ;;  %s45_s6 = int_to_ptr.hbm [resolvable:$true] %s44_s6  ;;  %s125_s27 = int_to_ptr.hbm [resolvable:$true] %s124_s27 }
  0x31   :  { %52 = dma.hbm_to_vmem [thread:$0]  %s45_s6, 256, %s47_s23, [#allocation3], %s3181_s3, %s3181_s3, %s3182_s12  }
  0x32   :  { %s69_s30 = sshll.u32 %s3848_s7, 4  ;;  %s3184_s18 = smov [#allocation10]   ;;  %s70_s30 = int_to_ptr.hbm [resolvable:$true] %s69_s30 }
  0x33   :  { %74 = dma.hbm_to_vmem [thread:$0]  %s70_s30, 32, %s72_s8, [#allocation6]  }
  0x34   :  { %s96_s28 = sshll.u32 %s3184_s18, 4  ;;  %s3185_s6 = smov [#allocation13]   ;;  %s97_s28 = int_to_ptr.vmem [resolvable:$true] %s96_s28 }
  0x35   :  { %s94_s26 = sshll.u32 %s3849_s5, 4  ;;  %s126_s23 = sshll.u32 %s3185_s6, 4  ;;  %s95_s26 = int_to_ptr.hbm [resolvable:$true] %s94_s26  ;;  %s127_s23 = int_to_ptr.vmem [resolvable:$true] %s126_s23 }
  0x36   :  { %102 = dma.hbm_to_vmem [thread:$0]  %s95_s26, 32, %s97_s28, [#allocation9], %s3175_s29, %s3175_s29, %s3176_s0  }
  0x37   :  { %s152_s3 = sshll.u32 %s3819_s13, 4  ;;  %s180_s24 = sshll.u32 %s3822_s16, 4  ;;  %s153_s3 = int_to_ptr.hbm [resolvable:$true] %s152_s3  ;;  %s181_s24 = int_to_ptr.hbm [resolvable:$true] %s180_s24 }
  0x38   :  { %132 = dma.hbm_to_vmem [thread:$0]  %s125_s27, 32, %s127_s23, [#allocation12], %s3175_s29, %s3175_s29, %s3176_s0  }
  0x39   :  { %s3186_s8 = smov [#allocation16]   ;;  %s3187_s1 = smov [#allocation19]  }
  0x3a   :  { %s154_s4 = sshll.u32 %s3186_s8, 4  ;;  %s182_s13 = sshll.u32 %s3187_s1, 4  ;;  %s155_s4 = int_to_ptr.vmem [resolvable:$true] %s154_s4  ;;  %s183_s13 = int_to_ptr.vmem [resolvable:$true] %s182_s13 }
  0x3b   :  { %160 = dma.hbm_to_vmem [thread:$0]  %s153_s3, 32, %s155_s4, [#allocation15], %s3175_s29, %s3175_s29, %s3176_s0  }
  0x3c   :  { %s208_s25 = sshll.u32 %s3825_s19, 4  ;;  %s221_s27 = sshll.u32 %s3826_s20, 4  ;;  %s209_s25 = int_to_ptr.hbm [resolvable:$true] %s208_s25  ;;  %s222_s27 = int_to_ptr.hbm [resolvable:$true] %s221_s27 }
  0x3d   :  { %188 = dma.hbm_to_vmem [thread:$0]  %s181_s24, 32, %s183_s13, [#allocation18], %s3175_s29, %s3175_s29, %s3176_s0  }
  0x3e   :  { %s3188_s18 = smov [#allocation22]   ;;  %s3189_s6 = smov [#allocation23]  }
  0x3f   :  { %s210_s28 = sshll.u32 %s3188_s18, 4  ;;  %s223_s19 = sshll.u32 %s3189_s6, 4  ;;  %s211_s28 = int_to_ptr.vmem [resolvable:$true] %s210_s28  ;;  %s224_s19 = int_to_ptr.vmem [resolvable:$true] %s223_s19 }
  0x40   :  { %216 = dma.hbm_to_vmem [thread:$0]  %s209_s25, 32, %s211_s28, [#allocation21], %s3175_s29, %s3175_s29, %s3176_s0  }
  0x41   :  { %229 = dma.hbm_to_vmem [thread:$0]  %s222_s27, 32, %s224_s19, [#allocation24], %s3175_s29, %s3175_s29, %s3176_s0  }
  0x42   :  { %3152 = dma.done.wait [#allocation3], 256  }
  0x43   :  { %3153 = vsyncadd [#allocation3], 4294967040 }
  0x44   :  { %3154 = dma.done.wait [#allocation6], 64  }
  0x45   :  { %3155 = vsyncadd [#allocation6], 4294967232 }
  0x46   :  { %3156 = dma.done.wait [#allocation9], 48  }
  0x47   :  { %3157 = vsyncadd [#allocation9], 4294967248 }
  0x48   :  { %3158 = dma.done.wait [#allocation12], 64  }
  0x49   :  { %3159 = vsyncadd [#allocation12], 4294967232 }
  0x4a   :  { %3160 = dma.done.wait [#allocation15], 64  }
  0x4b   :  { %3161 = vsyncadd [#allocation15], 4294967232 }
  0x4c   :  { %3162 = dma.done.wait [#allocation18], 64  }
  0x4d   :  { %3163 = vsyncadd [#allocation18], 4294967232 }
  0x4e   :  { %3164 = dma.done.wait [#allocation21], 64  }
  0x4f   :  { %3165 = vsyncadd [#allocation21], 4294967232 }
  0x50   :  { %3166 = dma.done.wait [#allocation24], 32  }
  0x51   :  { %3167 = vsyncadd [#allocation24], 4294967264  ;;  %vm295_vm0 = vcmask 261120   ;;  %v291_v0 = vld [vmem:[#allocation2] sm:$0xff]  ;;  %v292_v1 = vld [vmem:[#allocation2 + $0x8] sm:$0xff]  ;;  %v3190_v4 = vmov 32.0  }
  0x52   :  { %v296_v2 = vsel %vm295_vm0, %v291_v0, 0.0  ;;  %v299_v3 = vsel %vm295_vm0, %v292_v1, 0.0  ;;  %2668 = vrcp.f32 %v3190_v4  ;;  %s3850_s23 = sld [smem:[#allocation43_spill]]  ;;  %v2556_v28 = vld [vmem:[%s3815_s9 + $0x8] sm:$0xff]  ;;  %v2555_v31 = vld [vmem:[%s3815_s9] sm:$0xff]  ;;  %vm474_vm8 = vcmask 64512  }
  0x53   :  { %297 = vadd.xlane.f32.xlu0 %v296_v2  ;;  %s3851_s3 = sld [smem:[#allocation45_spill]]  ;;  %v2646_v51 = vld [vmem:[#allocation8] ss:$0 sm:$0xff]  ;;  %v2647_v56 = vld [vmem:[#allocation11] ss:$0 sm:$0xff]  ;;  %s3191_s14 = smov 120  }
  0x54   :  { %s3852_s16 = sld [smem:[#allocation41_spill]]  ;;  %v2648_v60 = vld [vmem:[#allocation10] ss:$0 sm:$0xff]  ;;  %s3192_s27 = smov 112   ;;  %vm548_vm9 = vcmask 1043456   ;;  %vm976_vm10 = vcmask 130048  }
  0x55   :  { %s3193_s18 = smov 104   ;;  %s3194_s28 = smov 24   ;;  %vm979_vm11 = vcmask 195584  }
  0x58   :  { %v2669_v5 = vpop.eup %2668  ;;  %v2552_v21 = vld [vmem:[%s3850_s23 + $0x8] sm:$0xff]  ;;  %v2551_v24 = vld [vmem:[%s3850_s23] sm:$0xff] }
  0x59   :  { %v303_v6 = vmul.f32 32.0, %v2669_v5  ;;  %vm307_vm1 = vweird.f32 %v2669_v5  ;;  %v2554_v22 = vld [vmem:[%s3851_s3 + $0x8] sm:$0xff]  ;;  %392 = vmatpush.bf16.msra.mxu2 %v2552_v21  ;;  %v2553_v25 = vld [vmem:[%s3851_s3] sm:$0xff] }
  0x5a   :  { %426 = vmatpush.bf16.msra.mxu1 %v2554_v22  ;;  %v2645_v46 = vld [vmem:[%s3852_s16] ss:$0 sm:$0xff] }
  0x5b   :  { %300 = vadd.xlane.f32.xlu0 %v299_v3  ;;  %v304_v7 = vsub.f32 1.0, %v303_v6 }
  0x5d   :  { %v305_v8 = vmul.f32 %v2669_v5, %v304_v7  ;;  %393 = vmatpush.bf16.msra.mxu2 %v2551_v24 }
  0x5e   :  { %427 = vmatpush.bf16.msra.mxu1 %v2553_v25 }
  0x5f   :  { %v306_v9 = vadd.f32 %v2669_v5, %v305_v8 }
  0x61   :  { %v3398_v10 = vsel %vm307_vm1, %v2669_v5, %v306_v9  ;;  %460 = vmatpush.bf16.msrb.mxu2 %v2556_v28 }
  0x65   :  { %461 = vmatpush.bf16.msrb.mxu2 %v2555_v31 }
  0xc6   :  { %v298_v11 = vpop.xlane.xlu0 %297 }
  0xc7   :  { %v309_v12 = vmul.f32 %v3398_v10, %v298_v11 }
  0xc9   :  { %v311_v13 = vsub.f32 %v291_v0, %v309_v12 }
  0xcb   :  { %v313_v14 = vmul.f32 %v311_v13, %v311_v13 }
  0xcd   :  { %v315_v15 = vsel %vm295_vm0, %v313_v14, 0.0 }
  0xce   :  { %316 = vadd.xlane.f32.xlu1 %v315_v15  ;;  %v301_v16 = vpop.xlane.xlu0 %300 }
  0xcf   :  { %v310_v17 = vmul.f32 %v3398_v10, %v301_v16  ;;  %v2649_v16 = vld [vmem:[#allocation13] ss:$0 sm:$0xff] }
  0xd1   :  { %v312_v18 = vsub.f32 %v292_v1, %v310_v17 }
  0xd3   :  { %v314_v19 = vmul.f32 %v312_v18, %v312_v18 }
  0xd5   :  { %v318_v20 = vsel %vm295_vm0, %v314_v19, 0.0 }
  0xd6   :  { %319 = vadd.xlane.f32.xlu1 %v318_v20 }
 0x141   :  { %v317_v23 = vpop.xlane.xlu1 %316 }
 0x142   :  { %v321_v26 = vmul.f32 %v317_v23, %v3398_v10 }
 0x144   :  { %v323_v27 = vadd.f32 1e-05, %v321_v26 }
 0x146   :  { %2670 = vrsqrt.f32 %v323_v27  ;;  %vm331_vm3 = vweird.f32 %v323_v27 }
 0x149   :  { %v320_v29 = vpop.xlane.xlu1 %319 }
 0x14a   :  { %v322_v30 = vmul.f32 %v320_v29, %v3398_v10 }
 0x14c   :  { %v2671_v32 = vpop.eup %2670  ;;  %v324_v33 = vadd.f32 1e-05, %v322_v30 }
 0x14d   :  { %v326_v34 = vmul.f32 %v2671_v32, %v323_v27  ;;  %vm332_vm2 = vweird.f32 %v2671_v32 }
 0x14e   :  { %2672 = vrsqrt.f32 %v324_v33  ;;  %vm333_vm4 = vmor %vm331_vm3, %vm332_vm2  ;;  %vm341_vm6 = vweird.f32 %v324_v33 }
 0x14f   :  { %v327_v35 = vmul.f32 %v2671_v32, %v326_v34 }
 0x151   :  { %v328_v36 = vmul.f32 0.5, %v327_v35  ;;  %v357_v35 = vld [vmem:[#allocation5] sm:$0x3] }
 0x153   :  { %v329_v37 = vsub.f32 1.5, %v328_v36 }
 0x154   :  { %v2673_v38 = vpop.eup %2672 }
 0x155   :  { %v330_v39 = vmul.f32 %v2671_v32, %v329_v37  ;;  %v336_v40 = vmul.f32 %v2673_v38, %v324_v33  ;;  %vm342_vm5 = vweird.f32 %v2673_v38  ;;  %v358_v37 = vsub.f32 1.0, %v357_v35 }
 0x156   :  { %vm343_vm7 = vmor %vm341_vm6, %vm342_vm5 }
 0x157   :  { %v337_v41 = vmul.f32 %v2673_v38, %v336_v40  ;;  %v334_v42 = vsel %vm333_vm4, %v2671_v32, %v330_v39  ;;  %v359_v39 = vmul.f32 -1e+09, %v358_v37 }
 0x158   :  { %v345_v45 = vmul.f32 %v334_v42, %v311_v13 }
 0x159   :  { %v338_v43 = vmul.f32 0.5, %v337_v41  ;;  %v361_v42 = vrot.slane %v359_v39, 1 }
 0x15a   :  { %v350_v50 = vmul.f32 %v2645_v46, %v345_v45 }
 0x15b   :  { %v339_v44 = vsub.f32 1.5, %v338_v43  ;;  %v3467_v43 = vperm.slane %v359_v39, 0 }
 0x15c   :  { %v3427_v53 = vadd.f32 %v2646_v51, %v350_v50 }
 0x15d   :  { %v340_v47 = vmul.f32 %v2673_v38, %v339_v44 }
 0x15f   :  { %v344_v48 = vsel %vm343_vm7, %v2673_v38, %v340_v47  ;;  %v3469_v47 = vperm.slane %v361_v42, 0 }
 0x160   :  { %v346_v49 = vmul.f32 %v344_v48, %v312_v18 }
 0x162   :  { %v351_v52 = vmul.f32 %v2645_v46, %v346_v49 }
 0x164   :  { %v3429_v54 = vadd.f32 %v2646_v51, %v351_v52 }
 0x166   :  { %v362_v55 = vpack.c.bf16 %v3429_v54, %v3427_v53 }
 0x168   :  { %2328 = vmatmul.msk.bf16.vlgmr.msra.gmra.mxu2 %vm295_vm0, %v362_v55  ;;  %2337 = vmatmul.msk.bf16.vlgmr.msra.gmra.mxu1 %vm295_vm0, %v362_v55 }
 0x178   :  { %2346 = vmatmul.msk.bf16.vlgmr.msrb.gmra.mxu2 %vm295_vm0, %v362_v55 }
 0x1e5   :  { %v429_v57 = vpop.f32.mrf.mxu1 }
 0x1e6   :  { %v430_v58 = vadd.f32 %v2647_v56, %v429_v57 }
 0x1e8   :  { %v470_v59 = vpack.c.bf16 %v430_v58, %v430_v58 }
 0x1ea   :  { %v590_v61 = vunpack.c.l.b16 %v470_v59  ;;  %v479_v62 = vsel %vm474_vm8, %v470_v59, 0 }
 0x1eb   :  { %v395_v63 = vpop.f32.mrf.mxu2  ;;  %488 = vmatpush.bf16.xpose.msra.mxu3 %v479_v62 }
 0x1ec   :  { %v591_v0 = vpack.c.b16 %v590_v61, %v590_v61  ;;  %v396_v1 = vadd.f32 %v2648_v60, %v395_v63 }
 0x1ed   :  { %v431_v2 = vpop.f32.mrf.mxu1 }
 0x1ee   :  { %v468_v3 = vpack.c.bf16 %v396_v1, %v396_v1  ;;  %v432_v4 = vadd.f32 %v2647_v56, %v431_v2  ;;  %592 = vrot.lane.b32.xlu2 %v591_v0, %s3191_s14 }
 0x1f0   :  { %v585_v5 = vunpack.c.l.b16 %v468_v3  ;;  %v471_v6 = vpack.c.bf16 %v432_v4, %v432_v4 }
 0x1f2   :  { %v586_v7 = vpack.c.b16 %v585_v5, %v585_v5  ;;  %v619_v8 = vunpack.c.l.b16 %v471_v6  ;;  %2347 = vmatmul.msk.bf16.vlgmr.msra.gmra.mxu3 %vm474_vm8, %v468_v3  ;;  %v498_v9 = vsel %vm474_vm8, %v471_v6, 0 }
 0x1f3   :  { %v397_v11 = vpop.f32.mrf.mxu2  ;;  %507 = vmatpush.bf16.xpose.msra.mxu0 %v498_v9 }
 0x1f4   :  { %v620_v12 = vpack.c.b16 %v619_v8, %v619_v8  ;;  %v398_v13 = vadd.f32 %v2648_v60, %v397_v11  ;;  %587 = vrot.lane.b32.xlu0 %v586_v7, %s3191_s14 }
 0x1f6   :  { %v469_v14 = vpack.c.bf16 %v398_v13, %v398_v13  ;;  %621 = vrot.lane.b32.xlu2 %v620_v12, %s3191_s14 }
 0x1f8   :  { %v614_v15 = vunpack.c.l.b16 %v469_v14 }
 0x1fa   :  { %v615_v17 = vpack.c.b16 %v614_v15, %v614_v15  ;;  %2348 = vmatmul.msk.bf16.vlgmr.msra.gmra.mxu0 %vm474_vm8, %v469_v14 }
 0x1fb   :  { %v463_v18 = vpop.f32.mrf.mxu2 }
 0x1fc   :  { %v464_v19 = vadd.f32 %v2649_v16, %v463_v18  ;;  %616 = vrot.lane.b32.xlu1 %v615_v17, %s3191_s14  ;;  %741 = vrot.lane.b32.xlu0 %v615_v17, %s3192_s27 }
 0x1fe   :  { %v3445_v20 = vpack.c.bf16 %v464_v19, %v464_v19  ;;  %720 = vrot.lane.b32.xlu2 %v591_v0, %s3192_s27 }
 0x200   :  { %v550_v21 = vsel %vm548_vm9, %v3445_v20, 0 }
 0x201   :  { %559 = vmatpush.bf16.msrb.mxu1 %v550_v21 }
 0x203   :  { %v465_v22 = vpop.f32.mrf.mxu2 }
 0x204   :  { %v466_v23 = vadd.f32 %v2649_v16, %v465_v22  ;;  %859 = vrot.lane.b32.xlu1 %v620_v12, %s3193_s18  ;;  %834 = vrot.lane.b32.xlu0 %v586_v7, %s3193_s18 }
 0x206   :  { %v3452_v24 = vpack.c.bf16 %v466_v23, %v466_v23  ;;  %743 = vrot.lane.b32.xlu2 %v620_v12, %s3192_s27 }
 0x208   :  { %v569_v25 = vsel %vm548_vm9, %v3452_v24, 0 }
 0x209   :  { %578 = vmatpush.bf16.msra.mxu2 %v569_v25 }
 0x20e   :  { %718 = vrot.lane.b32.xlu2 %v586_v7, %s3192_s27 }
 0x216   :  { %836 = vrot.lane.b32.xlu2 %v591_v0, %s3193_s18 }
 0x21e   :  { %857 = vrot.lane.b32.xlu2 %v615_v17, %s3193_s18 }
 0x248   :  { %v593_v26 = vpop.permute.xlu2 %592 }
 0x249   :  { %v598_v27 = vsel %vm474_vm8, %v593_v26, 0 }
 0x24a   :  { %607 = vmatpush.bf16.xpose.msrb.mxu3 %v598_v27 }
 0x250   :  { %v622_v28 = vpop.permute.xlu2 %621 }
 0x251   :  { %v627_v29 = vsel %vm474_vm8, %v622_v28, 0 }
 0x252   :  { %636 = vmatpush.bf16.xpose.msrb.mxu0 %v627_v29 }
 0x258   :  { %v721_v30 = vpop.permute.xlu2 %720 }
 0x259   :  { %v726_v31 = vsel %vm474_vm8, %v721_v30, 0 }
 0x25a   :  { %735 = vmatpush.bf16.xpose.msra.mxu3 %v726_v31 }
 0x260   :  { %v744_v32 = vpop.permute.xlu2 %743 }
 0x261   :  { %v749_v33 = vsel %vm474_vm8, %v744_v32, 0 }
 0x262   :  { %758 = vmatpush.bf16.xpose.msra.mxu0 %v749_v33 }
 0x266   :  { %v588_v34 = vpop.permute.xlu0 %587 }
 0x267   :  { %2351 = vmatmul.msk.bf16.vlgmr.msrb.gmra.mxu3 %vm474_vm8, %v588_v34 }
 0x268   :  { %v719_v36 = vpop.permute.xlu2 %718 }
 0x26e   :  { %v617_v38 = vpop.permute.xlu1 %616  ;;  %v742_v56 = vpop.permute.xlu0 %741 }
 0x26f   :  { %2352 = vmatmul.msk.bf16.vlgmr.msrb.gmra.mxu0 %vm474_vm8, %v617_v38 }
 0x270   :  { %v837_v40 = vpop.permute.xlu2 %836 }
 0x271   :  { %v842_v41 = vsel %vm474_vm8, %v837_v40, 0  ;;  %v671_v40 = vunpack.c.l.b16 %v3445_v20 }
 0x272   :  { %851 = vmatpush.bf16.xpose.msrb.mxu3 %v842_v41 }
 0x273   :  { %v3498_v42 = vpack.c.b16 %v671_v40, %v671_v40 }
 0x275   :  { %v490_v44 = vpop.f32.mrf.mxu3 }
 0x276   :  { %v513_v45 = vmul.f32 0.35355338, %v490_v44  ;;  %v860_v46 = vpop.permute.xlu1 %859  ;;  %v835_v60 = vpop.permute.xlu0 %834  ;;  %v695_v44 = vunpack.c.l.b16 %v3452_v24 }
 0x277   :  { %v865_v48 = vsel %vm474_vm8, %v860_v46, 0  ;;  %v509_v49 = vpop.f32.mrf.mxu0  ;;  %2355 = vmatmul.msk.bf16.vlgmr.msra.gmra.mxu3 %vm474_vm8, %v719_v36 }
 0x278   :  { %v514_v50 = vmul.f32 0.35355338, %v509_v49  ;;  %874 = vmatpush.bf16.xpose.msrb.mxu0 %v865_v48  ;;  %v519_v51 = vadd.f32 %v3467_v43, %v513_v45  ;;  %v858_v61 = vpop.permute.xlu2 %857  ;;  %v696_v45 = vpack.c.b16 %v695_v44, %v695_v44 }
 0x27a   :  { %v521_v52 = vsel %vm474_vm8, %v519_v51, -inf  ;;  %v520_v55 = vadd.f32 %v3469_v47, %v514_v50 }
 0x27b   :  { %522 = vmax.xlane.f32.xlu0 %v521_v52 }
 0x27c   :  { %v524_v57 = vsel %vm474_vm8, %v520_v55, -inf }
 0x27d   :  { %525 = vmax.xlane.f32.xlu1 %v524_v57  ;;  %v492_v58 = vpop.f32.mrf.mxu3 }
 0x27f   :  { %v511_v59 = vpop.f32.mrf.mxu0  ;;  %2356 = vmatmul.msk.bf16.vlgmr.msra.gmra.mxu0 %vm474_vm8, %v742_v56 }
 0x287   :  { %2359 = vmatmul.msk.bf16.vlgmr.msrb.gmra.mxu3 %vm474_vm8, %v835_v60 }
 0x28f   :  { %2360 = vmatmul.msk.bf16.vlgmr.msrb.gmra.mxu0 %vm474_vm8, %v858_v61 }
 0x2ea   :  { %v609_v62 = vpop.f32.mrf.mxu3 }
 0x2eb   :  { %v642_v63 = vmul.f32 0.35355338, %v609_v62 }
 0x2ec   :  { %v638_v0 = vpop.f32.mrf.mxu0 }
 0x2ed   :  { %v643_v1 = vmul.f32 0.35355338, %v638_v0  ;;  %v644_v2 = vadd.f32 %v642_v63, %v3467_v43 }
 0x2ee   :  { %v523_v3 = vpop.xlane.xlu0 %522 }
 0x2ef   :  { %v527_v4 = vsub.f32 %v519_v51, %v523_v3  ;;  %v646_v5 = vsel %vm474_vm8, %v644_v2, -inf  ;;  %v645_v6 = vadd.f32 %v643_v1, %v3469_v47 }
 0x2f0   :  { %v526_v7 = vpop.xlane.xlu1 %525  ;;  %647 = vmax.xlane.f32.xlu1 %v646_v5 }
 0x2f1   :  { %v529_v8 = vmul.f32 1.442695, %v527_v4  ;;  %v528_v9 = vsub.f32 %v520_v55, %v526_v7  ;;  %v649_v11 = vsel %vm474_vm8, %v645_v6, -inf }
 0x2f2   :  { %650 = vmax.xlane.f32.xlu2 %v649_v11  ;;  %v611_v12 = vpop.f32.mrf.mxu3 }
 0x2f3   :  { %2674 = vpow2.f32 %v529_v8  ;;  %v531_v13 = vmul.f32 1.442695, %v528_v9 }
 0x2f4   :  { %v640_v14 = vpop.f32.mrf.mxu0 }
 0x2f5   :  { %2676 = vpow2.f32 %v531_v13 }
 0x2f9   :  { %v2675_v15 = vpop.eup %2674 }
 0x2fa   :  { %v737_v16 = vpop.f32.mrf.mxu3  ;;  %v533_v17 = vsel %vm474_vm8, %v2675_v15, 0.0 }
 0x2fb   :  { %v2677_v18 = vpop.eup %2676  ;;  %v764_v19 = vmul.f32 0.35355338, %v737_v16  ;;  %534 = vadd.xlane.f32.xlu1 %v533_v17 }
 0x2fc   :  { %v760_v21 = vpop.f32.mrf.mxu0  ;;  %v536_v22 = vsel %vm474_vm8, %v2677_v18, 0.0 }
 0x2fd   :  { %v765_v23 = vmul.f32 0.35355338, %v760_v21  ;;  %537 = vadd.xlane.f32.xlu0 %v536_v22  ;;  %v766_v25 = vadd.f32 %v764_v19, %v3467_v43 }
 0x2ff   :  { %v768_v26 = vsel %vm474_vm8, %v766_v25, -inf  ;;  %v767_v27 = vadd.f32 %v765_v23, %v3469_v47 }
 0x300   :  { %769 = vmax.xlane.f32.xlu2 %v768_v26 }
 0x301   :  { %v771_v30 = vsel %vm474_vm8, %v767_v27, -inf }
 0x302   :  { %v739_v28 = vpop.f32.mrf.mxu3 }
 0x304   :  { %v762_v29 = vpop.f32.mrf.mxu0 }
 0x305   :  { %772 = vmax.xlane.f32.xlu0 %v771_v30 }
 0x30a   :  { %v853_v31 = vpop.f32.mrf.mxu3 }
 0x30b   :  { %v880_v32 = vmul.f32 0.35355338, %v853_v31 }
 0x30c   :  { %v876_v33 = vpop.f32.mrf.mxu0 }
 0x30d   :  { %v881_v34 = vmul.f32 0.35355338, %v876_v33  ;;  %v3491_v35 = vadd.f32 %v880_v32, %v3467_v43 }
 0x30f   :  { %v884_v36 = vsel %vm474_vm8, %v3491_v35, -inf  ;;  %v883_v37 = vadd.f32 %v881_v34, %v3469_v47 }
 0x310   :  { %885 = vmax.xlane.f32.xlu2 %v884_v36 }
 0x311   :  { %v887_v38 = vsel %vm474_vm8, %v883_v37, -inf }
 0x312   :  { %888 = vmax.xlane.f32.xlu1 %v887_v38  ;;  %v855_v39 = vpop.f32.mrf.mxu3 }
 0x314   :  { %v878_v41 = vpop.f32.mrf.mxu0 }
 0x319   :  { %673 = vrot.lane.b32.xlu0 %v3498_v42, %s3191_s14 }
 0x328   :  { %813 = vrot.lane.b32.xlu2 %v696_v45, %s3192_s27 }
 0x32b   :  { %697 = vrot.lane.b32.xlu1 %v696_v45, %s3191_s14 }
 0x363   :  { %v648_v46 = vpop.xlane.xlu1 %647 }
 0x364   :  { %v652_v48 = vsub.f32 %v644_v2, %v648_v46 }
 0x365   :  { %v651_v49 = vpop.xlane.xlu2 %650 }
 0x366   :  { %v654_v50 = vmul.f32 1.442695, %v652_v48  ;;  %v653_v51 = vsub.f32 %v645_v6, %v651_v49 }
 0x368   :  { %2678 = vpow2.f32 %v654_v50  ;;  %v656_v20 = vmul.f32 1.442695, %v653_v51 }
 0x36a   :  { %2680 = vpow2.f32 %v656_v20 }
 0x36e   :  { %v3505_v52 = vpop.eup %2678  ;;  %v535_v55 = vpop.xlane.xlu1 %534 }
 0x36f   :  { %2682 = vrcp.f32 %v535_v55  ;;  %v658_v24 = vsel %vm474_vm8, %v3505_v52, 0.0 }
 0x370   :  { %v2681_v56 = vpop.eup %2680  ;;  %v538_v57 = vpop.xlane.xlu0 %537  ;;  %659 = vadd.xlane.f32.xlu2 %v658_v24 }
 0x371   :  { %2684 = vrcp.f32 %v538_v57  ;;  %v661_v58 = vsel %vm474_vm8, %v2681_v56, 0.0 }
 0x372   :  { %662 = vadd.xlane.f32.xlu0 %v661_v58 }
 0x373   :  { %v770_v59 = vpop.xlane.xlu2 %769 }
 0x374   :  { %v774_v60 = vsub.f32 %v766_v25, %v770_v59 }
 0x375   :  { %v2683_v61 = vpop.eup %2682 }
 0x376   :  { %v541_v62 = vmul.f32 %v2683_v61, %v2675_v15  ;;  %v776_v63 = vmul.f32 1.442695, %v774_v60 }
 0x377   :  { %v2685_v0 = vpop.eup %2684 }
 0x378   :  { %v542_v1 = vmul.f32 %v2685_v0, %v2677_v18  ;;  %2686 = vpow2.f32 %v776_v63  ;;  %v773_v2 = vpop.xlane.xlu0 %772  ;;  %v543_v3 = vpack.c.bf16 %v541_v62, %v541_v62 }
 0x379   :  { %v775_v4 = vsub.f32 %v767_v27, %v773_v2 }
 0x37a   :  { %v544_v5 = vpack.c.bf16 %v542_v1, %v542_v1  ;;  %2349 = vmatmul.msk.bf16.vlgmr.msrb.gmra.mxu1 %vm474_vm8, %v543_v3 }
 0x37b   :  { %v778_v6 = vmul.f32 1.442695, %v775_v4 }
 0x37c   :  { %2350 = vmatmul.msk.bf16.vlgmr.msra.gmra.mxu2 %vm474_vm8, %v544_v5 }
 0x37d   :  { %2688 = vpow2.f32 %v778_v6 }
 0x37e   :  { %v2687_v7 = vpop.eup %2686 }
 0x37f   :  { %v780_v8 = vsel %vm474_vm8, %v2687_v7, 0.0 }
 0x380   :  { %781 = vadd.xlane.f32.xlu2 %v780_v8 }
 0x383   :  { %v2689_v9 = vpop.eup %2688  ;;  %v886_v19 = vpop.xlane.xlu2 %885 }
 0x384   :  { %v783_v13 = vsel %vm474_vm8, %v2689_v9, 0.0  ;;  %v890_v23 = vsub.f32 %v3491_v35, %v886_v19  ;;  %v2557_v19 = vld [vmem:[%s3817_s11] sm:$0xff] }
 0x385   :  { %v889_v11 = vpop.xlane.xlu1 %888 }
 0x386   :  { %v891_v12 = vsub.f32 %v883_v37, %v889_v11  ;;  %792 = vrot.lane.b32.xlu0 %v3498_v42, %s3192_s27  ;;  %v892_v27 = vmul.f32 1.442695, %v890_v23 }
 0x388   :  { %v894_v14 = vmul.f32 1.442695, %v891_v12  ;;  %784 = vadd.xlane.f32.xlu2 %v783_v13 }
 0x38a   :  { %2690 = vpow2.f32 %v894_v14 }
 0x38b   :  { %v674_v15 = vpop.permute.xlu0 %673  ;;  %v814_v21 = vpop.permute.xlu2 %813  ;;  %2692 = vpow2.f32 %v892_v27 }
 0x38c   :  { %v679_v16 = vsel %vm548_vm9, %v674_v15, 0  ;;  %v819_v26 = vsel %vm548_vm9, %v814_v21, 0 }
 0x38d   :  { %688 = vmatpush.bf16.msra.mxu1 %v679_v16 }
 0x390   :  { %v2691_v17 = vpop.eup %2690 }
 0x391   :  { %v899_v18 = vsel %vm474_vm8, %v2691_v17, 0.0  ;;  %v2693_v28 = vpop.eup %2692 }
 0x392   :  { %900 = vadd.xlane.f32.xlu1 %v899_v18  ;;  %v896_v29 = vsel %vm474_vm8, %v2693_v28, 0.0  ;;  %v2558_v18 = vld [vmem:[%s3817_s11 + $0x8] sm:$0xff] }
 0x393   :  { %1012 = vmatpush.bf16.msra.mxu3 %v2558_v18  ;;  %v2652_v18 = vld [vmem:[#allocation17] ss:$0 sm:$0xff] }
 0x397   :  { %1013 = vmatpush.bf16.msra.mxu3 %v2557_v19 }
 0x39d   :  { %v698_v22 = vpop.permute.xlu1 %697 }
 0x39e   :  { %v703_v25 = vsel %vm548_vm9, %v698_v22, 0 }
 0x39f   :  { %712 = vmatpush.bf16.msrb.mxu2 %v703_v25 }
 0x3a0   :  { %929 = vrot.lane.b32.xlu2 %v696_v45, %s3193_s18 }
 0x3a3   :  { %828 = vmatpush.bf16.msra.mxu2 %v819_v26 }
 0x3a8   :  { %908 = vrot.lane.b32.xlu2 %v3498_v42, %s3193_s18 }
 0x3b0   :  { %897 = vadd.xlane.f32.xlu0 %v896_v29 }
 0x3e3   :  { %v660_v30 = vpop.xlane.xlu2 %659 }
 0x3e4   :  { %2694 = vrcp.f32 %v660_v30 }
 0x3e5   :  { %v663_v31 = vpop.xlane.xlu0 %662 }
 0x3e6   :  { %2696 = vrcp.f32 %v663_v31 }
 0x3ea   :  { %v2695_v32 = vpop.eup %2694 }
 0x3eb   :  { %v666_v33 = vmul.f32 %v2695_v32, %v3505_v52 }
 0x3ec   :  { %v2697_v34 = vpop.eup %2696 }
 0x3ed   :  { %v668_v35 = vpack.c.bf16 %v666_v33, %v666_v33  ;;  %v667_v36 = vmul.f32 %v2697_v34, %v2681_v56 }
 0x3ef   :  { %v669_v37 = vpack.c.bf16 %v667_v36, %v667_v36  ;;  %2353 = vmatmul.msk.bf16.vlgmr.msra.gmra.mxu1 %vm474_vm8, %v668_v35 }
 0x3f1   :  { %2354 = vmatmul.msk.bf16.vlgmr.msrb.gmra.mxu2 %vm474_vm8, %v669_v37 }
 0x3f3   :  { %v782_v38 = vpop.xlane.xlu2 %781 }
 0x3f4   :  { %2698 = vrcp.f32 %v782_v38  ;;  %v2650_v38 = vld [vmem:[#allocation14] ss:$0 sm:$0xff] }
 0x3f7   :  { %v3528_v39 = vpop.f32.mrf.mxu1 }
 0x3f8   :  { %v793_v40 = vpop.permute.xlu0 %792 }
 0x3f9   :  { %v798_v41 = vsel %vm548_vm9, %v793_v40, 0 }
 0x3fa   :  { %v2699_v42 = vpop.eup %2698  ;;  %807 = vmatpush.bf16.msrb.mxu1 %v798_v41 }
 0x3fb   :  { %v788_v44 = vmul.f32 %v2699_v42, %v2687_v7  ;;  %v785_v45 = vpop.xlane.xlu2 %784 }
 0x3fc   :  { %2700 = vrcp.f32 %v785_v45 }
 0x3fd   :  { %v790_v46 = vpack.c.bf16 %v788_v44, %v788_v44 }
 0x3ff   :  { %v563_v48 = vpop.f32.mrf.mxu1  ;;  %v580_v49 = vpop.f32.mrf.mxu2  ;;  %2357 = vmatmul.msk.bf16.vlgmr.msrb.gmra.mxu1 %vm474_vm8, %v790_v46 }
 0x402   :  { %v2701_v50 = vpop.eup %2700 }
 0x403   :  { %v789_v51 = vmul.f32 %v2701_v50, %v2689_v9  ;;  %v930_v20 = vpop.permute.xlu2 %929 }
 0x404   :  { %v935_v52 = vsel %vm548_vm9, %v930_v20, 0 }
 0x405   :  { %v791_v55 = vpack.c.bf16 %v789_v51, %v789_v51  ;;  %v901_v24 = vpop.xlane.xlu1 %900  ;;  %944 = vmatpush.bf16.msrb.mxu2 %v935_v52 }
 0x406   :  { %2702 = vrcp.f32 %v901_v24 }
 0x407   :  { %v582_v56 = vpop.f32.mrf.mxu2  ;;  %2358 = vmatmul.msk.bf16.vlgmr.msra.gmra.mxu2 %vm474_vm8, %v791_v55 }
 0x40b   :  { %v909_v57 = vpop.permute.xlu2 %908 }
 0x40c   :  { %v914_v58 = vsel %vm548_vm9, %v909_v57, 0  ;;  %v2703_v59 = vpop.eup %2702 }
 0x40d   :  { %923 = vmatpush.bf16.msra.mxu1 %v914_v58  ;;  %v905_v60 = vmul.f32 %v2703_v59, %v2691_v17 }
 0x40f   :  { %v907_v61 = vpack.c.bf16 %v905_v60, %v905_v60  ;;  %v2559_v60 = vld [vmem:[%s3821_s15] sm:$0xff] }
 0x417   :  { %2362 = vmatmul.msk.bf16.vlgmr.msrb.gmra.mxu2 %vm474_vm8, %v907_v61 }
 0x423   :  { %v898_v62 = vpop.xlane.xlu0 %897 }
 0x424   :  { %2704 = vrcp.f32 %v898_v62 }
 0x42a   :  { %v2705_v63 = vpop.eup %2704 }
 0x42b   :  { %v904_v0 = vmul.f32 %v2705_v63, %v2693_v28 }
 0x42d   :  { %v906_v1 = vpack.c.bf16 %v904_v0, %v904_v0 }
 0x42f   :  { %2361 = vmatmul.msk.bf16.vlgmr.msra.gmra.mxu1 %vm474_vm8, %v906_v1 }
 0x46c   :  { %v690_v2 = vpop.f32.mrf.mxu1 }
 0x474   :  { %v692_v3 = vpop.f32.mrf.mxu1  ;;  %v714_v4 = vpop.f32.mrf.mxu2 }
 0x475   :  { %v2615_v5 = vpack.i.bf16 %v714_v4, %v690_v2 }
 0x477   :  { %2616 = vrot.lane.b32.xlu2 %v2615_v5, %s3182_s12 }
 0x47c   :  { %v716_v6 = vpop.f32.mrf.mxu2  ;;  %v809_v7 = vpop.f32.mrf.mxu1 }
 0x484   :  { %v811_v8 = vpop.f32.mrf.mxu1 }
 0x48a   :  { %v830_v9 = vpop.f32.mrf.mxu2 }
 0x48b   :  { %v2620_v11 = vpack.i.bf16 %v830_v9, %v809_v7 }
 0x48d   :  { %2621 = vrot.lane.b32.xlu1 %v2620_v11, %s3175_s29 }
 0x492   :  { %v832_v12 = vpop.f32.mrf.mxu2 }
 0x49a   :  { %v946_v13 = vpop.f32.mrf.mxu2 }
 0x4a2   :  { %v948_v14 = vpop.f32.mrf.mxu2 }
 0x4a3   :  { %v2651_v14 = vld [vmem:[#allocation16] ss:$0 sm:$0xff] }
 0x4ac   :  { %v925_v15 = vpop.f32.mrf.mxu1 }
 0x4ad   :  { %v2625_v16 = vpack.i.bf16 %v946_v13, %v925_v15 }
 0x4af   :  { %2626 = vrot.lane.b32.xlu2 %v2625_v16, %s3194_s28 }
 0x4b4   :  { %v927_v17 = vpop.f32.mrf.mxu1 }
 0x4d1   :  { %v2617_v21 = vpop.permute.xlu2 %2616 }
 0x4d2   :  { %v2619_v23 = vunpack.i.h.bf16 %v2617_v21  ;;  %v2618_v25 = vunpack.i.l.bf16 %v2617_v21 }
 0x4d4   :  { %v975_v29 = vsel %vm474_vm8, %v580_v49, %v2619_v23  ;;  %v974_v30 = vsel %vm474_vm8, %v3528_v39, %v2618_v25 }
 0x4ff   :  { %v2622_v22 = vpop.permute.xlu1 %2621 }
 0x500   :  { %v2624_v26 = vunpack.i.h.bf16 %v2622_v22  ;;  %v2623_v27 = vunpack.i.l.bf16 %v2622_v22 }
 0x502   :  { %v977_v33 = vsel %vm976_vm10, %v974_v30, %v2623_v27  ;;  %v978_v34 = vsel %vm976_vm10, %v975_v29, %v2624_v26  ;;  %v2568_v27 = vld [vmem:[%s3823_s17 + $0x38] sm:$0xff]  ;;  %v2566_v29 = vld [vmem:[%s3823_s17 + $0x28] sm:$0xff]  ;;  %v2565_v30 = vld [vmem:[%s3823_s17 + $0x20] sm:$0xff] }
 0x503   :  { %1203 = vmatpush.bf16.msrb.mxu1 %v2568_v27 }
 0x509   :  { %v2627_v28 = vpop.permute.xlu2 %2626 }
 0x50a   :  { %v2629_v31 = vunpack.i.h.bf16 %v2627_v28  ;;  %v2628_v32 = vunpack.i.l.bf16 %v2627_v28  ;;  %v2567_v28 = vld [vmem:[%s3823_s17 + $0x30] sm:$0xff] }
 0x50b   :  { %1204 = vmatpush.bf16.msrb.mxu1 %v2567_v28 }
 0x50c   :  { %v980_v35 = vsel %vm979_vm11, %v977_v33, %v2628_v32  ;;  %v981_v36 = vsel %vm979_vm11, %v978_v34, %v2629_v31  ;;  %v2564_v31 = vld [vmem:[%s3823_s17 + $0x18] sm:$0xff]  ;;  %v2563_v32 = vld [vmem:[%s3823_s17 + $0x10] sm:$0xff]  ;;  %v2562_v33 = vld [vmem:[%s3823_s17 + $0x8] sm:$0xff] }
 0x50d   :  { %v982_v37 = vpack.c.bf16 %v981_v36, %v980_v35  ;;  %v2653_v34 = vld [vmem:[#allocation19] ss:$0 sm:$0xff] }
 0x50e   :  { %v2561_v35 = vld [vmem:[%s3823_s17] sm:$0xff] }
 0x50f   :  { %2371 = vmatmul.msk.bf16.vlgmr.msra.gmra.mxu3 %vm295_vm0, %v982_v37  ;;  %1205 = vmatpush.bf16.msrb.mxu1 %v2566_v29 }
 0x513   :  { %1206 = vmatpush.bf16.msrb.mxu1 %v2565_v30 }
 0x517   :  { %1207 = vmatpush.bf16.msrb.mxu1 %v2564_v31 }
 0x51b   :  { %1208 = vmatpush.bf16.msrb.mxu1 %v2563_v32 }
 0x51f   :  { %1209 = vmatpush.bf16.msrb.mxu1 %v2562_v33 }
 0x523   :  { %1210 = vmatpush.bf16.msrb.mxu1 %v2561_v35 }
 0x592   :  { %v1015_v40 = vpop.f32.mrf.mxu3 }
 0x593   :  { %v1016_v41 = vadd.f32 %v2650_v38, %v1015_v40 }
 0x595   :  { %v1020_v42 = vadd.f32 %v1016_v41, %v3427_v53 }
 0x597   :  { %v1024_v39 = vsel %vm295_vm0, %v1020_v42, 0.0 }
 0x598   :  { %1025 = vadd.xlane.f32.xlu0 %v1024_v39 }
 0x59a   :  { %v1017_v44 = vpop.f32.mrf.mxu3 }
 0x59b   :  { %v1018_v45 = vadd.f32 %v2650_v38, %v1017_v44 }
 0x59d   :  { %v1021_v46 = vadd.f32 %v1018_v45, %v3429_v54  ;;  %v2560_v54 = vld [vmem:[%s3821_s15 + $0x8] sm:$0xff] }
 0x59e   :  { %1108 = vmatpush.bf16.msra.mxu0 %v2560_v54 }
 0x59f   :  { %v1027_v48 = vsel %vm295_vm0, %v1021_v46, 0.0 }
 0x5a0   :  { %1028 = vadd.xlane.f32.xlu2 %v1027_v48 }
 0x5a2   :  { %1109 = vmatpush.bf16.msra.mxu0 %v2559_v60 }
 0x60b   :  { %v1026_v49 = vpop.xlane.xlu0 %1025 }
 0x60c   :  { %v1030_v50 = vmul.f32 %v1026_v49, %v3398_v10 }
 0x60e   :  { %v1032_v51 = vsub.f32 %v1020_v42, %v1030_v50 }
 0x610   :  { %v1034_v20 = vmul.f32 %v1032_v51, %v1032_v51 }
 0x612   :  { %v1036_v52 = vsel %vm295_vm0, %v1034_v20, 0.0 }
 0x613   :  { %v1029_v55 = vpop.xlane.xlu2 %1028  ;;  %1037 = vadd.xlane.f32.xlu0 %v1036_v52 }
 0x614   :  { %v1031_v53 = vmul.f32 %v1029_v55, %v3398_v10 }
 0x616   :  { %v1033_v24 = vsub.f32 %v1021_v46, %v1031_v53 }
 0x618   :  { %v1035_v56 = vmul.f32 %v1033_v24, %v1033_v24 }
 0x61a   :  { %v1039_v57 = vsel %vm295_vm0, %v1035_v56, 0.0 }
 0x61b   :  { %1040 = vadd.xlane.f32.xlu0 %v1039_v57 }
 0x686   :  { %v1038_v58 = vpop.xlane.xlu0 %1037 }
 0x687   :  { %v1042_v59 = vmul.f32 %v1038_v58, %v3398_v10 }
 0x689   :  { %v1044_v61 = vadd.f32 1e-05, %v1042_v59  ;;  %v2654_v59 = vld [vmem:[#allocation20] ss:$0 sm:$0xff] }
 0x68b   :  { %2706 = vrsqrt.f32 %v1044_v61  ;;  %vm1052_vm13 = vweird.f32 %v1044_v61 }
 0x68e   :  { %v1041_v62 = vpop.xlane.xlu0 %1040 }
 0x68f   :  { %v1043_v63 = vmul.f32 %v1041_v62, %v3398_v10 }
 0x691   :  { %v2707_v0 = vpop.eup %2706  ;;  %v1045_v1 = vadd.f32 1e-05, %v1043_v63 }
 0x692   :  { %v1047_v2 = vmul.f32 %v2707_v0, %v1044_v61  ;;  %vm1053_vm12 = vweird.f32 %v2707_v0 }
 0x693   :  { %2708 = vrsqrt.f32 %v1045_v1  ;;  %vm1054_vm14 = vmor %vm1052_vm13, %vm1053_vm12  ;;  %vm1062_vm1 = vweird.f32 %v1045_v1 }
 0x694   :  { %v1048_v3 = vmul.f32 %v2707_v0, %v1047_v2 }
 0x696   :  { %v1049_v4 = vmul.f32 0.5, %v1048_v3 }
 0x698   :  { %v1050_v5 = vsub.f32 1.5, %v1049_v4 }
 0x699   :  { %v2709_v6 = vpop.eup %2708 }
 0x69a   :  { %v1051_v7 = vmul.f32 %v2707_v0, %v1050_v5  ;;  %v1057_v8 = vmul.f32 %v2709_v6, %v1045_v1  ;;  %vm1063_vm15 = vweird.f32 %v2709_v6 }
 0x69b   :  { %vm1064_vm2 = vmor %vm1062_vm1, %vm1063_vm15 }
 0x69c   :  { %v1058_v9 = vmul.f32 %v2709_v6, %v1057_v8  ;;  %v1055_v11 = vsel %vm1054_vm14, %v2707_v0, %v1051_v7 }
 0x69d   :  { %v1066_v15 = vmul.f32 %v1055_v11, %v1032_v51 }
 0x69e   :  { %v1059_v12 = vmul.f32 0.5, %v1058_v9 }
 0x69f   :  { %v1071_v19 = vmul.f32 %v2651_v14, %v1066_v15  ;;  %v2570_v15 = vld [vmem:[%s3850_s23 + $0x18] sm:$0xff] }
 0x6a0   :  { %v1060_v13 = vsub.f32 1.5, %v1059_v12  ;;  %1307 = vmatpush.bf16.msra.mxu2 %v2570_v15 }
 0x6a1   :  { %v1076_v23 = vadd.f32 %v2652_v18, %v1071_v19 }
 0x6a2   :  { %v1061_v16 = vmul.f32 %v2709_v6, %v1060_v13 }
 0x6a4   :  { %v1065_v17 = vsel %vm1064_vm2, %v2709_v6, %v1061_v16  ;;  %v2572_v16 = vld [vmem:[%s3851_s3 + $0x18] sm:$0xff] }
 0x6a5   :  { %v1067_v21 = vmul.f32 %v1065_v17, %v1033_v24  ;;  %v2574_v17 = vld [vmem:[%s3815_s9 + $0x18] sm:$0xff]  ;;  %1343 = vmatpush.bf16.msrb.mxu3 %v2572_v16 }
 0x6a6   :  { %1379 = vmatpush.bf16.msrb.mxu0 %v2574_v17 }
 0x6a7   :  { %v1072_v22 = vmul.f32 %v2651_v14, %v1067_v21  ;;  %v2569_v21 = vld [vmem:[%s3850_s23 + $0x10] sm:$0xff]  ;;  %s3853_s23 = sld [smem:[#allocation47_spill]] }
 0x6a8   :  { %1308 = vmatpush.bf16.msra.mxu2 %v2569_v21 }
 0x6a9   :  { %v1077_v25 = vadd.f32 %v2652_v18, %v1072_v22  ;;  %v2571_v22 = vld [vmem:[%s3851_s3 + $0x10] sm:$0xff]  ;;  %s3195_s3 = smov [#allocation25]  }
 0x6aa   :  { %1344 = vmatpush.bf16.msrb.mxu3 %v2571_v22 }
 0x6ab   :  { %v1078_v26 = vpack.c.bf16 %v1077_v25, %v1076_v23 }
 0x6ad   :  { %2380 = vmatmul.msk.bf16.vlgmr.msra.gmra.mxu0 %vm295_vm0, %v1078_v26 }
 0x72a   :  { %v1111_v36 = vpop.f32.mrf.mxu0 }
 0x72b   :  { %v1112_v37 = vadd.f32 %v2653_v34, %v1111_v36 }
 0x72d   :  { %v1116_v38 = vmul.f32 %v1112_v37, %v1112_v37 }
 0x72f   :  { %v1118_v40 = vmul.f32 %v1116_v38, %v1112_v37 }
 0x731   :  { %v1120_v41 = vmul.f32 0.044715, %v1118_v40 }
 0x732   :  { %v1113_v42 = vpop.f32.mrf.mxu0 }
 0x733   :  { %v1122_v39 = vadd.f32 %v1120_v41, %v1112_v37  ;;  %v1114_v44 = vadd.f32 %v2653_v34, %v1113_v42  ;;  %v2655_v42 = vld [vmem:[#allocation22] ss:$0 sm:$0xff] }
 0x735   :  { %v1124_v45 = vmul.f32 0.7978846, %v1122_v39  ;;  %v1117_v46 = vmul.f32 %v1114_v44, %v1114_v44 }
 0x737   :  { %v1119_v48 = vmul.f32 %v1117_v46, %v1114_v44  ;;  %2710 = vtanh.f32 %v1124_v45  ;;  %v2656_v46 = vld [vmem:[#allocation23] ss:$0 sm:$0xff] }
 0x739   :  { %v1121_v49 = vmul.f32 0.044715, %v1119_v48 }
 0x73b   :  { %v1123_v50 = vadd.f32 %v1121_v49, %v1114_v44 }
 0x73d   :  { %v1125_v51 = vmul.f32 0.7978846, %v1123_v50  ;;  %v2711_v20 = vpop.eup %2710 }
 0x73e   :  { %v1128_v52 = vadd.f32 1.0, %v2711_v20 }
 0x73f   :  { %2712 = vtanh.f32 %v1125_v51 }
 0x740   :  { %v1130_v53 = vmul.f32 0.5, %v1128_v52 }
 0x742   :  { %v1132_v57 = vmul.f32 %v1130_v53, %v1112_v37 }
 0x745   :  { %v2713_v55 = vpop.eup %2712 }
 0x746   :  { %v1129_v24 = vadd.f32 1.0, %v2713_v55  ;;  %v2657_v55 = vld [vmem:[#allocation13 + $0x1] ss:$0 sm:$0xff] }
 0x748   :  { %v1131_v56 = vmul.f32 0.5, %v1129_v24 }
 0x74a   :  { %v1133_v54 = vmul.f32 %v1131_v56, %v1114_v44  ;;  %v2658_v56 = vld [vmem:[#allocation10 + $0x1] ss:$0 sm:$0xff] }
 0x74c   :  { %v1134_v58 = vpack.c.bf16 %v1133_v54, %v1132_v57  ;;  %v2659_v57 = vld [vmem:[#allocation11 + $0x1] ss:$0 sm:$0xff] }
 0x74e   :  { %1211 = vmatmul.bf16.vlgmr.msrb.gmra.mxu1 %v1134_v58 }
 0x7cb   :  { %v1212_v60 = vpop.f32.mrf.mxu1 }
 0x7cc   :  { %v1213_v61 = vadd.f32 %v2654_v59, %v1212_v60 }
 0x7ce   :  { %v1217_v62 = vadd.f32 %v1213_v61, %v1076_v23  ;;  %v2573_v23 = vld [vmem:[%s3815_s9 + $0x10] sm:$0xff] }
 0x7cf   :  { %1380 = vmatpush.bf16.msrb.mxu0 %v2573_v23 }
 0x7d0   :  { %v1221_v63 = vsel %vm295_vm0, %v1217_v62, 0.0 }
 0x7d1   :  { %1222 = vadd.xlane.f32.xlu1 %v1221_v63 }
 0x7d3   :  { %v1214_v0 = vpop.f32.mrf.mxu1 }
 0x7d4   :  { %v1215_v1 = vadd.f32 %v2654_v59, %v1214_v0 }
 0x7d6   :  { %v1218_v2 = vadd.f32 %v1215_v1, %v1077_v25 }
 0x7d8   :  { %v1224_v3 = vsel %vm295_vm0, %v1218_v2, 0.0 }
 0x7d9   :  { %1225 = vadd.xlane.f32.xlu0 %v1224_v3 }
 0x844   :  { %v1223_v4 = vpop.xlane.xlu1 %1222 }
 0x845   :  { %v1227_v5 = vmul.f32 %v1223_v4, %v3398_v10 }
 0x847   :  { %v1229_v6 = vsub.f32 %v1217_v62, %v1227_v5 }
 0x849   :  { %v1231_v7 = vmul.f32 %v1229_v6, %v1229_v6 }
 0x84b   :  { %v1233_v8 = vsel %vm295_vm0, %v1231_v7, 0.0 }
 0x84c   :  { %v1226_v9 = vpop.xlane.xlu0 %1225  ;;  %1234 = vadd.xlane.f32.xlu0 %v1233_v8 }
 0x84d   :  { %v1228_v11 = vmul.f32 %v1226_v9, %v3398_v10 }
 0x84f   :  { %v1230_v12 = vsub.f32 %v1218_v2, %v1228_v11 }
 0x851   :  { %v1232_v13 = vmul.f32 %v1230_v12, %v1230_v12 }
 0x853   :  { %v1236_v14 = vsel %vm295_vm0, %v1232_v13, 0.0 }
 0x854   :  { %1237 = vadd.xlane.f32.xlu0 %v1236_v14 }
 0x8bf   :  { %v1235_v18 = vpop.xlane.xlu0 %1234 }
 0x8c0   :  { %v1239_v19 = vmul.f32 %v1235_v18, %v3398_v10 }
 0x8c2   :  { %v1241_v25 = vadd.f32 1e-05, %v1239_v19 }
 0x8c4   :  { %2714 = vrsqrt.f32 %v1241_v25  ;;  %vm1249_vm4 = vweird.f32 %v1241_v25 }
 0x8c7   :  { %v1238_v26 = vpop.xlane.xlu0 %1237 }
 0x8c8   :  { %v1240_v27 = vmul.f32 %v1238_v26, %v3398_v10 }
 0x8ca   :  { %v2715_v28 = vpop.eup %2714  ;;  %v1242_v29 = vadd.f32 1e-05, %v1240_v27 }
 0x8cb   :  { %v1244_v30 = vmul.f32 %v2715_v28, %v1241_v25  ;;  %vm1250_vm3 = vweird.f32 %v2715_v28 }
 0x8cc   :  { %2716 = vrsqrt.f32 %v1242_v29  ;;  %vm1251_vm5 = vmor %vm1249_vm4, %vm1250_vm3  ;;  %vm1259_vm7 = vweird.f32 %v1242_v29 }
 0x8cd   :  { %v1245_v31 = vmul.f32 %v2715_v28, %v1244_v30 }
 0x8cf   :  { %v1246_v32 = vmul.f32 0.5, %v1245_v31 }
 0x8d1   :  { %v1247_v33 = vsub.f32 1.5, %v1246_v32 }
 0x8d2   :  { %v2717_v34 = vpop.eup %2716 }
 0x8d3   :  { %v1248_v35 = vmul.f32 %v2715_v28, %v1247_v33  ;;  %v1254_v36 = vmul.f32 %v2717_v34, %v1242_v29  ;;  %vm1260_vm6 = vweird.f32 %v2717_v34 }
 0x8d4   :  { %vm1261_vm12 = vmor %vm1259_vm7, %vm1260_vm6  ;;  %vm2211_vm6 = vcmask 1041409   ;;  %vm2242_vm7 = vcmask 17408  }
 0x8d5   :  { %v1255_v37 = vmul.f32 %v2717_v34, %v1254_v36  ;;  %v1252_v38 = vsel %vm1251_vm5, %v2715_v28, %v1248_v35 }
 0x8d6   :  { %v1263_v39 = vmul.f32 %v1252_v38, %v1229_v6 }
 0x8d7   :  { %v1256_v40 = vmul.f32 0.5, %v1255_v37 }
 0x8d8   :  { %v1268_v48 = vmul.f32 %v2655_v42, %v1263_v39 }
 0x8d9   :  { %v1257_v41 = vsub.f32 1.5, %v1256_v40 }
 0x8da   :  { %v3621_v51 = vadd.f32 %v2656_v46, %v1268_v48 }
 0x8db   :  { %v1258_v44 = vmul.f32 %v2717_v34, %v1257_v41 }
 0x8dd   :  { %v1262_v45 = vsel %vm1261_vm12, %v2717_v34, %v1258_v44 }
 0x8de   :  { %v1264_v49 = vmul.f32 %v1262_v45, %v1230_v12 }
 0x8e0   :  { %v1269_v50 = vmul.f32 %v2655_v42, %v1264_v49 }
 0x8e2   :  { %v3623_v20 = vadd.f32 %v2656_v46, %v1269_v50 }
 0x8e4   :  { %v1275_v52 = vpack.c.bf16 %v3623_v20, %v3621_v51 }
 0x8e6   :  { %2425 = vmatmul.msk.bf16.vlgmr.msra.gmra.mxu2 %vm295_vm0, %v1275_v52  ;;  %2438 = vmatmul.msk.bf16.vlgmr.msrb.gmra.mxu3 %vm295_vm0, %v1275_v52 }
 0x8e7   :  { %2451 = vmatmul.msk.bf16.vlgmr.msrb.gmra.mxu0 %vm295_vm0, %v1275_v52 }
 0x964   :  { %v1382_v53 = vpop.f32.mrf.mxu0 }
 0x965   :  { %v1383_v24 = vadd.f32 %v2657_v55, %v1382_v53 }
 0x967   :  { %v3630_v54 = vpack.c.bf16 %v1383_v24, %v1383_v24 }
 0x969   :  { %v1463_v58 = vsel %vm548_vm9, %v3630_v54, 0  ;;  %v1310_v59 = vpop.f32.mrf.mxu2  ;;  %v1346_v60 = vpop.f32.mrf.mxu3 }
 0x96a   :  { %v1311_v61 = vadd.f32 %v2658_v56, %v1310_v59  ;;  %v1347_v62 = vadd.f32 %v2659_v57, %v1346_v60  ;;  %1472 = vmatpush.bf16.msra.mxu0 %v1463_v58 }
 0x96c   :  { %v1387_v63 = vpack.c.bf16 %v1311_v61, %v1311_v61  ;;  %v1389_v0 = vpack.c.bf16 %v1347_v62, %v1347_v62  ;;  %v1384_v1 = vpop.f32.mrf.mxu0 }
 0x96d   :  { %v1385_v2 = vadd.f32 %v2657_v55, %v1384_v1 }
 0x96e   :  { %v1498_v3 = vunpack.c.l.b16 %v1387_v63  ;;  %v1397_v4 = vsel %vm474_vm8, %v1389_v0, 0  ;;  %v1503_v5 = vunpack.c.l.b16 %v1389_v0 }
 0x96f   :  { %v3635_v6 = vpack.c.bf16 %v1385_v2, %v1385_v2  ;;  %1406 = vmatpush.bf16.xpose.msrb.mxu2 %v1397_v4 }
 0x970   :  { %v1499_v7 = vpack.c.b16 %v1498_v3, %v1498_v3  ;;  %v1504_v8 = vpack.c.b16 %v1503_v5, %v1503_v5 }
 0x971   :  { %v1482_v9 = vsel %vm548_vm9, %v3635_v6, 0  ;;  %v1312_v11 = vpop.f32.mrf.mxu2  ;;  %v1348_v12 = vpop.f32.mrf.mxu3 }
 0x972   :  { %v1349_v13 = vadd.f32 %v2659_v57, %v1348_v12  ;;  %1491 = vmatpush.bf16.msra.mxu1 %v1482_v9  ;;  %1505 = vrot.lane.b32.xlu2 %v1504_v8, %s3191_s14  ;;  %v1313_v14 = vadd.f32 %v2658_v56, %v1312_v11  ;;  %v1584_v12 = vunpack.c.l.b16 %v3630_v54 }
 0x973   :  { %1500 = vrot.lane.b32.xlu1 %v1499_v7, %s3191_s14 }
 0x974   :  { %v1390_v15 = vpack.c.bf16 %v1349_v13, %v1349_v13  ;;  %v1388_v18 = vpack.c.bf16 %v1313_v14, %v1313_v14  ;;  %v3678_v14 = vpack.c.b16 %v1584_v12, %v1584_v12 }
 0x976   :  { %v1416_v16 = vsel %vm474_vm8, %v1390_v15, 0  ;;  %v1532_v17 = vunpack.c.l.b16 %v1390_v15  ;;  %2452 = vmatmul.msk.bf16.vlgmr.msrb.gmra.mxu2 %vm474_vm8, %v1387_v63  ;;  %v1527_v21 = vunpack.c.l.b16 %v1388_v18 }
 0x977   :  { %1425 = vmatpush.bf16.xpose.msra.mxu3 %v1416_v16 }
 0x978   :  { %v1533_v19 = vpack.c.b16 %v1532_v17, %v1532_v17  ;;  %v1528_v22 = vpack.c.b16 %v1527_v21, %v1527_v21 }
 0x97a   :  { %1534 = vrot.lane.b32.xlu0 %v1533_v19, %s3191_s14  ;;  %1633 = vrot.lane.b32.xlu2 %v1504_v8, %s3192_s27 }
 0x97b   :  { %1749 = vrot.lane.b32.xlu1 %v1504_v8, %s3193_s18 }
 0x97e   :  { %2453 = vmatmul.msk.bf16.vlgmr.msra.gmra.mxu3 %vm474_vm8, %v1388_v18 }
 0x982   :  { %1529 = vrot.lane.b32.xlu0 %v1528_v22, %s3191_s14  ;;  %1631 = vrot.lane.b32.xlu2 %v1499_v7, %s3192_s27 }
 0x983   :  { %1770 = vrot.lane.b32.xlu1 %v1528_v22, %s3193_s18 }
 0x98a   :  { %1656 = vrot.lane.b32.xlu0 %v1533_v19, %s3192_s27  ;;  %1772 = vrot.lane.b32.xlu2 %v1533_v19, %s3193_s18 }
 0x992   :  { %1654 = vrot.lane.b32.xlu0 %v1528_v22, %s3192_s27 }
 0x99a   :  { %1747 = vrot.lane.b32.xlu0 %v1499_v7, %s3193_s18 }
 0x9cc   :  { %v1506_v23 = vpop.permute.xlu2 %1505 }
 0x9cd   :  { %v1511_v25 = vsel %vm474_vm8, %v1506_v23, 0 }
 0x9ce   :  { %1520 = vmatpush.bf16.xpose.msra.mxu2 %v1511_v25 }
 0x9d4   :  { %v1634_v26 = vpop.permute.xlu2 %1633 }
 0x9d5   :  { %v1639_v27 = vsel %vm474_vm8, %v1634_v26, 0 }
 0x9d6   :  { %1648 = vmatpush.bf16.xpose.msrb.mxu2 %v1639_v27 }
 0x9dc   :  { %v1632_v33 = vpop.permute.xlu2 %1631 }
 0x9e4   :  { %v1773_v37 = vpop.permute.xlu2 %1772 }
 0x9e5   :  { %v1501_v28 = vpop.permute.xlu1 %1500  ;;  %v1778_v42 = vsel %vm474_vm8, %v1773_v37, 0 }
 0x9e6   :  { %2456 = vmatmul.msk.bf16.vlgmr.msra.gmra.mxu2 %vm474_vm8, %v1501_v28 }
 0x9ec   :  { %v1535_v29 = vpop.permute.xlu0 %1534 }
 0x9ed   :  { %v1540_v30 = vsel %vm474_vm8, %v1535_v29, 0  ;;  %v1750_v31 = vpop.permute.xlu1 %1749 }
 0x9ee   :  { %v1755_v32 = vsel %vm474_vm8, %v1750_v31, 0  ;;  %1549 = vmatpush.bf16.xpose.msrb.mxu3 %v1540_v30 }
 0x9ef   :  { %1764 = vmatpush.bf16.xpose.msra.mxu2 %v1755_v32 }
 0x9f4   :  { %v1530_v34 = vpop.permute.xlu0 %1529 }
 0x9f5   :  { %2457 = vmatmul.msk.bf16.vlgmr.msrb.gmra.mxu3 %vm474_vm8, %v1530_v34  ;;  %v1771_v53 = vpop.permute.xlu1 %1770 }
 0x9f6   :  { %2460 = vmatmul.msk.bf16.vlgmr.msrb.gmra.mxu2 %vm474_vm8, %v1632_v33 }
 0x9f9   :  { %v1408_v35 = vpop.f32.mrf.mxu2 }
 0x9fa   :  { %v1431_v36 = vmul.f32 0.35355338, %v1408_v35  ;;  %v1608_v35 = vunpack.c.l.b16 %v3635_v6 }
 0x9fc   :  { %v1657_v38 = vpop.permute.xlu0 %1656  ;;  %v1433_v40 = vadd.f32 %v1431_v36, %v3467_v43  ;;  %v1609_v36 = vpack.c.b16 %v1608_v35, %v1608_v35 }
 0x9fd   :  { %v1662_v41 = vsel %vm474_vm8, %v1657_v38, 0 }
 0x9fe   :  { %1671 = vmatpush.bf16.xpose.msra.mxu3 %v1662_v41  ;;  %v1435_v39 = vsel %vm474_vm8, %v1433_v40, -inf }
 0x9ff   :  { %1436 = vmax.xlane.f32.xlu2 %v1435_v39 }
 0xa01   :  { %v1410_v44 = vpop.f32.mrf.mxu2  ;;  %v1427_v45 = vpop.f32.mrf.mxu3 }
 0xa02   :  { %v1432_v46 = vmul.f32 0.35355338, %v1427_v45 }
 0xa04   :  { %v1655_v48 = vpop.permute.xlu0 %1654  ;;  %v1434_v49 = vadd.f32 %v1432_v46, %v3469_v47 }
 0xa05   :  { %2461 = vmatmul.msk.bf16.vlgmr.msra.gmra.mxu3 %vm474_vm8, %v1655_v48 }
 0xa06   :  { %1787 = vmatpush.bf16.xpose.msrb.mxu3 %v1778_v42  ;;  %v1438_v50 = vsel %vm474_vm8, %v1434_v49, -inf }
 0xa07   :  { %1439 = vmax.xlane.f32.xlu0 %v1438_v50 }
 0xa09   :  { %v1429_v52 = vpop.f32.mrf.mxu3 }
 0xa0c   :  { %v1748_v55 = vpop.permute.xlu0 %1747 }
 0xa0d   :  { %2464 = vmatmul.msk.bf16.vlgmr.msra.gmra.mxu2 %vm474_vm8, %v1748_v55 }
 0xa15   :  { %2465 = vmatmul.msk.bf16.vlgmr.msrb.gmra.mxu3 %vm474_vm8, %v1771_v53 }
 0xa69   :  { %v1522_v24 = vpop.f32.mrf.mxu2 }
 0xa6a   :  { %v1555_v56 = vmul.f32 0.35355338, %v1522_v24 }
 0xa6c   :  { %v1557_v57 = vadd.f32 %v1555_v56, %v3467_v43 }
 0xa6e   :  { %v1559_v58 = vsel %vm474_vm8, %v1557_v57, -inf }
 0xa6f   :  { %1560 = vmax.xlane.f32.xlu1 %v1559_v58 }
 0xa71   :  { %v1524_v59 = vpop.f32.mrf.mxu2 }
 0xa72   :  { %v1437_v60 = vpop.xlane.xlu2 %1436 }
 0xa73   :  { %v1441_v61 = vsub.f32 %v1433_v40, %v1437_v60 }
 0xa75   :  { %v1443_v62 = vmul.f32 1.442695, %v1441_v61 }
 0xa77   :  { %2718 = vpow2.f32 %v1443_v62 }
 0xa78   :  { %v1551_v63 = vpop.f32.mrf.mxu3 }
 0xa79   :  { %v1556_v0 = vmul.f32 0.35355338, %v1551_v63  ;;  %v1650_v1 = vpop.f32.mrf.mxu2 }
 0xa7a   :  { %v1677_v2 = vmul.f32 0.35355338, %v1650_v1  ;;  %v1440_v26 = vpop.xlane.xlu0 %1439 }
 0xa7b   :  { %v1558_v3 = vadd.f32 %v1556_v0, %v3469_v47  ;;  %v1442_v28 = vsub.f32 %v1434_v49, %v1440_v26 }
 0xa7c   :  { %v1679_v4 = vadd.f32 %v1677_v2, %v3467_v43 }
 0xa7d   :  { %v1562_v5 = vsel %vm474_vm8, %v1558_v3, -inf  ;;  %v2719_v11 = vpop.eup %2718  ;;  %v1445_v30 = vmul.f32 1.442695, %v1442_v28 }
 0xa7e   :  { %1563 = vmax.xlane.f32.xlu2 %v1562_v5  ;;  %v1681_v7 = vsel %vm474_vm8, %v1679_v4, -inf  ;;  %v1447_v13 = vsel %vm474_vm8, %v2719_v11, 0.0 }
 0xa7f   :  { %1682 = vmax.xlane.f32.xlu0 %v1681_v7  ;;  %2720 = vpow2.f32 %v1445_v30 }
 0xa80   :  { %v1553_v8 = vpop.f32.mrf.mxu3 }
 0xa81   :  { %v1652_v9 = vpop.f32.mrf.mxu2 }
 0xa85   :  { %v2721_v31 = vpop.eup %2720 }
 0xa86   :  { %1448 = vadd.xlane.f32.xlu2 %v1447_v13  ;;  %v1450_v33 = vsel %vm474_vm8, %v2721_v31, 0.0 }
 0xa88   :  { %1586 = vrot.lane.b32.xlu1 %v3678_v14, %s3191_s14  ;;  %v1673_v15 = vpop.f32.mrf.mxu3 }
 0xa89   :  { %v1678_v16 = vmul.f32 0.35355338, %v1673_v15 }
 0xa8b   :  { %v1680_v17 = vadd.f32 %v1678_v16, %v3469_v47 }
 0xa8d   :  { %v1684_v18 = vsel %vm474_vm8, %v1680_v17, -inf }
 0xa8e   :  { %1685 = vmax.xlane.f32.xlu2 %v1684_v18 }
 0xa90   :  { %v1675_v19 = vpop.f32.mrf.mxu3  ;;  %v1766_v21 = vpop.f32.mrf.mxu2 }
 0xa91   :  { %v1793_v32 = vmul.f32 0.35355338, %v1766_v21 }
 0xa93   :  { %v3690_v34 = vadd.f32 %v1793_v32, %v3467_v43 }
 0xa98   :  { %v1768_v22 = vpop.f32.mrf.mxu2  ;;  %v1789_v23 = vpop.f32.mrf.mxu3 }
 0xa99   :  { %v1794_v54 = vmul.f32 0.35355338, %v1789_v23 }
 0xa9b   :  { %v1796_v25 = vadd.f32 %v1794_v54, %v3469_v47  ;;  %v1797_v47 = vsel %vm474_vm8, %v3690_v34, -inf }
 0xa9d   :  { %v1800_v27 = vsel %vm474_vm8, %v1796_v25, -inf }
 0xa9e   :  { %1801 = vmax.xlane.f32.xlu0 %v1800_v27 }
 0xaa0   :  { %v1791_v29 = vpop.f32.mrf.mxu3 }
 0xaa6   :  { %1705 = vrot.lane.b32.xlu2 %v3678_v14, %s3192_s27 }
 0xab2   :  { %1451 = vadd.xlane.f32.xlu1 %v1450_v33 }
 0xaba   :  { %1798 = vmax.xlane.f32.xlu1 %v1797_v47 }
 0xad3   :  { %1726 = vrot.lane.b32.xlu1 %v1609_v36, %s3192_s27 }
 0xae2   :  { %v1561_v37 = vpop.xlane.xlu1 %1560 }
 0xae3   :  { %v1565_v38 = vsub.f32 %v1557_v57, %v1561_v37 }
 0xae5   :  { %v1567_v40 = vmul.f32 1.442695, %v1565_v38 }
 0xae7   :  { %2722 = vpow2.f32 %v1567_v40 }
 0xaed   :  { %v2723_v41 = vpop.eup %2722 }
 0xaee   :  { %v1571_v42 = vsel %vm474_vm8, %v2723_v41, 0.0 }
 0xaef   :  { %1572 = vadd.xlane.f32.xlu0 %v1571_v42 }
 0xaf1   :  { %v1564_v39 = vpop.xlane.xlu2 %1563 }
 0xaf2   :  { %v1566_v43 = vsub.f32 %v1558_v3, %v1564_v39  ;;  %v1683_v44 = vpop.xlane.xlu0 %1682 }
 0xaf3   :  { %v1687_v46 = vsub.f32 %v1679_v4, %v1683_v44 }
 0xaf4   :  { %v1569_v45 = vmul.f32 1.442695, %v1566_v43 }
 0xaf5   :  { %v1689_v48 = vmul.f32 1.442695, %v1687_v46 }
 0xaf6   :  { %2724 = vpow2.f32 %v1569_v45 }
 0xaf9   :  { %v1449_v49 = vpop.xlane.xlu2 %1448 }
 0xafa   :  { %2726 = vrcp.f32 %v1449_v49  ;;  %v1587_v6 = vpop.permute.xlu1 %1586 }
 0xafb   :  { %v1592_v50 = vsel %vm548_vm9, %v1587_v6, 0  ;;  %2728 = vpow2.f32 %v1689_v48 }
 0xafc   :  { %v2725_v52 = vpop.eup %2724  ;;  %1601 = vmatpush.bf16.msrb.mxu0 %v1592_v50 }
 0xafd   :  { %v1574_v55 = vsel %vm474_vm8, %v2725_v52, 0.0 }
 0xafe   :  { %1575 = vadd.xlane.f32.xlu2 %v1574_v55 }
 0xb00   :  { %v2727_v53 = vpop.eup %2726 }
 0xb01   :  { %v1455_v24 = vmul.f32 %v2727_v53, %v2719_v11  ;;  %v1686_v56 = vpop.xlane.xlu2 %1685  ;;  %v2729_v57 = vpop.eup %2728 }
 0xb02   :  { %v1688_v58 = vsub.f32 %v1680_v17, %v1686_v56  ;;  %v1693_v61 = vsel %vm474_vm8, %v2729_v57, 0.0 }
 0xb03   :  { %v1457_v59 = vpack.c.bf16 %v1455_v24, %v1455_v24  ;;  %1610 = vrot.lane.b32.xlu0 %v1609_v36, %s3191_s14 }
 0xb04   :  { %v1691_v60 = vmul.f32 1.442695, %v1688_v58 }
 0xb05   :  { %2454 = vmatmul.msk.bf16.vlgmr.msra.gmra.mxu0 %vm474_vm8, %v1457_v59 }
 0xb06   :  { %2730 = vpow2.f32 %v1691_v60  ;;  %1694 = vadd.xlane.f32.xlu2 %v1693_v61 }
 0xb09   :  { %v1706_v62 = vpop.permute.xlu2 %1705 }
 0xb0a   :  { %v1711_v63 = vsel %vm548_vm9, %v1706_v62, 0 }
 0xb0b   :  { %1720 = vmatpush.bf16.msra.mxu0 %v1711_v63 }
 0xb0c   :  { %v2731_v0 = vpop.eup %2730 }
 0xb0d   :  { %v1696_v1 = vsel %vm474_vm8, %v2731_v0, 0.0 }
 0xb0e   :  { %1697 = vadd.xlane.f32.xlu2 %v1696_v1 }
 0xb11   :  { %v1802_v2 = vpop.xlane.xlu0 %1801 }
 0xb12   :  { %v1804_v3 = vsub.f32 %v1796_v25, %v1802_v2 }
 0xb14   :  { %v1807_v4 = vmul.f32 1.442695, %v1804_v3 }
 0xb16   :  { %2732 = vpow2.f32 %v1807_v4 }
 0xb1c   :  { %v2733_v5 = vpop.eup %2732 }
 0xb1d   :  { %v1812_v7 = vsel %vm474_vm8, %v2733_v5, 0.0 }
 0xb1e   :  { %1813 = vadd.xlane.f32.xlu1 %v1812_v7  ;;  %v2576_v7 = vld [vmem:[%s3817_s11 + $0x18] sm:$0xff] }
 0xb1f   :  { %1925 = vmatpush.bf16.msrb.mxu2 %v2576_v7 }
 0xb25   :  { %v1452_v8 = vpop.xlane.xlu1 %1451 }
 0xb26   :  { %2734 = vrcp.f32 %v1452_v8  ;;  %1821 = vrot.lane.b32.xlu2 %v3678_v14, %s3193_s18  ;;  %v2575_v8 = vld [vmem:[%s3817_s11 + $0x10] sm:$0xff]  ;;  %s2285_s11 = sshll.u32 %s3195_s3, 4  ;;  %s2286_s11 = int_to_ptr.vmem [resolvable:$true] %s2285_s11 }
 0xb27   :  { %1926 = vmatpush.bf16.msrb.mxu2 %v2575_v8 }
 0xb2c   :  { %v2735_v9 = vpop.eup %2734 }
 0xb2d   :  { %v1456_v11 = vmul.f32 %v2735_v9, %v2721_v31  ;;  %v1799_v12 = vpop.xlane.xlu1 %1798 }
 0xb2e   :  { %v1803_v13 = vsub.f32 %v3690_v34, %v1799_v12  ;;  %1842 = vrot.lane.b32.xlu2 %v1609_v36, %s3193_s18  ;;  %s3854_s18 = sld [smem:[#allocation48_spill]] }
 0xb2f   :  { %v1458_v15 = vpack.c.bf16 %v1456_v11, %v1456_v11 }
 0xb30   :  { %v1805_v16 = vmul.f32 1.442695, %v1803_v13 }
 0xb31   :  { %2455 = vmatmul.msk.bf16.vlgmr.msra.gmra.mxu1 %vm474_vm8, %v1458_v15 }
 0xb32   :  { %2736 = vpow2.f32 %v1805_v16 }
 0xb38   :  { %v2737_v17 = vpop.eup %2736 }
 0xb39   :  { %v1809_v18 = vsel %vm474_vm8, %v2737_v17, 0.0 }
 0xb3a   :  { %1810 = vadd.xlane.f32.xlu0 %v1809_v18 }
 0xb45   :  { %v1727_v54 = vpop.permute.xlu1 %1726 }
 0xb46   :  { %v1732_v27 = vsel %vm548_vm9, %v1727_v54, 0 }
 0xb62   :  { %v1573_v19 = vpop.xlane.xlu0 %1572 }
 0xb63   :  { %2738 = vrcp.f32 %v1573_v19 }
 0xb69   :  { %v2739_v21 = vpop.eup %2738 }
 0xb6a   :  { %v1579_v14 = vmul.f32 %v2739_v21, %v2723_v41 }
 0xb6c   :  { %v1581_v22 = vpack.c.bf16 %v1579_v14, %v1579_v14 }
 0xb6e   :  { %2458 = vmatmul.msk.bf16.vlgmr.msrb.gmra.mxu0 %vm474_vm8, %v1581_v22 }
 0xb71   :  { %v1576_v23 = vpop.xlane.xlu2 %1575 }
 0xb72   :  { %2740 = vrcp.f32 %v1576_v23 }
 0xb75   :  { %v1611_v25 = vpop.permute.xlu0 %1610 }
 0xb76   :  { %v1616_v26 = vsel %vm548_vm9, %v1611_v25, 0 }
 0xb77   :  { %1625 = vmatpush.bf16.msrb.mxu1 %v1616_v26 }
 0xb78   :  { %v2741_v28 = vpop.eup %2740 }
 0xb79   :  { %v1580_v29 = vmul.f32 %v2741_v28, %v2725_v52  ;;  %v1695_v30 = vpop.xlane.xlu2 %1694 }
 0xb7a   :  { %2742 = vrcp.f32 %v1695_v30 }
 0xb7b   :  { %1741 = vmatpush.bf16.msra.mxu1 %v1732_v27  ;;  %v1582_v31 = vpack.c.bf16 %v1580_v29, %v1580_v29  ;;  %v2660_v27 = vld [vmem:[#allocation14 + $0x1] ss:$0 sm:$0xff] }
 0xb7d   :  { %2459 = vmatmul.msk.bf16.vlgmr.msrb.gmra.mxu1 %vm474_vm8, %v1582_v31 }
 0xb80   :  { %v2743_v32 = vpop.eup %2742 }
 0xb81   :  { %v1701_v33 = vmul.f32 %v2743_v32, %v2729_v57  ;;  %v1698_v34 = vpop.xlane.xlu2 %1697 }
 0xb82   :  { %2744 = vrcp.f32 %v1698_v34  ;;  %v1474_v47 = vpop.f32.mrf.mxu0 }
 0xb83   :  { %v1703_v35 = vpack.c.bf16 %v1701_v33, %v1701_v33 }
 0xb85   :  { %2462 = vmatmul.msk.bf16.vlgmr.msra.gmra.mxu0 %vm474_vm8, %v1703_v35 }
 0xb88   :  { %v2745_v36 = vpop.eup %2744 }
 0xb89   :  { %v1702_v37 = vmul.f32 %v2745_v36, %v2731_v0  ;;  %v1822_v38 = vpop.permute.xlu2 %1821 }
 0xb8a   :  { %v1827_v40 = vsel %vm548_vm9, %v1822_v38, 0  ;;  %v1476_v41 = vpop.f32.mrf.mxu0 }
 0xb8b   :  { %v1704_v42 = vpack.c.bf16 %v1702_v37, %v1702_v37  ;;  %1836 = vmatpush.bf16.msrb.mxu0 %v1827_v40 }
 0xb8d   :  { %2463 = vmatmul.msk.bf16.vlgmr.msra.gmra.mxu1 %vm474_vm8, %v1704_v42 }
 0xb91   :  { %v1843_v39 = vpop.permute.xlu2 %1842  ;;  %v1814_v43 = vpop.xlane.xlu1 %1813 }
 0xb92   :  { %v1848_v44 = vsel %vm548_vm9, %v1843_v39, 0  ;;  %2746 = vrcp.f32 %v1814_v43 }
 0xb93   :  { %1857 = vmatpush.bf16.msrb.mxu1 %v1848_v44 }
 0xb98   :  { %v2747_v45 = vpop.eup %2746 }
 0xb99   :  { %v1818_v46 = vmul.f32 %v2747_v45, %v2733_v5 }
 0xb9b   :  { %v1820_v48 = vpack.c.bf16 %v1818_v46, %v1818_v46  ;;  %v2577_v46 = vld [vmem:[%s3821_s15 + $0x10] sm:$0xff] }
 0xb9d   :  { %2467 = vmatmul.msk.bf16.vlgmr.msrb.gmra.mxu1 %vm474_vm8, %v1820_v48 }
 0xbad   :  { %v1811_v49 = vpop.xlane.xlu0 %1810 }
 0xbae   :  { %2748 = vrcp.f32 %v1811_v49  ;;  %v1493_v6 = vpop.f32.mrf.mxu1 }
 0xbb4   :  { %v2749_v50 = vpop.eup %2748 }
 0xbb5   :  { %v1817_v52 = vmul.f32 %v2749_v50, %v2737_v17 }
 0xbb6   :  { %v1495_v55 = vpop.f32.mrf.mxu1 }
 0xbb7   :  { %v1819_v53 = vpack.c.bf16 %v1817_v52, %v1817_v52 }
 0xbb9   :  { %2466 = vmatmul.msk.bf16.vlgmr.msrb.gmra.mxu0 %vm474_vm8, %v1819_v53 }
 0xbeb   :  { %v1603_v24 = vpop.f32.mrf.mxu0 }
 0xbf3   :  { %v1605_v56 = vpop.f32.mrf.mxu0 }
 0xbfa   :  { %v1627_v57 = vpop.f32.mrf.mxu1 }
 0xbfb   :  { %v2630_v58 = vpack.i.bf16 %v1627_v57, %v1603_v24 }
 0xbfd   :  { %2631 = vrot.lane.b32.xlu2 %v2630_v58, %s3182_s12  ;;  %s2287_s12 = sshll.u32 %s3853_s23, 4  ;;  %s2288_s12 = int_to_ptr.hbm [resolvable:$true] %s2287_s12 }
 0xc02   :  { %v1629_v59 = vpop.f32.mrf.mxu1  ;;  %v1722_v60 = vpop.f32.mrf.mxu0 }
 0xc0a   :  { %v1724_v61 = vpop.f32.mrf.mxu0  ;;  %v1743_v62 = vpop.f32.mrf.mxu1 }
 0xc0b   :  { %v2635_v63 = vpack.i.bf16 %v1743_v62, %v1722_v60 }
 0xc0d   :  { %2636 = vrot.lane.b32.xlu0 %v2635_v63, %s3175_s29  ;;  %s3197_s29 = smov [#allocation26]  }
 0xc0e   :  { %s2296_s14 = sshll.u32 %s3197_s29, 4  ;;  %s2297_s14 = int_to_ptr.vmem [resolvable:$true] %s2296_s14 }
 0xc12   :  { %v1745_v0 = vpop.f32.mrf.mxu1 }
 0xc13   :  { %v2661_v0 = vld [vmem:[#allocation16 + $0x1] ss:$0 sm:$0xff] }
 0xc1a   :  { %v1859_v1 = vpop.f32.mrf.mxu1 }
 0xc22   :  { %v1861_v2 = vpop.f32.mrf.mxu1 }
 0xc36   :  { %v1838_v3 = vpop.f32.mrf.mxu0 }
 0xc37   :  { %v2640_v4 = vpack.i.bf16 %v1859_v1, %v1838_v3 }
 0xc39   :  { %2641 = vrot.lane.b32.xlu2 %v2640_v4, %s3194_s28  ;;  %v2662_v4 = vld [vmem:[#allocation17 + $0x1] ss:$0 sm:$0xff]  ;;  %s2298_s28 = sshll.u32 %s3854_s18, 4  ;;  %s2299_s28 = int_to_ptr.hbm [resolvable:$true] %s2298_s28 }
 0xc3e   :  { %v1840_v5 = vpop.f32.mrf.mxu0 }
 0xc57   :  { %v2632_v9 = vpop.permute.xlu2 %2631 }
 0xc58   :  { %v2634_v12 = vunpack.i.h.bf16 %v2632_v9  ;;  %v2633_v13 = vunpack.i.l.bf16 %v2632_v9 }
 0xc5a   :  { %v1888_v18 = vsel %vm474_vm8, %v1493_v6, %v2634_v12  ;;  %v1887_v19 = vsel %vm474_vm8, %v1474_v47, %v2633_v13  ;;  %v2586_v13 = vld [vmem:[%s3823_s17 + $0x78] sm:$0xff] }
 0xc5b   :  { %2122 = vmatpush.bf16.msra.mxu0 %v2586_v13 }
 0xc7f   :  { %v2637_v11 = vpop.permute.xlu0 %2636 }
 0xc80   :  { %v2639_v15 = vunpack.i.h.bf16 %v2637_v11  ;;  %v2638_v16 = vunpack.i.l.bf16 %v2637_v11 }
 0xc82   :  { %v1890_v22 = vsel %vm976_vm10, %v1888_v18, %v2639_v15  ;;  %v1889_v23 = vsel %vm976_vm10, %v1887_v19, %v2638_v16  ;;  %v2585_v15 = vld [vmem:[%s3823_s17 + $0x70] sm:$0xff]  ;;  %v2584_v16 = vld [vmem:[%s3823_s17 + $0x68] sm:$0xff]  ;;  %v2582_v18 = vld [vmem:[%s3823_s17 + $0x58] sm:$0xff] }
 0xc83   :  { %2123 = vmatpush.bf16.msra.mxu0 %v2585_v15  ;;  %v2581_v19 = vld [vmem:[%s3823_s17 + $0x50] sm:$0xff] }
 0xc87   :  { %2124 = vmatpush.bf16.msra.mxu0 %v2584_v16 }
 0xc93   :  { %v2642_v17 = vpop.permute.xlu2 %2641 }
 0xc94   :  { %v2644_v21 = vunpack.i.h.bf16 %v2642_v17  ;;  %v2643_v14 = vunpack.i.l.bf16 %v2642_v17  ;;  %v2583_v17 = vld [vmem:[%s3823_s17 + $0x60] sm:$0xff] }
 0xc95   :  { %2125 = vmatpush.bf16.msra.mxu0 %v2583_v17 }
 0xc96   :  { %v1892_v54 = vsel %vm979_vm11, %v1890_v22, %v2644_v21  ;;  %v1891_v25 = vsel %vm979_vm11, %v1889_v23, %v2643_v14  ;;  %v2580_v21 = vld [vmem:[%s3823_s17 + $0x48] sm:$0xff]  ;;  %v2663_v14 = vld [vmem:[#allocation19 + $0x1] ss:$0 sm:$0xff] }
 0xc97   :  { %v1893_v26 = vpack.c.bf16 %v1892_v54, %v1891_v25  ;;  %v2579_v22 = vld [vmem:[%s3823_s17 + $0x40] sm:$0xff] }
 0xc99   :  { %2480 = vmatmul.msk.bf16.vlgmr.msrb.gmra.mxu2 %vm295_vm0, %v1893_v26  ;;  %2126 = vmatpush.bf16.msra.mxu0 %v2582_v18  ;;  %v2665_v18 = vld [vmem:[#allocation22 + $0x1] ss:$0 sm:$0xff] }
 0xc9d   :  { %2127 = vmatpush.bf16.msra.mxu0 %v2581_v19 }
 0xca1   :  { %2128 = vmatpush.bf16.msra.mxu0 %v2580_v21 }
 0xca5   :  { %2129 = vmatpush.bf16.msra.mxu0 %v2579_v22 }
 0xd1c   :  { %v1928_v28 = vpop.f32.mrf.mxu2 }
 0xd1d   :  { %v1929_v29 = vadd.f32 %v2660_v27, %v1928_v28 }
 0xd1f   :  { %v1933_v30 = vadd.f32 %v1929_v29, %v3621_v51 }
 0xd21   :  { %v1939_v31 = vsel %vm295_vm0, %v1933_v30, 0.0 }
 0xd22   :  { %1940 = vadd.xlane.f32.xlu1 %v1939_v31 }
 0xd24   :  { %v1930_v32 = vpop.f32.mrf.mxu2 }
 0xd25   :  { %v1931_v33 = vadd.f32 %v2660_v27, %v1930_v32 }
 0xd27   :  { %v1934_v34 = vadd.f32 %v1931_v33, %v3623_v20  ;;  %v2578_v20 = vld [vmem:[%s3821_s15 + $0x18] sm:$0xff] }
 0xd28   :  { %2025 = vmatpush.bf16.msra.mxu3 %v2578_v20 }
 0xd29   :  { %v1942_v47 = vsel %vm295_vm0, %v1934_v34, 0.0 }
 0xd2a   :  { %1943 = vadd.xlane.f32.xlu2 %v1942_v47 }
 0xd2c   :  { %2026 = vmatpush.bf16.msra.mxu3 %v2577_v46 }
 0xd95   :  { %v1941_v35 = vpop.xlane.xlu1 %1940 }
 0xd96   :  { %v1945_v36 = vmul.f32 %v1941_v35, %v3398_v10 }
 0xd98   :  { %v1947_v37 = vsub.f32 %v1933_v30, %v1945_v36 }
 0xd9a   :  { %v1949_v38 = vmul.f32 %v1947_v37, %v1947_v37 }
 0xd9c   :  { %v1951_v40 = vsel %vm295_vm0, %v1949_v38, 0.0 }
 0xd9d   :  { %v1944_v41 = vpop.xlane.xlu2 %1943  ;;  %1952 = vadd.xlane.f32.xlu1 %v1951_v40 }
 0xd9e   :  { %v1946_v51 = vmul.f32 %v1944_v41, %v3398_v10 }
 0xda0   :  { %v1948_v42 = vsub.f32 %v1934_v34, %v1946_v51 }
 0xda2   :  { %v1950_v39 = vmul.f32 %v1948_v42, %v1948_v42 }
 0xda4   :  { %v1954_v43 = vsel %vm295_vm0, %v1950_v39, 0.0 }
 0xda5   :  { %1955 = vadd.xlane.f32.xlu0 %v1954_v43 }
 0xe10   :  { %v1953_v44 = vpop.xlane.xlu1 %1952 }
 0xe11   :  { %v1957_v45 = vmul.f32 %v1953_v44, %v3398_v10  ;;  %v2664_v44 = vld [vmem:[#allocation20 + $0x1] ss:$0 sm:$0xff] }
 0xe13   :  { %v1959_v48 = vadd.f32 1e-05, %v1957_v45 }
 0xe15   :  { %2750 = vrsqrt.f32 %v1959_v48  ;;  %vm1967_vm9 = vweird.f32 %v1959_v48 }
 0xe18   :  { %v1956_v49 = vpop.xlane.xlu0 %1955 }
 0xe19   :  { %v1958_v6 = vmul.f32 %v1956_v49, %v3398_v10 }
 0xe1b   :  { %v2751_v50 = vpop.eup %2750  ;;  %v1960_v52 = vadd.f32 1e-05, %v1958_v6 }
 0xe1c   :  { %v1962_v55 = vmul.f32 %v2751_v50, %v1959_v48  ;;  %vm1968_vm8 = vweird.f32 %v2751_v50 }
 0xe1d   :  { %2752 = vrsqrt.f32 %v1960_v52  ;;  %vm1969_vm10 = vmor %vm1967_vm9, %vm1968_vm8  ;;  %vm1977_vm13 = vweird.f32 %v1960_v52  ;;  %vm2278_vm8 = vcmask 0  }
 0xe1e   :  { %v1963_v53 = vmul.f32 %v2751_v50, %v1962_v55 }
 0xe20   :  { %v1964_v24 = vmul.f32 0.5, %v1963_v53 }
 0xe22   :  { %v1965_v56 = vsub.f32 1.5, %v1964_v24 }
 0xe23   :  { %v2753_v57 = vpop.eup %2752 }
 0xe24   :  { %v1966_v58 = vmul.f32 %v2751_v50, %v1965_v56  ;;  %v1972_v59 = vmul.f32 %v2753_v57, %v1960_v52  ;;  %vm1978_vm11 = vweird.f32 %v2753_v57 }
 0xe25   :  { %vm1979_vm14 = vmor %vm1977_vm13, %vm1978_vm11 }
 0xe26   :  { %v1973_v60 = vmul.f32 %v2753_v57, %v1972_v59  ;;  %v1970_v61 = vsel %vm1969_vm10, %v2751_v50, %v1966_v58 }
 0xe27   :  { %v1981_v1 = vmul.f32 %v1970_v61, %v1947_v37 }
 0xe28   :  { %v1974_v62 = vmul.f32 0.5, %v1973_v60 }
 0xe29   :  { %v1986_v5 = vmul.f32 %v2661_v0, %v1981_v1 }
 0xe2a   :  { %v1975_v63 = vsub.f32 1.5, %v1974_v62 }
 0xe2b   :  { %v1991_v9 = vadd.f32 %v2662_v4, %v1986_v5 }
 0xe2c   :  { %v1976_v2 = vmul.f32 %v2753_v57, %v1975_v63 }
 0xe2e   :  { %v1980_v3 = vsel %vm1979_vm14, %v2753_v57, %v1976_v2  ;;  %v2588_v2 = vld [vmem:[%s3827_s21 + $0x8] sm:$0xff] }
 0xe2f   :  { %v1982_v7 = vmul.f32 %v1980_v3, %v1948_v42  ;;  %2235 = vmatpush.bf16.msra.mxu1 %v2588_v2  ;;  %v2587_v3 = vld [vmem:[%s3827_s21] sm:$0xff] }
 0xe31   :  { %v1987_v8 = vmul.f32 %v2661_v0, %v1982_v7 }
 0xe33   :  { %v1992_v11 = vadd.f32 %v2662_v4, %v1987_v8  ;;  %2236 = vmatpush.bf16.msra.mxu1 %v2587_v3 }
 0xe35   :  { %v1993_v12 = vpack.c.bf16 %v1992_v11, %v1991_v9 }
 0xe37   :  { %2493 = vmatmul.msk.bf16.vlgmr.msra.gmra.mxu3 %vm295_vm0, %v1993_v12 }
 0xeba   :  { %v2028_v23 = vpop.f32.mrf.mxu3 }
 0xebb   :  { %v2029_v54 = vadd.f32 %v2663_v14, %v2028_v23 }
 0xebd   :  { %v2033_v25 = vmul.f32 %v2029_v54, %v2029_v54 }
 0xebf   :  { %v2035_v26 = vmul.f32 %v2033_v25, %v2029_v54 }
 0xec1   :  { %v2037_v27 = vmul.f32 0.044715, %v2035_v26 }
 0xec2   :  { %v2030_v28 = vpop.f32.mrf.mxu3 }
 0xec3   :  { %v2039_v29 = vadd.f32 %v2037_v27, %v2029_v54  ;;  %v2031_v30 = vadd.f32 %v2663_v14, %v2030_v28  ;;  %v2666_v14 = vld [vmem:[#allocation23 + $0x1] ss:$0 sm:$0xff] }
 0xec5   :  { %v2041_v31 = vmul.f32 0.7978846, %v2039_v29  ;;  %v2034_v32 = vmul.f32 %v2031_v30, %v2031_v30 }
 0xec7   :  { %v2036_v33 = vmul.f32 %v2034_v32, %v2031_v30  ;;  %2754 = vtanh.f32 %v2041_v31 }
 0xec9   :  { %v2038_v34 = vmul.f32 0.044715, %v2036_v33 }
 0xecb   :  { %v2040_v47 = vadd.f32 %v2038_v34, %v2031_v30 }
 0xecd   :  { %v2042_v35 = vmul.f32 0.7978846, %v2040_v47  ;;  %v2755_v36 = vpop.eup %2754 }
 0xece   :  { %v2045_v37 = vadd.f32 1.0, %v2755_v36 }
 0xecf   :  { %2756 = vtanh.f32 %v2042_v35 }
 0xed0   :  { %v2047_v40 = vmul.f32 0.5, %v2045_v37  ;;  %v2667_v37 = vld [vmem:[%s3828_s22] ss:$0 sm:$0xff] }
 0xed2   :  { %v2049_v42 = vmul.f32 %v2047_v40, %v2029_v54 }
 0xed5   :  { %v2757_v38 = vpop.eup %2756 }
 0xed6   :  { %v2046_v41 = vadd.f32 1.0, %v2757_v38 }
 0xed8   :  { %v2048_v51 = vmul.f32 0.5, %v2046_v41 }
 0xeda   :  { %v2050_v39 = vmul.f32 %v2048_v51, %v2031_v30 }
 0xedc   :  { %v2051_v43 = vpack.c.bf16 %v2050_v39, %v2049_v42 }
 0xede   :  { %2130 = vmatmul.bf16.vlgmr.msra.gmra.mxu0 %v2051_v43 }
 0xf5b   :  { %v2131_v20 = vpop.f32.mrf.mxu0 }
 0xf5c   :  { %v2132_v49 = vadd.f32 %v2664_v44, %v2131_v20 }
 0xf5e   :  { %v2136_v50 = vadd.f32 %v2132_v49, %v1991_v9  ;;  %v2256_v49 = vld [vmem:[#allocation7] sm:$0x3] }
 0xf60   :  { %v2142_v52 = vsel %vm295_vm0, %v2136_v50, 0.0 }
 0xf63   :  { %v2133_v45 = vpop.f32.mrf.mxu0 }
 0xf64   :  { %v2134_v46 = vadd.f32 %v2664_v44, %v2133_v45 }
 0xf66   :  { %v2137_v48 = vadd.f32 %v2134_v46, %v1992_v11 }
 0xf68   :  { %v2145_v6 = vsel %vm295_vm0, %v2137_v48, 0.0 }
 0xf69   :  { %2146 = vadd.xlane.f32.xlu1 %v2145_v6 }
 0xf71   :  { %2143 = vadd.xlane.f32.xlu1 %v2142_v52 }
 0xfdc   :  { %v2147_v55 = vpop.xlane.xlu1 %2146 }
 0xfdd   :  { %v2149_v53 = vmul.f32 %v2147_v55, %v3398_v10  ;;  %v3196_v55 = vmov 2.0  }
 0xfdf   :  { %v2151_v24 = vsub.f32 %v2137_v48, %v2149_v53 }
 0xfe1   :  { %v2153_v56 = vmul.f32 %v2151_v24, %v2151_v24 }
 0xfe3   :  { %v2157_v57 = vsel %vm295_vm0, %v2153_v56, 0.0 }
 0xfe4   :  { %2158 = vadd.xlane.f32.xlu1 %v2157_v57  ;;  %v2144_v58 = vpop.xlane.xlu1 %2143 }
 0xfe5   :  { %v2148_v59 = vmul.f32 %v2144_v58, %v3398_v10 }
 0xfe7   :  { %v2150_v60 = vsub.f32 %v2136_v50, %v2148_v59 }
 0xfe9   :  { %v2152_v61 = vmul.f32 %v2150_v60, %v2150_v60 }
 0xfeb   :  { %v2154_v62 = vsel %vm295_vm0, %v2152_v61, 0.0 }
 0xfec   :  { %2155 = vadd.xlane.f32.xlu1 %v2154_v62 }
0x1057   :  { %v2159_v63 = vpop.xlane.xlu1 %2158 }
0x1058   :  { %v2161_v0 = vmul.f32 %v2159_v63, %v3398_v10 }
0x105a   :  { %v2163_v1 = vadd.f32 1e-05, %v2161_v0 }
0x105c   :  { %2758 = vrsqrt.f32 %v2163_v1  ;;  %vm2180_vm1 = vweird.f32 %v2163_v1 }
0x105f   :  { %v2156_v4 = vpop.xlane.xlu1 %2155 }
0x1060   :  { %v2160_v5 = vmul.f32 %v2156_v4, %v3398_v10 }
0x1062   :  { %v2759_v7 = vpop.eup %2758  ;;  %v2162_v8 = vadd.f32 1e-05, %v2160_v5 }
0x1063   :  { %v2175_v9 = vmul.f32 %v2759_v7, %v2163_v1  ;;  %vm2181_vm15 = vweird.f32 %v2759_v7 }
0x1064   :  { %2760 = vrsqrt.f32 %v2162_v8  ;;  %vm2182_vm2 = vmor %vm2180_vm1, %vm2181_vm15  ;;  %vm2170_vm4 = vweird.f32 %v2162_v8 }
0x1065   :  { %v2176_v11 = vmul.f32 %v2759_v7, %v2175_v9 }
0x1067   :  { %v2177_v12 = vmul.f32 0.5, %v2176_v11 }
0x1069   :  { %v2178_v13 = vsub.f32 1.5, %v2177_v12 }
0x106a   :  { %v2761_v15 = vpop.eup %2760 }
0x106b   :  { %v2179_v16 = vmul.f32 %v2759_v7, %v2178_v13  ;;  %v2165_v17 = vmul.f32 %v2761_v15, %v2162_v8  ;;  %vm2171_vm3 = vweird.f32 %v2761_v15 }
0x106c   :  { %vm2172_vm5 = vmor %vm2170_vm4, %vm2171_vm3 }
0x106d   :  { %v2183_v19 = vsel %vm2182_vm2, %v2759_v7, %v2179_v16  ;;  %v2166_v21 = vmul.f32 %v2761_v15, %v2165_v17 }
0x106e   :  { %v2185_v22 = vmul.f32 %v2183_v19, %v2151_v24 }
0x106f   :  { %v2167_v10 = vmul.f32 0.5, %v2166_v21 }
0x1070   :  { %v2190_v23 = vmul.f32 %v2665_v18, %v2185_v22 }
0x1071   :  { %v2168_v54 = vsub.f32 1.5, %v2167_v10 }
0x1072   :  { %v2195_v25 = vadd.f32 %v2666_v14, %v2190_v23 }
0x1073   :  { %v2169_v26 = vmul.f32 %v2761_v15, %v2168_v54 }
0x1074   :  { %v2197_v28 = vpack.c.bf16 %v2195_v25, %v2195_v25 }
0x1075   :  { %v2173_v27 = vsel %vm2172_vm5, %v2761_v15, %v2169_v26 }
0x1076   :  { %v2184_v29 = vmul.f32 %v2173_v27, %v2150_v60  ;;  %v2209_v31 = vunpack.c.l.b16 %v2197_v28 }
0x1078   :  { %v2189_v30 = vmul.f32 %v2665_v18, %v2184_v29  ;;  %v2210_v34 = vrot.slane %v2209_v31, 7 }
0x107a   :  { %v2194_v32 = vadd.f32 %v2666_v14, %v2189_v30 }
0x107c   :  { %v2196_v33 = vpack.c.bf16 %v2194_v32, %v2194_v32 }
0x107e   :  { %v2208_v47 = vunpack.c.l.b16 %v2196_v33 }
0x1080   :  { %v2212_v35 = vsel %vm2211_vm6, %v2210_v34, %v2208_v47 }
0x1081   :  { %v2213_v36 = vpack.c.b16 %v2212_v35, %v2212_v35 }
0x1083   :  { %2550 = vmatmul.msk.bf16.vlgmr.msra.gmra.mxu1 %vm295_vm0, %v2213_v36  ;;  %vm2262_vm0 = vcmask 1041408  }
0x1100   :  { %v2238_v38 = vpop.f32.mrf.mxu1 }
0x1101   :  { %v2239_v40 = vadd.f32 %v2667_v37, %v2238_v38 }
0x1103   :  { %v2244_v41 = vsel %vm2242_vm7, %v2239_v40, -inf  ;;  %2243 = vst.msk [vmem:[#allocation25] sm:$0x3] %vm2242_vm7, %v2239_v40 }
0x1104   :  { %2245 = vmax.xlane.f32.xlu2 %v2244_v41  ;;  %2290 = dma.vmem_to_hbm [thread:$0]  %s2286_s11, 32, %s2288_s12, [#allocation4]  }
0x1108   :  { %v2240_v51 = vpop.f32.mrf.mxu1 }
0x1177   :  { %v2246_v42 = vpop.xlane.xlu2 %2245 }
0x1178   :  { %v2247_v39 = vsub.f32 %v2239_v40, %v2246_v42 }
0x117a   :  { %v2248_v43 = vmul.f32 1.442695, %v2247_v39 }
0x117c   :  { %2762 = vpow2.f32 %v2248_v43 }
0x1182   :  { %v2763_v20 = vpop.eup %2762 }
0x1183   :  { %v2250_v44 = vsel %vm2242_vm7, %v2763_v20, 0.0 }
0x1184   :  { %2251 = vadd.xlane.f32.xlu1 %v2250_v44 }
0x11f7   :  { %v2252_v45 = vpop.xlane.xlu1 %2251 }
0x11f8   :  { %2764 = vlog2.f32 %v2252_v45 }
0x11f9   :  { %2766 = vrcp.f32 %v3196_v55 }
0x11fe   :  { %v2765_v46 = vpop.eup %2764 }
0x11ff   :  { %v2254_v48 = vmul.f32 0.6931472, %v2765_v46  ;;  %v2767_v53 = vpop.eup %2766 }
0x1200   :  { %v2271_v24 = vmul.f32 2.0, %v2767_v53  ;;  %vm2275_vm12 = vweird.f32 %v2767_v53 }
0x1201   :  { %v2255_v6 = vsub.f32 %v2247_v39, %v2254_v48 }
0x1202   :  { %v2272_v58 = vsub.f32 1.0, %v2271_v24 }
0x1203   :  { %v2257_v50 = vmul.f32 %v2256_v49, %v2255_v6 }
0x1204   :  { %v2273_v61 = vmul.f32 %v2767_v53, %v2272_v58 }
0x1205   :  { %v2258_v52 = vsel %vm2242_vm7, %v2257_v50, 0.0 }
0x1206   :  { %2259 = vadd.xlane.f32.xlu2 %v2258_v52  ;;  %v2274_v0 = vadd.f32 %v2767_v53, %v2273_v61 }
0x1208   :  { %v2276_v3 = vsel %vm2275_vm12, %v2767_v53, %v2274_v0 }
0x1279   :  { %v2260_v56 = vpop.xlane.xlu2 %2259 }
0x127a   :  { %v2261_v57 = vsub.f32 0.0, %v2260_v56 }
0x127c   :  { %v2263_v59 = vsel %vm2262_vm0, %v2261_v57, 0.0 }
0x127d   :  { %v2264_v60 = vrot.slane %v2263_v59, 4 }
0x127f   :  { %v2265_v62 = vadd.f32 %v2264_v60, %v2263_v59 }
0x1281   :  { %v2266_v63 = vrot.slane %v2265_v62, 2 }
0x1283   :  { %v2267_v1 = vadd.f32 %v2266_v63, %v2265_v62 }
0x1285   :  { %v2268_v2 = vrot.slane %v2267_v1, 1 }
0x1287   :  { %v2269_v4 = vadd.f32 %v2268_v2, %v2267_v1 }
0x1289   :  { %v2277_v5 = vmul.f32 %v2276_v3, %v2269_v4 }
0x128b   :  { %2279 = vst.msk [vmem:[#allocation26] sm:$0x1] %vm2278_vm8, %v2277_v5 }
0x128c   :  { %2301 = dma.vmem_to_hbm [thread:$0]  %s2297_s14, 16, %s2299_s28, [#allocation27]  }
0x128d   :  { %3168 = dma.done.wait [#allocation4], 32  }
0x128e   :  { %3169 = vsyncadd [#allocation4], 4294967264 }
0x128f   :  { %3170 = dma.done.wait [#allocation27], 16  }
0x1290   :  { %3171 = vsyncadd [#allocation27], 4294967280 }
0x1291   :  { %2310 = vsyncpa [#allocation3], 1 }
0x1292   :  { %2311 = vsyncpa [#allocation6], 1 }
0x1293   :  { %2312 = vsyncpa [#allocation9], 1 }
0x1294   :  { %2313 = vsyncpa [#allocation12], 1 }
0x1295   :  { %2314 = vsyncpa [#allocation15], 1 }
0x1296   :  { %2315 = vsyncpa [#allocation18], 1 }
0x1297   :  { %2316 = vsyncpa [#allocation21], 1 }
0x1298   :  { %2317 = vsyncpa [#allocation24], 1 }
0x1299   :  { %2318 = vsyncpa [#allocation4], 1 }
0x129a   :  { %2319 = vsyncpa [#allocation27], 1 }

</bundles_post_ra>
